<compile_context>
chip_gen: v7x
topology: tpu7x:2x2x1
jax: 0.10.0
libtpu: 0.0.40
codegen_flags: <defaults>
</compile_context>

<pallas_src>
import jax
import jax.numpy as jnp
import numpy as np
from jax.experimental import pallas as pl
from jax.experimental.pallas import tpu as pltpu

_EPS = 1e-12
_FAR = 1e17     # padded-face v0 coordinate -> d ~ 3e34 in f32, never the argmin
_NROWS = 19     # packed per-face rows, see _pack_faces()


def _mesh_sdf_kernel(pts_ref, tri_ref, dist_ref, assoc_ref,
                     best_d_ref, best_j_ref):
    j = pl.program_id(1)
    nj = pl.num_programs(1)
    tp, tf = best_d_ref.shape

    pts = pts_ref[...]                                    # (TP, 3)
    tri = tri_ref[...]                                    # (_NROWS, TF)

    px = pts[:, 0:1]
    py = pts[:, 1:2]
    pz = pts[:, 2:3]                                      # (TP, 1)

    def row(r):
        return tri[r:r + 1, :]                            # (1, TF)

    v0x, v0y, v0z = row(0), row(1), row(2)
    e0x, e0y, e0z = row(3), row(4), row(5)
    e1x, e1y, e1z = row(6), row(7), row(8)
    ia00, ia01, ia11 = row(9), row(10), row(11)           # a** / det (0 if degenerate)
    a00, inv_a00 = row(12), row(13)
    a11, inv_a11 = row(14), row(15)
    c2, ee2, inv_ee2 = row(16), row(17), row(18)          # c2 = a00-a01, ee2 = |e1-e0|^2

    # w = P - V0  -> (TP, TF)
    wx = px - v0x
    wy = py - v0y
    wz = pz - v0z
    ww = wx * wx + wy * wy + wz * wz                      # |w|^2
    b0 = wx * e0x + wy * e0y + wz * e0z                   # w . e0
    b1 = wx * e1x + wy * e1y + wz * e1z                   # w . e1

    # distance to supporting plane via precomputed barycentric solve:
    #   proj = s*e0 + t*e1,  |w - proj|^2 = |w|^2 - (s*b0 + t*b1)
    s = ia11 * b0 - ia01 * b1
    t = ia00 * b1 - ia01 * b0
    d_face = ww - (s * b0 + t * b1)
    inside = (s >= 0.0) & (t >= 0.0) & ((s + t) <= 1.0)

    b0_2 = b0 + b0
    b1_2 = b1 + b1

    # edge V0->V1 (direction e0)
    t0 = jnp.clip(b0 * inv_a00, 0.0, 1.0)
    d_e0 = ww + t0 * (t0 * a00 - b0_2)
    # edge V0->V2 (direction e1)
    t1 = jnp.clip(b1 * inv_a11, 0.0, 1.0)
    d_e1 = ww + t1 * (t1 * a11 - b1_2)
    # edge V1->V2 (direction e1 - e0, start offset w - e0), all from b0/b1/consts
    we2 = (b1 - b0) + c2
    t2 = jnp.clip(we2 * inv_ee2, 0.0, 1.0)
    d_e2 = (ww - b0_2 + a00) + t2 * (t2 * ee2 - (we2 + we2))

    d_edge = jnp.minimum(d_e0, jnp.minimum(d_e1, d_e2))
    d = jnp.where(inside, jnp.minimum(d_face, d_edge), d_edge)
    d = jnp.maximum(d, 0.0)                               # (TP, TF)

    # ---- running lane-width accumulators across the face-tile axis ----
    @pl.when(j == 0)
    def _():
        best_d_ref[...] = d
        best_j_ref[...] = jnp.zeros_like(best_j_ref)

    @pl.when(j > 0)
    def _():
        bd = best_d_ref[...]
        better = d < bd                                    # strict '<': earlier tile wins ties
        best_d_ref[...] = jnp.where(better, d, bd)
        best_j_ref[...] = jnp.where(better, j, best_j_ref[...])

    # ---- single cross-lane min / argmin at the last face tile ----
    @pl.when(j == nj - 1)
    def _():
        bd = best_d_ref[...]
        bj = best_j_ref[...]
        d_min = jnp.min(bd, axis=-1, keepdims=True)                      # (TP, 1)
        col = jax.lax.broadcasted_iota(jnp.int32, (tp, tf), 1)
        cand = bj * tf + col                                             # absolute face index
        arg = jnp.min(jnp.where(bd == d_min, cand, jnp.int32(2 ** 30)),
                      axis=-1, keepdims=True)                            # lowest idx on tie
        dist_ref[...] = d_min
        assoc_ref[...] = arg


def _pack_faces(verts, faces):
    """Gather triangle vertices and precompute all per-face constants -> (19, F)."""
    v0 = verts[faces[:, 0]]
    v1 = verts[faces[:, 1]]
    v2 = verts[faces[:, 2]]
    e0 = v1 - v0
    e1 = v2 - v0
    a00 = jnp.sum(e0 * e0, axis=-1)
    a01 = jnp.sum(e0 * e1, axis=-1)
    a11 = jnp.sum(e1 * e1, axis=-1)
    det = a00 * a11 - a01 * a01
    inv_det = jnp.where(det > _EPS, 1.0 / jnp.maximum(det, _EPS), 0.0)
    e2 = e1 - e0
    ee2 = jnp.sum(e2 * e2, axis=-1)
    rows = [v0[:, 0], v0[:, 1], v0[:, 2],
            e0[:, 0], e0[:, 1], e0[:, 2],
            e1[:, 0], e1[:, 1], e1[:, 2],
            a00 * inv_det, a01 * inv_det, a11 * inv_det,
            a00, 1.0 / jnp.maximum(a00, _EPS),
            a11, 1.0 / jnp.maximum(a11, _EPS),
            a00 - a01, ee2, 1.0 / jnp.maximum(ee2, _EPS)]
    return jnp.stack(rows, axis=0).astype(jnp.float32)     # (_NROWS, F)


def _round_up(x, m):
    return ((x + m - 1) // m) * m


def mesh_sdf_loss(verts, faces, points, loss_type="l2", tp=256, tf=1024):
    if loss_type not in ("l2_norm", "l2"):
        raise ValueError(f"Invalid loss type: {loss_type}")

    P = points.shape[0]
    F = faces.shape[0]
    if P == 0 or F == 0:
        # TODO(synk): CUDA op behaviour for F == 0 is undefined; return zeros.
        return (jnp.float32(0.0),
                jnp.zeros((P,), jnp.float32),
                jnp.zeros((P,), jnp.int32))

    verts = verts.astype(jnp.float32)
    points = points.astype(jnp.float32)
    faces = faces.astype(jnp.int32)

    # Shrink tiles for small problems (avoid paying for padded compute); tile
    # dims must stay multiples of (8, 128).
    tp = max(8, min(tp, _round_up(P, 8)))
    tf = max(128, min(tf, _round_up(F, 128)))

    tri = _pack_faces(verts, faces)                        # (_NROWS, F)

    p_pad = pl.cdiv(P, tp) * tp
    f_pad = pl.cdiv(F, tf) * tf

    pts_p = jnp.zeros((p_pad, 3), jnp.float32).at[:P].set(points)
    # padded faces: degenerate triangle (e0 = e1 = 0) located very far away
    tri_p = (jnp.zeros((_NROWS, f_pad), jnp.float32)
             .at[0:3, :].set(_FAR)
             .at[:, :F].set(tri))

    dist2d, assoc2d = pl.pallas_call(
        _mesh_sdf_kernel,
        out_shape=(jax.ShapeDtypeStruct((p_pad, 1), jnp.float32),
                   jax.ShapeDtypeStruct((p_pad, 1), jnp.int32)),
        grid_spec=pltpu.PrefetchScalarGridSpec(
            num_scalar_prefetch=0,
            grid=(p_pad // tp, f_pad // tf),
            in_specs=[pl.BlockSpec((tp, 3), lambda i, j: (i, 0)),
                      pl.BlockSpec((_NROWS, tf), lambda i, j: (0, j))],
            out_specs=[pl.BlockSpec((tp, 1), lambda i, j: (i, 0)),
                       pl.BlockSpec((tp, 1), lambda i, j: (i, 0))],
            scratch_shapes=[pltpu.VMEM((tp, tf), jnp.float32),
                            pltpu.VMEM((tp, tf), jnp.int32)]),
        compiler_params=pltpu.CompilerParams(
            dimension_semantics=("parallel", "arbitrary"),
            vmem_limit_bytes=32 * 1024 * 1024),
    )(pts_p, tri_p)

    dist = dist2d[:P, 0]
    assoc = assoc2d[:P, 0]

    if loss_type == "l2_norm":
        loss = jnp.sqrt(dist).sum() / P
    else:  # "l2"
        loss = jnp.sum(dist) / P
    return loss, dist, assoc


def _ref_dist(verts, faces, points):
    """Brute-force pure-JAX reference (dense (P, F) point/triangle sq-distance)."""
    v0 = verts[faces[:, 0]]
    v1 = verts[faces[:, 1]]
    v2 = verts[faces[:, 2]]
    e0 = v1 - v0
    e1 = v2 - v0
    w = points[:, None, :] - v0[None, :, :]                  # (P, F, 3)
    a00 = jnp.einsum("fd,fd->f", e0, e0)[None]
    a01 = jnp.einsum("fd,fd->f", e0, e1)[None]
    a11 = jnp.einsum("fd,fd->f", e1, e1)[None]
    det = a00 * a11 - a01 * a01
    b0 = jnp.einsum("pfd,fd->pf", w, e0)
    b1 = jnp.einsum("pfd,fd->pf", w, e1)
    s_num = a11 * b0 - a01 * b1
    t_num = a00 * b1 - a01 * b0
    n = jnp.cross(e0, e1)
    wn = jnp.einsum("pfd,fd->pf", w, n)
    d_plane = wn * wn / jnp.maximum(det, _EPS)

    def seg(wv, ev):
        ee = jnp.einsum("fd,fd->f", ev, ev)[None]
        we = jnp.einsum("pfd,fd->pf", wv, ev)
        t = jnp.clip(we / jnp.maximum(ee, _EPS), 0.0, 1.0)
        return jnp.einsum("pfd,pfd->pf", wv, wv) - 2.0 * t * we + t * t * ee

    d_edge = jnp.minimum(seg(w, e0), jnp.minimum(seg(w, e1),
                                                 seg(w - e0[None], e1 - e0)))
    inside = (s_num >= 0) & (t_num >= 0) & (s_num + t_num <= det) & (det > _EPS)
    d = jnp.maximum(jnp.where(inside, jnp.minimum(d_plane, d_edge), d_edge), 0.0)
    return d.min(axis=-1)


def _check(verts, faces, points, loss_type):
    P = points.shape[0]
    F = faces.shape[0]
    loss, dist, assoc = mesh_sdf_loss(verts, faces, points, loss_type=loss_type)
    jax.block_until_ready((loss, dist, assoc))

    dist_ref = _ref_dist(verts, faces, points)
    if loss_type == "l2_norm":
        loss_ref = jnp.sqrt(dist_ref).sum() / P
    else:
        loss_ref = jnp.sum(dist_ref) / P

    assert dist.shape == (P,) and assoc.shape == (P,)
    assert bool(jnp.all((assoc >= 0) & (assoc < F)))
    np.testing.assert_allclose(np.asarray(dist), np.asarray(dist_ref),
                               rtol=2e-4, atol=1e-4)
    np.testing.assert_allclose(float(loss), float(loss_ref),
                               rtol=2e-4, atol=1e-4)


if __name__ == "__main__":
    key = jax.random.PRNGKey(0)

    # small single-tile case
    k1, k2, k3, k4, k5, k6 = jax.random.split(key, 6)
    V, F, P = 64, 100, 200
    verts = jax.random.normal(k1, (V, 3), dtype=jnp.float32)
    faces = jax.random.randint(k2, (F, 3), 0, V, dtype=jnp.int32)
    points = jax.random.normal(k3, (P, 3), dtype=jnp.float32) * 1.5
    _check(verts, faces, points, "l2")

    # multi-tile case (2 point tiles x 2 face tiles) + l2_norm path
    V2, F2, P2 = 256, 1500, 300
    verts2 = jax.random.normal(k4, (V2, 3), dtype=jnp.float32)
    faces2 = jax.random.randint(k5, (F2, 3), 0, V2, dtype=jnp.int32)
    points2 = jax.random.normal(k6, (P2, 3), dtype=jnp.float32) * 1.5
    _check(verts2, faces2, points2, "l2")
    _check(verts2, faces2, points2, "l2_norm")

    print("KERNEL_OK")
</pallas_src>

<mosaic_0001>
module attributes {stable_mosaic.version = 11 : i64} {
  func.func @_mesh_sdf_kernel(%arg0: i32, %arg1: i32, %arg2: memref<200x3xf32, #tpu.memory_space<vmem>>, %arg3: memref<19x128xf32, #tpu.memory_space<vmem>>, %arg4: memref<200x1xf32, #tpu.memory_space<vmem>>, %arg5: memref<200x1xi32, #tpu.memory_space<vmem>>, %arg6: memref<200x128xf32, #tpu.memory_space<vmem>>, %arg7: memref<200x128xi32, #tpu.memory_space<vmem>>) attributes {dimension_semantics = [#tpu.dimension_semantics<parallel>, #tpu.dimension_semantics<arbitrary>], iteration_bounds = array<i64: 1, 1>, scalar_prefetch = 0 : i64, scratch_operands = 2 : i64, tpu.core_type = #tpu.core_type<tc>, window_params = [{transform_indices = @transform_0, window_bounds = array<i64: 200, 3>}, {transform_indices = @transform_1, window_bounds = array<i64: 19, 128>}, {transform_indices = @transform_2, window_bounds = array<i64: 200, 1>}, {transform_indices = @transform_3, window_bounds = array<i64: 200, 1>}]} {
    %c0 = arith.constant 0 : index
    %c0_0 = arith.constant 0 : index
    %0 = vector.load %arg2[%c0, %c0_0] : memref<200x3xf32, #tpu.memory_space<vmem>>, vector<200x3xf32>
    %c0_1 = arith.constant 0 : index
    %c0_2 = arith.constant 0 : index
    %1 = vector.load %arg3[%c0_1, %c0_2] : memref<19x128xf32, #tpu.memory_space<vmem>>, vector<19x128xf32>
    %2 = vector.extract_strided_slice %0 {offsets = [0, 0], sizes = [200, 1], strides = [1, 1]} : vector<200x3xf32> to vector<200x1xf32>
    %3 = vector.extract_strided_slice %0 {offsets = [0, 1], sizes = [200, 1], strides = [1, 1]} : vector<200x3xf32> to vector<200x1xf32>
    %4 = vector.extract_strided_slice %0 {offsets = [0, 2], sizes = [200, 1], strides = [1, 1]} : vector<200x3xf32> to vector<200x1xf32>
    %5 = vector.extract_strided_slice %1 {offsets = [0, 0], sizes = [1, 128], strides = [1, 1]} : vector<19x128xf32> to vector<1x128xf32>
    %6 = vector.extract_strided_slice %1 {offsets = [1, 0], sizes = [1, 128], strides = [1, 1]} : vector<19x128xf32> to vector<1x128xf32>
    %7 = vector.extract_strided_slice %1 {offsets = [2, 0], sizes = [1, 128], strides = [1, 1]} : vector<19x128xf32> to vector<1x128xf32>
    %8 = vector.extract_strided_slice %1 {offsets = [3, 0], sizes = [1, 128], strides = [1, 1]} : vector<19x128xf32> to vector<1x128xf32>
    %9 = vector.extract_strided_slice %1 {offsets = [4, 0], sizes = [1, 128], strides = [1, 1]} : vector<19x128xf32> to vector<1x128xf32>
    %10 = vector.extract_strided_slice %1 {offsets = [5, 0], sizes = [1, 128], strides = [1, 1]} : vector<19x128xf32> to vector<1x128xf32>
    %11 = vector.extract_strided_slice %1 {offsets = [6, 0], sizes = [1, 128], strides = [1, 1]} : vector<19x128xf32> to vector<1x128xf32>
    %12 = vector.extract_strided_slice %1 {offsets = [7, 0], sizes = [1, 128], strides = [1, 1]} : vector<19x128xf32> to vector<1x128xf32>
    %13 = vector.extract_strided_slice %1 {offsets = [8, 0], sizes = [1, 128], strides = [1, 1]} : vector<19x128xf32> to vector<1x128xf32>
    %14 = vector.extract_strided_slice %1 {offsets = [9, 0], sizes = [1, 128], strides = [1, 1]} : vector<19x128xf32> to vector<1x128xf32>
    %15 = vector.extract_strided_slice %1 {offsets = [10, 0], sizes = [1, 128], strides = [1, 1]} : vector<19x128xf32> to vector<1x128xf32>
    %16 = vector.extract_strided_slice %1 {offsets = [11, 0], sizes = [1, 128], strides = [1, 1]} : vector<19x128xf32> to vector<1x128xf32>
    %17 = vector.extract_strided_slice %1 {offsets = [12, 0], sizes = [1, 128], strides = [1, 1]} : vector<19x128xf32> to vector<1x128xf32>
    %18 = vector.extract_strided_slice %1 {offsets = [13, 0], sizes = [1, 128], strides = [1, 1]} : vector<19x128xf32> to vector<1x128xf32>
    %19 = vector.extract_strided_slice %1 {offsets = [14, 0], sizes = [1, 128], strides = [1, 1]} : vector<19x128xf32> to vector<1x128xf32>
    %20 = vector.extract_strided_slice %1 {offsets = [15, 0], sizes = [1, 128], strides = [1, 1]} : vector<19x128xf32> to vector<1x128xf32>
    %21 = vector.extract_strided_slice %1 {offsets = [16, 0], sizes = [1, 128], strides = [1, 1]} : vector<19x128xf32> to vector<1x128xf32>
    %22 = vector.extract_strided_slice %1 {offsets = [17, 0], sizes = [1, 128], strides = [1, 1]} : vector<19x128xf32> to vector<1x128xf32>
    %23 = vector.extract_strided_slice %1 {offsets = [18, 0], sizes = [1, 128], strides = [1, 1]} : vector<19x128xf32> to vector<1x128xf32>
    %24 = vector.broadcast %2 : vector<200x1xf32> to vector<200x128xf32>
    %25 = vector.broadcast %5 : vector<1x128xf32> to vector<200x128xf32>
    %26 = arith.subf %24, %25 : vector<200x128xf32>
    %27 = vector.broadcast %3 : vector<200x1xf32> to vector<200x128xf32>
    %28 = vector.broadcast %6 : vector<1x128xf32> to vector<200x128xf32>
    %29 = arith.subf %27, %28 : vector<200x128xf32>
    %30 = vector.broadcast %4 : vector<200x1xf32> to vector<200x128xf32>
    %31 = vector.broadcast %7 : vector<1x128xf32> to vector<200x128xf32>
    %32 = arith.subf %30, %31 : vector<200x128xf32>
    %33 = arith.mulf %26, %26 : vector<200x128xf32>
    %34 = arith.mulf %29, %29 : vector<200x128xf32>
    %35 = arith.addf %33, %34 : vector<200x128xf32>
    %36 = arith.mulf %32, %32 : vector<200x128xf32>
    %37 = arith.addf %35, %36 : vector<200x128xf32>
    %38 = vector.broadcast %8 : vector<1x128xf32> to vector<200x128xf32>
    %39 = arith.mulf %26, %38 : vector<200x128xf32>
    %40 = vector.broadcast %9 : vector<1x128xf32> to vector<200x128xf32>
    %41 = arith.mulf %29, %40 : vector<200x128xf32>
    %42 = arith.addf %39, %41 : vector<200x128xf32>
    %43 = vector.broadcast %10 : vector<1x128xf32> to vector<200x128xf32>
    %44 = arith.mulf %32, %43 : vector<200x128xf32>
    %45 = arith.addf %42, %44 : vector<200x128xf32>
    %46 = vector.broadcast %11 : vector<1x128xf32> to vector<200x128xf32>
    %47 = arith.mulf %26, %46 : vector<200x128xf32>
    %48 = vector.broadcast %12 : vector<1x128xf32> to vector<200x128xf32>
    %49 = arith.mulf %29, %48 : vector<200x128xf32>
    %50 = arith.addf %47, %49 : vector<200x128xf32>
    %51 = vector.broadcast %13 : vector<1x128xf32> to vector<200x128xf32>
    %52 = arith.mulf %32, %51 : vector<200x128xf32>
    %53 = arith.addf %50, %52 : vector<200x128xf32>
    %54 = vector.broadcast %16 : vector<1x128xf32> to vector<200x128xf32>
    %55 = arith.mulf %54, %45 : vector<200x128xf32>
    %56 = vector.broadcast %15 : vector<1x128xf32> to vector<200x128xf32>
    %57 = arith.mulf %56, %53 : vector<200x128xf32>
    %58 = arith.subf %55, %57 : vector<200x128xf32>
    %59 = vector.broadcast %14 : vector<1x128xf32> to vector<200x128xf32>
    %60 = arith.mulf %59, %53 : vector<200x128xf32>
    %61 = vector.broadcast %15 : vector<1x128xf32> to vector<200x128xf32>
    %62 = arith.mulf %61, %45 : vector<200x128xf32>
    %63 = arith.subf %60, %62 : vector<200x128xf32>
    %64 = arith.mulf %58, %45 : vector<200x128xf32>
    %65 = arith.mulf %63, %53 : vector<200x128xf32>
    %66 = arith.addf %64, %65 : vector<200x128xf32>
    %67 = arith.subf %37, %66 : vector<200x128xf32>
    %cst = arith.constant 0.000000e+00 : f32
    %68 = vector.broadcast %cst : f32 to vector<200x128xf32>
    %69 = arith.cmpf oge, %58, %68 : vector<200x128xf32>
    %cst_3 = arith.constant 0.000000e+00 : f32
    %70 = vector.broadcast %cst_3 : f32 to vector<200x128xf32>
    %71 = arith.cmpf oge, %63, %70 : vector<200x128xf32>
    %72 = arith.andi %69, %71 : vector<200x128xi1>
    %73 = arith.addf %58, %63 : vector<200x128xf32>
    %cst_4 = arith.constant 1.000000e+00 : f32
    %74 = vector.broadcast %cst_4 : f32 to vector<200x128xf32>
    %75 = arith.cmpf ole, %73, %74 : vector<200x128xf32>
    %76 = arith.andi %72, %75 : vector<200x128xi1>
    %77 = arith.addf %45, %45 : vector<200x128xf32>
    %78 = arith.addf %53, %53 : vector<200x128xf32>
    %79 = vector.broadcast %18 : vector<1x128xf32> to vector<200x128xf32>
    %80 = arith.mulf %45, %79 : vector<200x128xf32>
    %cst_5 = arith.constant 0.000000e+00 : f32
    %cst_6 = arith.constant 1.000000e+00 : f32
    %81 = vector.broadcast %cst_5 : f32 to vector<200x128xf32>
    %82 = arith.maximumf %81, %80 : vector<200x128xf32>
    %83 = vector.broadcast %cst_6 : f32 to vector<200x128xf32>
    %84 = arith.minimumf %83, %82 : vector<200x128xf32>
    %85 = vector.broadcast %17 : vector<1x128xf32> to vector<200x128xf32>
    %86 = arith.mulf %84, %85 : vector<200x128xf32>
    %87 = arith.subf %86, %77 : vector<200x128xf32>
    %88 = arith.mulf %84, %87 : vector<200x128xf32>
    %89 = arith.addf %37, %88 : vector<200x128xf32>
    %90 = vector.broadcast %20 : vector<1x128xf32> to vector<200x128xf32>
    %91 = arith.mulf %53, %90 : vector<200x128xf32>
    %cst_7 = arith.constant 0.000000e+00 : f32
    %cst_8 = arith.constant 1.000000e+00 : f32
    %92 = vector.broadcast %cst_7 : f32 to vector<200x128xf32>
    %93 = arith.maximumf %92, %91 : vector<200x128xf32>
    %94 = vector.broadcast %cst_8 : f32 to vector<200x128xf32>
    %95 = arith.minimumf %94, %93 : vector<200x128xf32>
    %96 = vector.broadcast %19 : vector<1x128xf32> to vector<200x128xf32>
    %97 = arith.mulf %95, %96 : vector<200x128xf32>
    %98 = arith.subf %97, %78 : vector<200x128xf32>
    %99 = arith.mulf %95, %98 : vector<200x128xf32>
    %100 = arith.addf %37, %99 : vector<200x128xf32>
    %101 = arith.subf %53, %45 : vector<200x128xf32>
    %102 = vector.broadcast %21 : vector<1x128xf32> to vector<200x128xf32>
    %103 = arith.addf %101, %102 : vector<200x128xf32>
    %104 = vector.broadcast %23 : vector<1x128xf32> to vector<200x128xf32>
    %105 = arith.mulf %103, %104 : vector<200x128xf32>
    %cst_9 = arith.constant 0.000000e+00 : f32
    %cst_10 = arith.constant 1.000000e+00 : f32
    %106 = vector.broadcast %cst_9 : f32 to vector<200x128xf32>
    %107 = arith.maximumf %106, %105 : vector<200x128xf32>
    %108 = vector.broadcast %cst_10 : f32 to vector<200x128xf32>
    %109 = arith.minimumf %108, %107 : vector<200x128xf32>
    %110 = arith.subf %37, %77 : vector<200x128xf32>
    %111 = vector.broadcast %17 : vector<1x128xf32> to vector<200x128xf32>
    %112 = arith.addf %110, %111 : vector<200x128xf32>
    %113 = vector.broadcast %22 : vector<1x128xf32> to vector<200x128xf32>
    %114 = arith.mulf %109, %113 : vector<200x128xf32>
    %115 = arith.addf %103, %103 : vector<200x128xf32>
    %116 = arith.subf %114, %115 : vector<200x128xf32>
    %117 = arith.mulf %109, %116 : vector<200x128xf32>
    %118 = arith.addf %112, %117 : vector<200x128xf32>
    %119 = arith.minimumf %100, %118 : vector<200x128xf32>
    %120 = arith.minimumf %89, %119 : vector<200x128xf32>
    %121 = arith.minimumf %67, %120 : vector<200x128xf32>
    %122 = arith.select %76, %121, %120 : vector<200x128xi1>, vector<200x128xf32>
    %cst_11 = arith.constant 0.000000e+00 : f32
    %123 = vector.broadcast %cst_11 : f32 to vector<200x128xf32>
    %124 = arith.maximumf %122, %123 : vector<200x128xf32>
    %c0_i32 = arith.constant 0 : i32
    %125 = arith.cmpi eq, %arg1, %c0_i32 : i32
    %126 = arith.extui %125 : i1 to i32
    %c0_i32_12 = arith.constant 0 : i32
    %127 = arith.cmpi ne, %126, %c0_i32_12 : i32
    scf.if %127 {
      %c0_17 = arith.constant 0 : index
      %c0_18 = arith.constant 0 : index
      %134 = vector.load %arg6[%c0_17, %c0_18] : memref<200x128xf32, #tpu.memory_space<vmem>>, vector<200x128xf32>
      tpu.vector_store %arg6[%c0_17, %c0_18], %124 {strides = array<i32>} : memref<200x128xf32, #tpu.memory_space<vmem>>, vector<200x128xf32>,
      %c0_i32_19 = arith.constant 0 : i32
      %135 = vector.broadcast %c0_i32_19 : i32 to vector<200x128xi32>
      %c0_20 = arith.constant 0 : index
      %c0_21 = arith.constant 0 : index
      %136 = vector.load %arg7[%c0_20, %c0_21] : memref<200x128xi32, #tpu.memory_space<vmem>>, vector<200x128xi32>
      tpu.vector_store %arg7[%c0_20, %c0_21], %135 {strides = array<i32>} : memref<200x128xi32, #tpu.memory_space<vmem>>, vector<200x128xi32>,
    } else {
    }
    %c0_i32_13 = arith.constant 0 : i32
    %128 = arith.cmpi sgt, %arg1, %c0_i32_13 : i32
    %129 = arith.extui %128 : i1 to i32
    %c0_i32_14 = arith.constant 0 : i32
    %130 = arith.cmpi ne, %129, %c0_i32_14 : i32
    scf.if %130 {
      %c0_17 = arith.constant 0 : index
      %c0_18 = arith.constant 0 : index
      %134 = vector.load %arg6[%c0_17, %c0_18] : memref<200x128xf32, #tpu.memory_space<vmem>>, vector<200x128xf32>
      %135 = arith.cmpf olt, %124, %134 : vector<200x128xf32>
      %136 = arith.select %135, %124, %134 : vector<200x128xi1>, vector<200x128xf32>
      %c0_19 = arith.constant 0 : index
      %c0_20 = arith.constant 0 : index
      %137 = vector.load %arg6[%c0_19, %c0_20] : memref<200x128xf32, #tpu.memory_space<vmem>>, vector<200x128xf32>
      tpu.vector_store %arg6[%c0_19, %c0_20], %136 {strides = array<i32>} : memref<200x128xf32, #tpu.memory_space<vmem>>, vector<200x128xf32>,
      %c0_21 = arith.constant 0 : index
      %c0_22 = arith.constant 0 : index
      %138 = vector.load %arg7[%c0_21, %c0_22] : memref<200x128xi32, #tpu.memory_space<vmem>>, vector<200x128xi32>
      %139 = vector.broadcast %arg1 : i32 to vector<200x128xi32>
      %140 = arith.select %135, %139, %138 : vector<200x128xi1>, vector<200x128xi32>
      %c0_23 = arith.constant 0 : index
      %c0_24 = arith.constant 0 : index
      %141 = vector.load %arg7[%c0_23, %c0_24] : memref<200x128xi32, #tpu.memory_space<vmem>>, vector<200x128xi32>
      tpu.vector_store %arg7[%c0_23, %c0_24], %140 {strides = array<i32>} : memref<200x128xi32, #tpu.memory_space<vmem>>, vector<200x128xi32>,
    } else {
    }
    %c0_i32_15 = arith.constant 0 : i32
    %131 = arith.cmpi eq, %arg1, %c0_i32_15 : i32
    %132 = arith.extui %131 : i1 to i32
    %c0_i32_16 = arith.constant 0 : i32
    %133 = arith.cmpi ne, %132, %c0_i32_16 : i32
    scf.if %133 {
      %c0_17 = arith.constant 0 : index
      %c0_18 = arith.constant 0 : index
      %134 = vector.load %arg6[%c0_17, %c0_18] : memref<200x128xf32, #tpu.memory_space<vmem>>, vector<200x128xf32>
      %c0_19 = arith.constant 0 : index
      %c0_20 = arith.constant 0 : index
      %135 = vector.load %arg7[%c0_19, %c0_20] : memref<200x128xi32, #tpu.memory_space<vmem>>, vector<200x128xi32>
      %cst_21 = arith.constant dense<0x7F800000> : vector<200xf32>
      %136 = vector.multi_reduction <minimumf>, %134, %cst_21 [1] : vector<200x128xf32> to vector<200xf32>
      %137 = vector.shape_cast %136 : vector<200xf32> to vector<200x1xf32>
      %138 = tpu.iota {dimensions = array<i32: 1>} : vector<200x128xi32>
      %c128_i32 = arith.constant 128 : i32
      %139 = vector.broadcast %c128_i32 : i32 to vector<200x128xi32>
      %140 = arith.muli %135, %139 : vector<200x128xi32>
      %141 = arith.addi %140, %138 : vector<200x128xi32>
      %142 = vector.broadcast %137 : vector<200x1xf32> to vector<200x128xf32>
      %143 = arith.cmpf oeq, %134, %142 : vector<200x128xf32>
      %c1073741824_i32 = arith.constant 1073741824 : i32
      %144 = vector.broadcast %c1073741824_i32 : i32 to vector<200x128xi32>
      %145 = arith.select %143, %141, %144 : vector<200x128xi1>, vector<200x128xi32>
      %cst_22 = arith.constant dense<2147483647> : vector<200xi32>
      %146 = vector.multi_reduction <minsi>, %145, %cst_22 [1] : vector<200x128xi32> to vector<200xi32>
      %147 = vector.shape_cast %146 : vector<200xi32> to vector<200x1xi32>
      %c0_23 = arith.constant 0 : index
      %c0_24 = arith.constant 0 : index
      %148 = vector.load %arg4[%c0_23, %c0_24] : memref<200x1xf32, #tpu.memory_space<vmem>>, vector<200x1xf32>
      tpu.vector_store %arg4[%c0_23, %c0_24], %137 {strides = array<i32>} : memref<200x1xf32, #tpu.memory_space<vmem>>, vector<200x1xf32>,
      %c0_25 = arith.constant 0 : index
      %c0_26 = arith.constant 0 : index
      %149 = vector.load %arg5[%c0_25, %c0_26] : memref<200x1xi32, #tpu.memory_space<vmem>>, vector<200x1xi32>
      tpu.vector_store %arg5[%c0_25, %c0_26], %147 {strides = array<i32>} : memref<200x1xi32, #tpu.memory_space<vmem>>, vector<200x1xi32>,
    } else {
    }
    return
  }
  func.func @transform_0(%arg0: i32, %arg1: i32) -> (i32, i32) {
    %c0_i32 = arith.constant 0 : i32
    %c0_i32_0 = arith.constant 0 : i32
    return %arg0, %c0_i32 : i32, i32
  }
  func.func @transform_1(%arg0: i32, %arg1: i32) -> (i32, i32) {
    %c0_i32 = arith.constant 0 : i32
    %c0_i32_0 = arith.constant 0 : i32
    return %c0_i32, %arg1 : i32, i32
  }
  func.func @transform_2(%arg0: i32, %arg1: i32) -> (i32, i32) {
    %c0_i32 = arith.constant 0 : i32
    %c0_i32_0 = arith.constant 0 : i32
    return %arg0, %c0_i32 : i32, i32
  }
  func.func @transform_3(%arg0: i32, %arg1: i32) -> (i32, i32) {
    %c0_i32 = arith.constant 0 : i32
    %c0_i32_0 = arith.constant 0 : i32
    return %arg0, %c0_i32 : i32, i32
  }
}

</mosaic_0001>

<bundles_post_ra>
// kernel: tpu_custom_call.1
= control target key start
LH: loop header
LB: loop body
LE: loop exit
PB: predicated region body
PF: predicated region fallthrough
CT: control target
= control target key end

     0   :  { %v2974_v0 = vmov 0   ;;  %v2975_v26 = vmov 1   ;;  %v2976_v27 = vmov 2   ;;  %v6059_v28 = vlaneseq  ;;  %s6055_s0 = inlined_call_operand.vmem [shape: f32[200,3], index: 0, kind: input, shape index: {}]   ;;  %s6056_s1 = inlined_call_operand.vmem [shape: f32[19,128], index: 1, kind: input, shape index: {}]   ;;  %s6057_s2 = inlined_call_operand.vmem [shape: f32[200,1], index: 2, kind: output, shape index: {0}]   ;;  %s6058_s3 = inlined_call_operand.vmem [shape: s32[200,1], index: 3, kind: output, shape index: {1}]  }
   0x1   :  { %2969 = vset.pattern.permute.xlu1 %v2974_v0  ;;  %2968 = vset.pattern.permute.xlu0 %v2974_v0  ;;  %v3000_v1 = vld [vmem:[%s6055_s0 + $0x10] sm:$0xff]  ;;  %v3005_v2 = vld [vmem:[%s6055_s0] sm:$0xff]  ;;  %v3012_v3 = vld [vmem:[%s6055_s0 + $0x18] sm:$0xff] }
   0x2   :  { %53 = vperm.xlu1 %2969, %v3000_v1   ;;  %43 = vperm.xlu0 %2968, %v3005_v2   ;;  %v3017_v4 = vld [vmem:[%s6055_s0 + $0x8] sm:$0xff]  ;;  %v3029_v6 = vld [vmem:[%s6055_s0 + $0x20] sm:$0xff]  ;;  %v3036_v7 = vld [vmem:[%s6055_s0 + $0x38] sm:$0xff]  ;;  %v3187_v29 = vshrl.u32 %v6059_v28, 7 }
   0x3   :  { %v3024_v5 = vld [vmem:[%s6055_s0 + $0x28] sm:$0xff]  ;;  %v3041_v8 = vld [vmem:[%s6055_s0 + $0x30] sm:$0xff]  ;;  %v3053_v10 = vld [vmem:[%s6055_s0 + $0x40] sm:$0xff] }
   0x4   :  { %v3048_v9 = vld [vmem:[%s6055_s0 + $0x48] sm:$0xff]  ;;  %v3060_v11 = vld [vmem:[%s6055_s0 + $0x58] sm:$0xff]  ;;  %v3065_v12 = vld [vmem:[%s6055_s0 + $0x50] sm:$0xff]  ;;  %v3194_v32 = vsub.s32 0, %v3187_v29  ;;  %v6061_v36 = vsub.s32 3, %v3187_v29  ;;  %v6060_v37 = vsub.s32 6, %v3187_v29 }
   0x5   :  { %v3072_v13 = vld [vmem:[%s6055_s0 + $0x68] sm:$0xff]  ;;  %v3077_v14 = vld [vmem:[%s6055_s0 + $0x60] sm:$0xff]  ;;  %v3084_v15 = vld [vmem:[%s6055_s0 + $0x78] sm:$0xff] }
   0x6   :  { %58 = vperm.xlu1 %2969, %v3012_v3   ;;  %48 = vperm.xlu0 %2968, %v3017_v4   ;;  %v3089_v16 = vld [vmem:[%s6055_s0 + $0x70] sm:$0xff]  ;;  %v3096_v17 = vld [vmem:[%s6055_s0 + $0x88] sm:$0xff]  ;;  %v3101_v18 = vld [vmem:[%s6055_s0 + $0x80] sm:$0xff] }
   0x7   :  { %v3108_v19 = vld [vmem:[%s6055_s0 + $0x98] sm:$0xff]  ;;  %v3113_v20 = vld [vmem:[%s6055_s0 + $0x90] sm:$0xff]  ;;  %v3120_v21 = vld [vmem:[%s6055_s0 + $0xa8] sm:$0xff] }
   0x8   :  { %v3125_v22 = vld [vmem:[%s6055_s0 + $0xa0] sm:$0xff]  ;;  %v3132_v23 = vld [vmem:[%s6055_s0 + $0xb8] sm:$0xff]  ;;  %v3137_v24 = vld [vmem:[%s6055_s0 + $0xb0] sm:$0xff] }
   0x9   :  { %v3144_v25 = vld [vmem:[%s6055_s0 + $0xc0] sm:$0xff] }
   0xa   :  { %68 = vperm.xlu1 %2969, %v3024_v5   ;;  %63 = vperm.xlu0 %2968, %v3029_v6   ;;  %v3200_v33 = vld [vmem:[%s6056_s1] sm:$0xff] }
   0xb   :  { %v3211_v38 = vrot.slane %v3200_v33, %v3194_v32  ;;  %v3220_v41 = vrot.slane %v3200_v33, %v6061_v36  ;;  %v3225_v42 = vrot.slane %v3200_v33, %v6060_v37 }
   0xe   :  { %78 = vperm.xlu1 %2969, %v3036_v7   ;;  %73 = vperm.xlu0 %2968, %v3041_v8  }
  0x12   :  { %88 = vperm.xlu1 %2969, %v3048_v9   ;;  %83 = vperm.xlu0 %2968, %v3053_v10  }
  0x16   :  { %98 = vperm.xlu1 %2969, %v3060_v11   ;;  %93 = vperm.xlu0 %2968, %v3065_v12  }
  0x1a   :  { %108 = vperm.xlu1 %2969, %v3072_v13   ;;  %103 = vperm.xlu0 %2968, %v3077_v14  }
  0x1e   :  { %118 = vperm.xlu1 %2969, %v3084_v15   ;;  %113 = vperm.xlu0 %2968, %v3089_v16  }
  0x22   :  { %128 = vperm.xlu1 %2969, %v3096_v17   ;;  %123 = vperm.xlu0 %2968, %v3101_v18  }
  0x26   :  { %138 = vperm.xlu1 %2969, %v3108_v19   ;;  %133 = vperm.xlu0 %2968, %v3113_v20  }
  0x2a   :  { %148 = vperm.xlu1 %2969, %v3120_v21   ;;  %143 = vperm.xlu0 %2968, %v3125_v22  }
  0x2e   :  { %158 = vperm.xlu1 %2969, %v3132_v23   ;;  %153 = vperm.xlu0 %2968, %v3137_v24  }
  0x32   :  { %2970 = vset.pattern.permute.xlu1 %v2975_v26  ;;  %163 = vperm.xlu0 %2968, %v3144_v25  }
  0x33   :  { %196 = vperm.xlu1 %2970, %v3005_v2  }
  0x36   :  { %2971 = vset.pattern.permute.xlu0 %v2975_v26 }
  0x37   :  { %204 = vperm.xlu1 %2970, %v3000_v1   ;;  %200 = vperm.xlu0 %2971, %v3017_v4  }
  0x3b   :  { %208 = vperm.xlu1 %2970, %v3012_v3   ;;  %212 = vperm.xlu0 %2971, %v3029_v6  }
  0x3f   :  { %216 = vperm.xlu1 %2970, %v3024_v5   ;;  %220 = vperm.xlu0 %2971, %v3041_v8  }
  0x43   :  { %224 = vperm.xlu1 %2970, %v3036_v7   ;;  %228 = vperm.xlu0 %2971, %v3053_v10  }
  0x47   :  { %232 = vperm.xlu1 %2970, %v3048_v9   ;;  %236 = vperm.xlu0 %2971, %v3065_v12  }
  0x4b   :  { %240 = vperm.xlu1 %2970, %v3060_v11   ;;  %244 = vperm.xlu0 %2971, %v3077_v14  }
  0x4f   :  { %248 = vperm.xlu1 %2970, %v3072_v13   ;;  %252 = vperm.xlu0 %2971, %v3089_v16  }
  0x53   :  { %256 = vperm.xlu1 %2970, %v3084_v15   ;;  %260 = vperm.xlu0 %2971, %v3101_v18  }
  0x57   :  { %264 = vperm.xlu1 %2970, %v3096_v17   ;;  %268 = vperm.xlu0 %2971, %v3113_v20  }
  0x5b   :  { %272 = vperm.xlu1 %2970, %v3108_v19   ;;  %276 = vperm.xlu0 %2971, %v3125_v22  }
  0x5f   :  { %280 = vperm.xlu1 %2970, %v3120_v21   ;;  %284 = vperm.xlu0 %2971, %v3137_v24  }
  0x63   :  { %288 = vperm.xlu1 %2970, %v3132_v23   ;;  %292 = vperm.xlu0 %2971, %v3144_v25  }
  0x67   :  { %2972 = vset.pattern.permute.xlu1 %v2976_v27  ;;  %2973 = vset.pattern.permute.xlu0 %v2976_v27 }
  0x68   :  { %325 = vperm.xlu1 %2972, %v3005_v2   ;;  %329 = vperm.xlu0 %2973, %v3017_v4  }
  0x6c   :  { %333 = vperm.xlu1 %2972, %v3000_v1   ;;  %341 = vperm.xlu0 %2973, %v3029_v6  }
  0x70   :  { %337 = vperm.xlu1 %2972, %v3012_v3   ;;  %349 = vperm.xlu0 %2973, %v3041_v8  }
  0x74   :  { %345 = vperm.xlu1 %2972, %v3024_v5   ;;  %357 = vperm.xlu0 %2973, %v3053_v10  }
  0x78   :  { %353 = vperm.xlu1 %2972, %v3036_v7   ;;  %365 = vperm.xlu0 %2973, %v3065_v12  }
  0x7c   :  { %361 = vperm.xlu1 %2972, %v3048_v9   ;;  %373 = vperm.xlu0 %2973, %v3077_v14  }
  0x80   :  { %369 = vperm.xlu1 %2972, %v3060_v11   ;;  %381 = vperm.xlu0 %2973, %v3089_v16  }
  0x81   :  { %v3189_v30 = vpop.permute.xlu1 %53  ;;  %v3191_v31 = vpop.permute.xlu0 %43 }
  0x84   :  { %377 = vperm.xlu1 %2972, %v3072_v13   ;;  %389 = vperm.xlu0 %2973, %v3101_v18  }
  0x85   :  { %v3203_v34 = vpop.permute.xlu1 %58  ;;  %v3205_v35 = vpop.permute.xlu0 %48 }
  0x88   :  { %385 = vperm.xlu1 %2972, %v3084_v15   ;;  %397 = vperm.xlu0 %2973, %v3113_v20  }
  0x89   :  { %v69_v39 = vpop.permute.xlu1 %68  ;;  %v3215_v40 = vpop.permute.xlu0 %63 }
  0x8a   :  { %v3228_v43 = vsub.f32 %v69_v39, %v3211_v38 }
  0x8c   :  { %v3232_v44 = vmul.f32 %v3220_v41, %v3228_v43  ;;  %v3236_v45 = vmul.f32 %v3225_v42, %v3228_v43  ;;  %393 = vperm.xlu1 %2972, %v3096_v17   ;;  %405 = vperm.xlu0 %2973, %v3125_v22  }
  0x8d   :  { %v79_v46 = vpop.permute.xlu1 %78  ;;  %v74_v47 = vpop.permute.xlu0 %73 }
  0x8e   :  { %v3241_v48 = vsub.f32 %v79_v46, %v3211_v38  ;;  %v3244_v49 = vsub.f32 %v74_v47, %v3211_v38 }
  0x90   :  { %v3248_v50 = vmul.f32 %v3220_v41, %v3241_v48  ;;  %v3252_v51 = vmul.f32 %v3225_v42, %v3241_v48  ;;  %401 = vperm.xlu1 %2972, %v3108_v19   ;;  %v3257_v52 = vmul.f32 %v3220_v41, %v3244_v49  ;;  %v3261_v53 = vmul.f32 %v3225_v42, %v3244_v49 }
  0x91   :  { %413 = vperm.xlu0 %2973, %v3137_v24   ;;  %v89_v54 = vpop.permute.xlu1 %88  ;;  %v84_v55 = vpop.permute.xlu0 %83 }
  0x92   :  { %v3265_v56 = vsub.f32 %v89_v54, %v3211_v38  ;;  %v3268_v57 = vsub.f32 %v84_v55, %v3211_v38 }
  0x94   :  { %v3272_v58 = vmul.f32 %v3220_v41, %v3265_v56  ;;  %v3276_v59 = vmul.f32 %v3225_v42, %v3265_v56  ;;  %409 = vperm.xlu1 %2972, %v3120_v21   ;;  %v3281_v60 = vmul.f32 %v3220_v41, %v3268_v57  ;;  %v3285_v61 = vmul.f32 %v3225_v42, %v3268_v57 }
  0x95   :  { %421 = vperm.xlu0 %2973, %v3144_v25   ;;  %v99_v62 = vpop.permute.xlu1 %98  ;;  %v94_v63 = vpop.permute.xlu0 %93 }
  0x96   :  { %v3289_v0 = vsub.f32 %v99_v62, %v3211_v38  ;;  %v3292_v1 = vsub.f32 %v94_v63, %v3211_v38 }
  0x98   :  { %v3296_v2 = vmul.f32 %v3220_v41, %v3289_v0  ;;  %v3300_v3 = vmul.f32 %v3225_v42, %v3289_v0  ;;  %417 = vperm.xlu1 %2972, %v3132_v23   ;;  %v3305_v4 = vmul.f32 %v3220_v41, %v3292_v1  ;;  %v3309_v5 = vmul.f32 %v3225_v42, %v3292_v1 }
  0x99   :  { %v109_v6 = vpop.permute.xlu1 %108  ;;  %v104_v7 = vpop.permute.xlu0 %103 }
  0x9a   :  { %v3312_v8 = vsub.f32 %v109_v6, %v3211_v38  ;;  %v3315_v9 = vsub.f32 %v104_v7, %v3211_v38 }
  0x9c   :  { %v3319_v10 = vmul.f32 %v3220_v41, %v3312_v8  ;;  %v3323_v11 = vmul.f32 %v3225_v42, %v3312_v8  ;;  %v3327_v12 = vmul.f32 %v3220_v41, %v3315_v9  ;;  %v3331_v13 = vmul.f32 %v3225_v42, %v3315_v9 }
  0x9d   :  { %v119_v14 = vpop.permute.xlu1 %118  ;;  %v114_v15 = vpop.permute.xlu0 %113 }
  0x9e   :  { %6132 = vst [vmem:[#allocation4_spill] sm:$0xff] %v3319_v10  ;;  %6133 = vst [vmem:[#allocation5_spill] sm:$0xff] %v3323_v11  ;;  %v3334_v16 = vsub.f32 %v119_v14, %v3211_v38  ;;  %v3337_v17 = vsub.f32 %v114_v15, %v3211_v38 }
  0x9f   :  { %6134 = vst [vmem:[#allocation6_spill] sm:$0xff] %v3331_v13  ;;  %v171_v13 = vsub.f32 %v3205_v35, %v3211_v38 }
  0xa0   :  { %v3341_v18 = vmul.f32 %v3220_v41, %v3334_v16  ;;  %v3345_v19 = vmul.f32 %v3225_v42, %v3334_v16  ;;  %v3349_v20 = vmul.f32 %v3220_v41, %v3337_v17  ;;  %v3353_v21 = vmul.f32 %v3225_v42, %v3337_v17 }
  0xa1   :  { %v129_v22 = vpop.permute.xlu1 %128  ;;  %v124_v23 = vpop.permute.xlu0 %123 }
  0xa2   :  { %6135 = vst [vmem:[#allocation7_spill] sm:$0xff] %v3341_v18  ;;  %6136 = vst [vmem:[#allocation8_spill] sm:$0xff] %v3345_v19  ;;  %v3356_v24 = vsub.f32 %v129_v22, %v3211_v38  ;;  %v3359_v25 = vsub.f32 %v124_v23, %v3211_v38 }
  0xa3   :  { %6137 = vst [vmem:[#allocation9_spill] sm:$0xff] %v3349_v20  ;;  %6138 = vst [vmem:[#allocation10_spill] sm:$0xff] %v3353_v21  ;;  %v663_v21 = vsub.s32 5, %v3187_v29 }
  0xa4   :  { %v3363_v26 = vmul.f32 %v3220_v41, %v3356_v24  ;;  %v3367_v27 = vmul.f32 %v3225_v42, %v3356_v24  ;;  %v3371_v39 = vmul.f32 %v3220_v41, %v3359_v25  ;;  %v3375_v46 = vmul.f32 %v3225_v42, %v3359_v25 }
  0xa5   :  { %v139_v47 = vpop.permute.xlu1 %138  ;;  %v134_v54 = vpop.permute.xlu0 %133 }
  0xa6   :  { %6139 = vst [vmem:[#allocation11_spill] sm:$0xff] %v3363_v26  ;;  %6140 = vst [vmem:[#allocation12_spill] sm:$0xff] %v3367_v27  ;;  %v3378_v55 = vsub.f32 %v139_v47, %v3211_v38  ;;  %v3381_v62 = vsub.f32 %v134_v54, %v3211_v38 }
  0xa7   :  { %6141 = vst [vmem:[#allocation13_spill] sm:$0xff] %v3371_v39  ;;  %6142 = vst [vmem:[#allocation14_spill] sm:$0xff] %v3375_v46  ;;  %v426_v46 = vsub.s32 2, %v3187_v29  ;;  %v6158_v39 = vsub.s32 6, %v3187_v29 }
  0xa8   :  { %v3385_v63 = vmul.f32 %v3220_v41, %v3378_v55  ;;  %v3389_v6 = vmul.f32 %v3225_v42, %v3378_v55  ;;  %v3393_v7 = vmul.f32 %v3220_v41, %v3381_v62  ;;  %v3397_v14 = vmul.f32 %v3225_v42, %v3381_v62 }
  0xa9   :  { %v149_v15 = vpop.permute.xlu1 %148  ;;  %v144_v22 = vpop.permute.xlu0 %143 }
  0xaa   :  { %6143 = vst [vmem:[#allocation15_spill] sm:$0xff] %v3385_v63  ;;  %6144 = vst [vmem:[#allocation16_spill] sm:$0xff] %v3389_v6  ;;  %v3400_v23 = vsub.f32 %v149_v15, %v3211_v38  ;;  %v3403_v47 = vsub.f32 %v144_v22, %v3211_v38 }
  0xab   :  { %6145 = vst [vmem:[#allocation17_spill] sm:$0xff] %v3393_v7  ;;  %6146 = vst [vmem:[#allocation18_spill] sm:$0xff] %v3397_v14  ;;  %v609_v14 = vsub.s32 4, %v3187_v29 }
  0xac   :  { %v3407_v54 = vmul.f32 %v3220_v41, %v3400_v23  ;;  %v3411_v28 = vmul.f32 %v3225_v42, %v3400_v23  ;;  %v3415_v37 = vmul.f32 %v3220_v41, %v3403_v47  ;;  %v3419_v36 = vmul.f32 %v3225_v42, %v3403_v47 }
  0xad   :  { %v159_v15 = vpop.permute.xlu1 %158  ;;  %v154_v6 = vpop.permute.xlu0 %153 }
  0xae   :  { %6147 = vst [vmem:[#allocation19_spill] sm:$0xff] %v3407_v54  ;;  %6148 = vst [vmem:[#allocation20_spill] sm:$0xff] %v3411_v28  ;;  %v3422_v22 = vsub.f32 %v159_v15, %v3211_v38  ;;  %v3425_v63 = vsub.f32 %v154_v6, %v3211_v38  ;;  %v297_v6 = vsub.s32 1, %v3187_v29 }
  0xaf   :  { %6149 = vst [vmem:[#allocation21_spill] sm:$0xff] %v3415_v37  ;;  %6150 = vst [vmem:[#allocation22_spill] sm:$0xff] %v3419_v36 }
  0xb0   :  { %v3429_v54 = vmul.f32 %v3220_v41, %v3422_v22  ;;  %v3433_v28 = vmul.f32 %v3225_v42, %v3422_v22  ;;  %v3437_v37 = vmul.f32 %v3220_v41, %v3425_v63  ;;  %v3441_v36 = vmul.f32 %v3225_v42, %v3425_v63 }
  0xb1   :  { %v164_v15 = vpop.permute.xlu0 %163  ;;  %v3481_v20 = vrot.slane %v3200_v33, %v297_v6 }
  0xb2   :  { %6151 = vst [vmem:[#allocation23_spill] sm:$0xff] %v3429_v54  ;;  %6152 = vst [vmem:[#allocation24_spill] sm:$0xff] %v3433_v28  ;;  %v39_v54 = vld [vmem:[%s6056_s1 + $0x8] sm:$0xff]  ;;  %v40_v28 = vld [vmem:[%s6056_s1 + $0x10] sm:$0x7]  ;;  %v3452_v7 = vsub.f32 %v164_v15, %v3211_v38  ;;  %v3455_v27 = vpop.permute.xlu1 %196 }
  0xb3   :  { %6153 = vst [vmem:[#allocation25_spill] sm:$0xff] %v3437_v37  ;;  %6154 = vst [vmem:[#allocation26_spill] sm:$0xff] %v3441_v36  ;;  %v746_v37 = vsub.s32 7, %v3187_v29  ;;  %v6156_v36 = vsub.s32 3, %v3187_v29  ;;  %v3464_v19 = vrot.slane %v39_v54, %v6158_v39  ;;  %v3484_v39 = vrot.slane %v3200_v33, %v609_v14 }
  0xb4   :  { %6155 = vst [vmem:[#allocation27_spill] sm:$0xff] %v3452_v7  ;;  %v3468_v18 = vmul.f32 %v3220_v41, %v3452_v7  ;;  %v3472_v15 = vmul.f32 %v3225_v42, %v3452_v7  ;;  %v3497_v11 = vrot.slane %v39_v54, %v609_v14  ;;  %v3503_v7 = vrot.slane %v40_v28, %v297_v6 }
  0xb5   :  { %v3459_v26 = vrot.slane %v39_v54, %v6156_v36  ;;  %6159 = vst [vmem:[#allocation29_spill] sm:$0xff] %v3464_v19  ;;  %v172_v36 = vsub.f32 %v3189_v30, %v3211_v38  ;;  %v170_v19 = vsub.f32 %v3191_v31, %v3211_v38  ;;  %v3495_v30 = vrot.slane %v39_v54, %v297_v6 }
  0xb6   :  { %6160 = vst [vmem:[#allocation30_spill] sm:$0xff] %v3468_v18  ;;  %6161 = vst [vmem:[#allocation31_spill] sm:$0xff] %v3472_v15  ;;  %v3489_v18 = vrot.slane %v3200_v33, %v746_v37  ;;  %v3491_v15 = vpop.permute.xlu1 %204  ;;  %v3493_v29 = vpop.permute.xlu0 %200  ;;  %v3501_v10 = vrot.slane %v39_v54, %v746_v37  ;;  %v3506_v31 = vrot.slane %v3200_v33, %v426_v46 }
  0xb7   :  { %6157 = vst [vmem:[#allocation28_spill] sm:$0xff] %v3459_v26  ;;  %v3478_v26 = vrot.slane %v40_v28, %v3194_v32  ;;  %6163 = vst [vmem:[#allocation33_spill] sm:$0xff] %v3491_v15  ;;  %v3511_v15 = vrot.slane %v3200_v33, %v663_v21  ;;  %v3516_v14 = vrot.slane %v39_v54, %v426_v46 }
  0xb8   :  { %6164 = vst [vmem:[#allocation34_spill] sm:$0xff] %v3495_v30  ;;  %6165 = vst [vmem:[#allocation35_spill] sm:$0xff] %v3497_v11  ;;  %v3514_v30 = vrot.slane %v39_v54, %v3194_v32  ;;  %v3518_v11 = vmul.f32 %v172_v36, %v172_v36  ;;  %v3522_v37 = vrot.slane %v39_v54, %v663_v21 }
  0xb9   :  { %6162 = vst [vmem:[#allocation32_spill] sm:$0xff] %v3478_v26  ;;  %v173_v26 = vsub.f32 %v3203_v34, %v3211_v38  ;;  %6166 = vst [vmem:[#allocation36_spill] sm:$0xff] %v3501_v10  ;;  %v174_v34 = vsub.f32 %v3215_v40, %v3211_v38  ;;  %v3524_v6 = vrot.slane %v40_v28, %v426_v46 }
  0xba   :  { %6167 = vst [vmem:[#allocation37_spill] sm:$0xff] %v3503_v7  ;;  %6168 = vst [vmem:[#allocation38_spill] sm:$0xff] %v3511_v15  ;;  %v3527_v7 = vmul.f32 %v3220_v41, %v172_v36  ;;  %v3530_v33 = vmul.f32 %v3225_v42, %v172_v36  ;;  %v3532_v35 = vmul.f32 %v170_v19, %v170_v19  ;;  %v3537_v10 = vpop.permute.xlu1 %208 }
  0xbb   :  { %6169 = vst [vmem:[#allocation39_spill] sm:$0xff] %v3514_v30  ;;  %6170 = vst [vmem:[#allocation40_spill] sm:$0xff] %v3516_v14  ;;  %v3535_v32 = vmul.f32 %v3220_v41, %v170_v19  ;;  %v3539_v14 = vpop.permute.xlu0 %212  ;;  %v3542_v38 = vmul.f32 %v3225_v42, %v170_v19  ;;  %v3544_v28 = vmul.f32 %v173_v26, %v173_v26 }
  0xbc   :  { %6171 = vst [vmem:[#allocation41_spill] sm:$0xff] %v3522_v37  ;;  %6172 = vst [vmem:[#allocation42_spill] sm:$0xff] %v3524_v6  ;;  %v3547_v40 = vmul.f32 %v3220_v41, %v173_v26  ;;  %v3550_v21 = vmul.f32 %v3225_v42, %v173_v26  ;;  %v3552_v46 = vmul.f32 %v171_v13, %v171_v13 }
  0xbd   :  { %6173 = vst [vmem:[#allocation43_spill] sm:$0xff] %v3544_v28  ;;  %v3555_v54 = vmul.f32 %v3220_v41, %v171_v13  ;;  %v3558_v36 = vmul.f32 %v3225_v42, %v171_v13  ;;  %v458_v19 = vmul.f32 %v3228_v43, %v3228_v43  ;;  %v3562_v6 = vmul.f32 %v174_v34, %v174_v34 }
  0xbe   :  { %6174 = vst [vmem:[#allocation44_spill] sm:$0xff] %v3547_v40  ;;  %6175 = vst [vmem:[#allocation45_spill] sm:$0xff] %v3550_v21  ;;  %v3565_v37 = vmul.f32 %v3220_v41, %v174_v34  ;;  %v3568_v40 = vmul.f32 %v3225_v42, %v174_v34  ;;  %v460_v26 = vmul.f32 %v3241_v48, %v3241_v48  ;;  %v217_v41 = vpop.permute.xlu1 %216 }
  0xbf   :  { %6176 = vst [vmem:[#allocation46_spill] sm:$0xff] %v3552_v46  ;;  %6177 = vst [vmem:[#allocation47_spill] sm:$0xff] %v3555_v54  ;;  %v459_v21 = vmul.f32 %v3244_v49, %v3244_v49  ;;  %v462_v13 = vmul.f32 %v3265_v56, %v3265_v56  ;;  %v461_v43 = vmul.f32 %v3268_v57, %v3268_v57 }
  0xc0   :  { %6178 = vst [vmem:[#allocation48_spill] sm:$0xff] %v3558_v36  ;;  %6179 = vst [vmem:[#allocation49_spill] sm:$0xff] %v3562_v6  ;;  %v3580_v6 = vmul.f32 %v3289_v0, %v3289_v0  ;;  %v463_v42 = vmul.f32 %v3292_v1, %v3292_v1  ;;  %v3586_v48 = vmul.f32 %v3312_v8, %v3312_v8 }
  0xc1   :  { %6180 = vst [vmem:[#allocation50_spill] sm:$0xff] %v3565_v37  ;;  %6181 = vst [vmem:[#allocation51_spill] sm:$0xff] %v3568_v40  ;;  %v221_v37 = vpop.permute.xlu0 %220  ;;  %v3590_v49 = vmul.f32 %v3315_v9, %v3315_v9  ;;  %v304_v56 = vsub.f32 %v217_v41, %v3481_v20  ;;  %v3595_v57 = vmul.f32 %v3334_v16, %v3334_v16 }
  0xc2   :  { %v3599_v0 = vmul.f32 %v3337_v17, %v3337_v17  ;;  %v3603_v1 = vmul.f32 %v3356_v24, %v3356_v24  ;;  %v305_v8 = vsub.f32 %v221_v37, %v3481_v20  ;;  %v3608_v9 = vmul.f32 %v3359_v25, %v3359_v25  ;;  %v225_v36 = vpop.permute.xlu1 %224 }
  0xc3   :  { %v483_v34 = vmul.f32 %v304_v56, %v304_v56  ;;  %v616_v41 = vmul.f32 %v3484_v39, %v304_v56  ;;  %v753_v16 = vmul.f32 %v3489_v18, %v304_v56  ;;  %v3614_v40 = vmul.f32 %v3378_v55, %v3378_v55 }
  0xc4   :  { %v484_v17 = vmul.f32 %v305_v8, %v305_v8  ;;  %v617_v28 = vmul.f32 %v3484_v39, %v305_v8  ;;  %v754_v24 = vmul.f32 %v3489_v18, %v305_v8  ;;  %v306_v56 = vsub.f32 %v225_v36, %v3481_v20 }
  0xc5   :  { %v229_v37 = vpop.permute.xlu0 %228  ;;  %v3618_v30 = vadd.f32 %v483_v34, %v458_v19  ;;  %v3621_v25 = vadd.f32 %v616_v41, %v3232_v44  ;;  %v3624_v15 = vadd.f32 %v753_v16, %v3236_v45  ;;  %v3638_v19 = vmul.f32 %v3381_v62, %v3381_v62 }
  0xc6   :  { %v3627_v54 = vadd.f32 %v484_v17, %v459_v21  ;;  %v3630_v55 = vadd.f32 %v617_v28, %v3257_v52  ;;  %v3633_v46 = vadd.f32 %v754_v24, %v3261_v53  ;;  %v307_v8 = vsub.f32 %v229_v37, %v3481_v20  ;;  %v233_v36 = vpop.permute.xlu1 %232 }
  0xc7   :  { %v485_v44 = vmul.f32 %v306_v56, %v306_v56  ;;  %v618_v45 = vmul.f32 %v3484_v39, %v306_v56  ;;  %v755_v34 = vmul.f32 %v3489_v18, %v306_v56  ;;  %v3644_v21 = vmul.f32 %v3400_v23, %v3400_v23 }
  0xc8   :  { %v486_v52 = vmul.f32 %v307_v8, %v307_v8  ;;  %v619_v28 = vmul.f32 %v3484_v39, %v307_v8  ;;  %v756_v53 = vmul.f32 %v3489_v18, %v307_v8  ;;  %v308_v24 = vsub.f32 %v233_v36, %v3481_v20 }
  0xc9   :  { %v237_v41 = vpop.permute.xlu0 %236  ;;  %v3648_v16 = vadd.f32 %v485_v44, %v460_v26  ;;  %v3651_v62 = vadd.f32 %v618_v45, %v3248_v50  ;;  %v3654_v17 = vadd.f32 %v755_v34, %v3252_v51  ;;  %v3668_v26 = vmul.f32 %v3403_v47, %v3403_v47 }
  0xca   :  { %v3657_v37 = vadd.f32 %v486_v52, %v461_v43  ;;  %v3660_v23 = vadd.f32 %v619_v28, %v3281_v60  ;;  %v3663_v56 = vadd.f32 %v756_v53, %v3285_v61  ;;  %v309_v8 = vsub.f32 %v237_v41, %v3481_v20  ;;  %v241_v34 = vpop.permute.xlu1 %240 }
  0xcb   :  { %v487_v50 = vmul.f32 %v308_v24, %v308_v24  ;;  %v620_v51 = vmul.f32 %v3484_v39, %v308_v24  ;;  %v757_v44 = vmul.f32 %v3489_v18, %v308_v24  ;;  %v3674_v43 = vmul.f32 %v3422_v22, %v3422_v22 }
  0xcc   :  { %v488_v60 = vmul.f32 %v309_v8, %v309_v8  ;;  %v621_v45 = vmul.f32 %v3484_v39, %v309_v8  ;;  %v758_v61 = vmul.f32 %v3489_v18, %v309_v8  ;;  %v310_v36 = vsub.f32 %v241_v34, %v3481_v20 }
  0xcd   :  { %v245_v52 = vpop.permute.xlu0 %244  ;;  %v3678_v28 = vadd.f32 %v487_v50, %v462_v13  ;;  %v3681_v47 = vadd.f32 %v620_v51, %v3272_v58  ;;  %v3684_v53 = vadd.f32 %v757_v44, %v3276_v59  ;;  %v3698_v13 = vmul.f32 %v3425_v63, %v3425_v63 }
  0xce   :  { %v3687_v41 = vadd.f32 %v488_v60, %v463_v42  ;;  %v3690_v22 = vadd.f32 %v621_v45, %v3305_v4  ;;  %v3693_v24 = vadd.f32 %v758_v61, %v3309_v5  ;;  %v311_v8 = vsub.f32 %v245_v52, %v3481_v20  ;;  %v249_v44 = vpop.permute.xlu1 %248 }
  0xcf   :  { %v489_v58 = vmul.f32 %v310_v36, %v310_v36  ;;  %v622_v59 = vmul.f32 %v3484_v39, %v310_v36  ;;  %v759_v50 = vmul.f32 %v3489_v18, %v310_v36  ;;  %v299_v42 = vsub.f32 %v3455_v27, %v3481_v20  ;;  %v6187_v36 = vld [vmem:[#allocation6_spill] sm:$0xff] }
  0xd0   :  { %v490_v51 = vmul.f32 %v311_v8, %v311_v8  ;;  %v623_v4 = vmul.f32 %v3484_v39, %v311_v8  ;;  %v760_v5 = vmul.f32 %v3489_v18, %v311_v8  ;;  %v312_v34 = vsub.f32 %v249_v44, %v3481_v20 }
  0xd1   :  { %v253_v60 = vpop.permute.xlu0 %252  ;;  %v3707_v45 = vadd.f32 %v489_v58, %v3580_v6  ;;  %v3710_v63 = vadd.f32 %v622_v59, %v3296_v2  ;;  %v3713_v61 = vadd.f32 %v759_v50, %v3300_v3  ;;  %v6189_v58 = vld [vmem:[#allocation27_spill] sm:$0xff]  ;;  %v3732_v44 = vmul.f32 %v299_v42, %v299_v42 }
  0xd2   :  { %v3717_v27 = vadd.f32 %v490_v51, %v3590_v49  ;;  %v3720_v52 = vadd.f32 %v623_v4, %v3327_v12  ;;  %v3723_v8 = vadd.f32 %v760_v5, %v6187_v36  ;;  %v313_v6 = vsub.f32 %v253_v60, %v3481_v20  ;;  %v257_v4 = vpop.permute.xlu1 %256  ;;  %v6191_v36 = vld [vmem:[#allocation4_spill] sm:$0xff] }
  0xd3   :  { %6182 = vst [vmem:[#allocation52_spill] sm:$0xff] %v3707_v45  ;;  %6183 = vst [vmem:[#allocation53_spill] sm:$0xff] %v3710_v63  ;;  %v3728_v2 = vmul.f32 %v6189_v58, %v6189_v58  ;;  %v491_v59 = vmul.f32 %v312_v34, %v312_v34  ;;  %v624_v3 = vmul.f32 %v3484_v39, %v312_v34 }
  0xd4   :  { %6184 = vst [vmem:[#allocation54_spill] sm:$0xff] %v3713_v61  ;;  %6185 = vst [vmem:[#allocation55_spill] sm:$0xff] %v3717_v27  ;;  %v761_v50 = vmul.f32 %v3489_v18, %v312_v34  ;;  %v492_v49 = vmul.f32 %v313_v6, %v313_v6  ;;  %v625_v12 = vmul.f32 %v3484_v39, %v313_v6  ;;  %v6193_v61 = vld [vmem:[#allocation5_spill] sm:$0xff] }
  0xd5   :  { %6186 = vst [vmem:[#allocation56_spill] sm:$0xff] %v3720_v52  ;;  %6188 = vst [vmem:[#allocation6_spill] sm:$0xff] %v3723_v8  ;;  %v762_v51 = vmul.f32 %v3489_v18, %v313_v6  ;;  %v261_v5 = vpop.permute.xlu0 %260  ;;  %v3737_v60 = vadd.f32 %v491_v59, %v3586_v48  ;;  %v3740_v58 = vadd.f32 %v624_v3, %v6191_v36  ;;  %v6195_v8 = vld [vmem:[#allocation9_spill] sm:$0xff]  ;;  %v6197_v6 = vld [vmem:[#allocation10_spill] sm:$0xff] }
  0xd6   :  { %v3743_v63 = vadd.f32 %v761_v50, %v6193_v61  ;;  %v314_v34 = vsub.f32 %v257_v4, %v3481_v20  ;;  %v3747_v45 = vadd.f32 %v492_v49, %v3599_v0  ;;  %v3750_v52 = vadd.f32 %v625_v12, %v6195_v8  ;;  %v265_v12 = vpop.permute.xlu1 %264  ;;  %v6200_v36 = vld [vmem:[#allocation7_spill] sm:$0xff] }
  0xd7   :  { %6190 = vst [vmem:[#allocation27_spill] sm:$0xff] %v3737_v60  ;;  %6192 = vst [vmem:[#allocation4_spill] sm:$0xff] %v3740_v58  ;;  %v3753_v27 = vadd.f32 %v762_v51, %v6197_v6  ;;  %v315_v48 = vsub.f32 %v261_v5, %v3481_v20  ;;  %v3757_v59 = vmul.f32 %v3484_v39, %v299_v42  ;;  %v6204_v60 = vld [vmem:[#allocation13_spill] sm:$0xff] }
  0xd8   :  { %6194 = vst [vmem:[#allocation5_spill] sm:$0xff] %v3743_v63  ;;  %6196 = vst [vmem:[#allocation9_spill] sm:$0xff] %v3750_v52  ;;  %v493_v3 = vmul.f32 %v314_v34, %v314_v34  ;;  %v626_v61 = vmul.f32 %v3484_v39, %v314_v34  ;;  %v763_v50 = vmul.f32 %v3489_v18, %v314_v34  ;;  %v6202_v63 = vld [vmem:[#allocation8_spill] sm:$0xff] }
  0xd9   :  { %6198 = vst [vmem:[#allocation10_spill] sm:$0xff] %v3753_v27  ;;  %v3762_v4 = vmul.f32 %v3489_v18, %v299_v42  ;;  %v494_v0 = vmul.f32 %v315_v48, %v315_v48  ;;  %v627_v8 = vmul.f32 %v3484_v39, %v315_v48  ;;  %v764_v49 = vmul.f32 %v3489_v18, %v315_v48  ;;  %v269_v51 = vpop.permute.xlu0 %268  ;;  %v6206_v48 = vld [vmem:[#allocation14_spill] sm:$0xff] }
  0xda   :  { %v3767_v5 = vadd.f32 %v493_v3, %v3595_v57  ;;  %v3770_v6 = vadd.f32 %v626_v61, %v6200_v36  ;;  %v3773_v58 = vadd.f32 %v763_v50, %v6202_v63  ;;  %v316_v34 = vsub.f32 %v265_v12, %v3481_v20  ;;  %v6208_v3 = vld [vmem:[#allocation33_spill] sm:$0xff] }
  0xdb   :  { %v3777_v42 = vadd.f32 %v494_v0, %v3608_v9  ;;  %v3780_v27 = vadd.f32 %v627_v8, %v6204_v60  ;;  %v3783_v52 = vadd.f32 %v764_v49, %v6206_v48  ;;  %v317_v57 = vsub.f32 %v269_v51, %v3481_v20  ;;  %v273_v49 = vpop.permute.xlu1 %272  ;;  %v6210_v48 = vld [vmem:[#allocation11_spill] sm:$0xff] }
  0xdc   :  { %6199 = vst [vmem:[#allocation57_spill] sm:$0xff] %v3767_v5  ;;  %6201 = vst [vmem:[#allocation7_spill] sm:$0xff] %v3770_v6  ;;  %v301_v61 = vsub.f32 %v6208_v3, %v3481_v20  ;;  %v495_v36 = vmul.f32 %v316_v34, %v316_v34  ;;  %v628_v63 = vmul.f32 %v3484_v39, %v316_v34  ;;  %v6215_v5 = vld [vmem:[#allocation17_spill] sm:$0xff] }
  0xdd   :  { %6203 = vst [vmem:[#allocation8_spill] sm:$0xff] %v3773_v58  ;;  %6205 = vst [vmem:[#allocation13_spill] sm:$0xff] %v3780_v27  ;;  %v765_v50 = vmul.f32 %v3489_v18, %v316_v34  ;;  %v3792_v9 = vsub.f32 %v3493_v29, %v3481_v20  ;;  %v496_v0 = vmul.f32 %v317_v57, %v317_v57  ;;  %v277_v12 = vpop.permute.xlu0 %276  ;;  %v6212_v58 = vld [vmem:[#allocation12_spill] sm:$0xff] }
  0xde   :  { %6207 = vst [vmem:[#allocation14_spill] sm:$0xff] %v3783_v52  ;;  %v629_v60 = vmul.f32 %v3484_v39, %v317_v57  ;;  %v766_v8 = vmul.f32 %v3489_v18, %v317_v57  ;;  %v3797_v51 = vadd.f32 %v495_v36, %v3603_v1  ;;  %v3800_v3 = vadd.f32 %v628_v63, %v6210_v48  ;;  %v6217_v57 = vld [vmem:[#allocation18_spill] sm:$0xff]  ;;  %v6220_v48 = vld [vmem:[#allocation15_spill] sm:$0xff] }
  0xdf   :  { %v3803_v6 = vadd.f32 %v765_v50, %v6212_v58  ;;  %v318_v34 = vsub.f32 %v273_v49, %v3481_v20  ;;  %v3807_v29 = vadd.f32 %v496_v0, %v3638_v19  ;;  %v319_v1 = vsub.f32 %v277_v12, %v3481_v20 }
  0xe0   :  { %6209 = vst [vmem:[#allocation33_spill] sm:$0xff] %v3797_v51  ;;  %6211 = vst [vmem:[#allocation11_spill] sm:$0xff] %v3800_v3  ;;  %v3810_v52 = vadd.f32 %v629_v60, %v6215_v5  ;;  %v3813_v27 = vadd.f32 %v766_v8, %v6217_v57  ;;  %v480_v36 = vmul.f32 %v301_v61, %v301_v61  ;;  %v281_v5 = vpop.permute.xlu1 %280  ;;  %v6222_v57 = vld [vmem:[#allocation16_spill] sm:$0xff] }
  0xe1   :  { %6213 = vst [vmem:[#allocation12_spill] sm:$0xff] %v3803_v6  ;;  %6214 = vst [vmem:[#allocation58_spill] sm:$0xff] %v3807_v29  ;;  %v497_v51 = vmul.f32 %v318_v34, %v318_v34  ;;  %v630_v63 = vmul.f32 %v3484_v39, %v318_v34  ;;  %v767_v58 = vmul.f32 %v3489_v18, %v318_v34  ;;  %v285_v60 = vpop.permute.xlu0 %284 }
  0xe2   :  { %6216 = vst [vmem:[#allocation17_spill] sm:$0xff] %v3810_v52  ;;  %6218 = vst [vmem:[#allocation18_spill] sm:$0xff] %v3813_v27  ;;  %v613_v50 = vmul.f32 %v3484_v39, %v301_v61  ;;  %v498_v49 = vmul.f32 %v319_v1, %v319_v1  ;;  %v631_v19 = vmul.f32 %v3484_v39, %v319_v1  ;;  %v6224_v27 = vld [vmem:[#allocation21_spill] sm:$0xff] }
  0xe3   :  { %v768_v0 = vmul.f32 %v3489_v18, %v319_v1  ;;  %v3822_v8 = vadd.f32 %v497_v51, %v3614_v40  ;;  %v3825_v12 = vadd.f32 %v630_v63, %v6220_v48  ;;  %v3828_v6 = vadd.f32 %v767_v58, %v6222_v57  ;;  %v6226_v1 = vld [vmem:[#allocation22_spill] sm:$0xff] }
  0xe4   :  { %v320_v34 = vsub.f32 %v281_v5, %v3481_v20  ;;  %v3832_v3 = vadd.f32 %v498_v49, %v3668_v26  ;;  %v3835_v52 = vadd.f32 %v631_v19, %v6224_v27  ;;  %v321_v40 = vsub.f32 %v285_v60, %v3481_v20  ;;  %v289_v19 = vpop.permute.xlu1 %288  ;;  %v6229_v60 = vld [vmem:[#allocation19_spill] sm:$0xff] }
  0xe5   :  { %6219 = vst [vmem:[#allocation59_spill] sm:$0xff] %v3822_v8  ;;  %6221 = vst [vmem:[#allocation15_spill] sm:$0xff] %v3825_v12  ;;  %v3838_v29 = vadd.f32 %v768_v0, %v6226_v1  ;;  %v750_v51 = vmul.f32 %v3489_v18, %v301_v61  ;;  %v479_v5 = vmul.f32 %v3792_v9, %v3792_v9  ;;  %v293_v0 = vpop.permute.xlu0 %292  ;;  %v6231_v1 = vld [vmem:[#allocation20_spill] sm:$0xff]  ;;  %v6234_v8 = vld [vmem:[#allocation25_spill] sm:$0xff] }
  0xe6   :  { %6223 = vst [vmem:[#allocation16_spill] sm:$0xff] %v3828_v6  ;;  %6225 = vst [vmem:[#allocation21_spill] sm:$0xff] %v3835_v52  ;;  %v499_v63 = vmul.f32 %v320_v34, %v320_v34  ;;  %v632_v48 = vmul.f32 %v3484_v39, %v320_v34  ;;  %v769_v58 = vmul.f32 %v3489_v18, %v320_v34 }
  0xe7   :  { %6227 = vst [vmem:[#allocation22_spill] sm:$0xff] %v3838_v29  ;;  %v500_v26 = vmul.f32 %v321_v40, %v321_v40  ;;  %v633_v49 = vmul.f32 %v3484_v39, %v321_v40  ;;  %v770_v27 = vmul.f32 %v3489_v18, %v321_v40  ;;  %v322_v34 = vsub.f32 %v289_v19, %v3481_v20  ;;  %v6236_v40 = vld [vmem:[#allocation26_spill] sm:$0xff] }
  0xe8   :  { %v3849_v57 = vadd.f32 %v499_v63, %v3644_v21  ;;  %v3852_v61 = vadd.f32 %v632_v48, %v6229_v60  ;;  %v3855_v6 = vadd.f32 %v769_v58, %v6231_v1  ;;  %v323_v21 = vsub.f32 %v293_v0, %v3481_v20  ;;  %v6239_v0 = vld [vmem:[#allocation23_spill] sm:$0xff] }
  0xe9   :  { %v3859_v12 = vadd.f32 %v500_v26, %v3698_v13  ;;  %v3862_v29 = vadd.f32 %v633_v49, %v6234_v8  ;;  %v3865_v52 = vadd.f32 %v770_v27, %v6236_v40  ;;  %v612_v63 = vmul.f32 %v3484_v39, %v3792_v9  ;;  %v6241_v40 = vld [vmem:[#allocation24_spill] sm:$0xff] }
  0xea   :  { %6228 = vst [vmem:[#allocation60_spill] sm:$0xff] %v3849_v57  ;;  %6230 = vst [vmem:[#allocation19_spill] sm:$0xff] %v3852_v61  ;;  %v501_v48 = vmul.f32 %v322_v34, %v322_v34  ;;  %v634_v58 = vmul.f32 %v3484_v39, %v322_v34  ;;  %v771_v60 = vmul.f32 %v3489_v18, %v322_v34  ;;  %v326_v34 = vpop.permute.xlu1 %325  ;;  %v330_v61 = vpop.permute.xlu0 %329  ;;  %v6244_v57 = vld [vmem:[#allocation30_spill] sm:$0xff] }
  0xeb   :  { %6232 = vst [vmem:[#allocation20_spill] sm:$0xff] %v3855_v6  ;;  %6233 = vst [vmem:[#allocation61_spill] sm:$0xff] %v3859_v12  ;;  %v302_v13 = vsub.f32 %v3537_v10, %v3481_v20  ;;  %v502_v26 = vmul.f32 %v323_v21, %v323_v21  ;;  %v635_v8 = vmul.f32 %v3484_v39, %v323_v21 }
  0xec   :  { %6235 = vst [vmem:[#allocation25_spill] sm:$0xff] %v3862_v29  ;;  %6237 = vst [vmem:[#allocation26_spill] sm:$0xff] %v3865_v52  ;;  %v772_v49 = vmul.f32 %v3489_v18, %v323_v21  ;;  %v303_v27 = vsub.f32 %v3539_v14, %v3481_v20  ;;  %v3879_v19 = vadd.f32 %v501_v48, %v3674_v43  ;;  %v6246_v21 = vld [vmem:[#allocation31_spill] sm:$0xff] }
  0xed   :  { %v3882_v1 = vadd.f32 %v634_v58, %v6239_v0  ;;  %v3885_v6 = vadd.f32 %v771_v60, %v6241_v40  ;;  %v3888_v10 = vadd.f32 %v502_v26, %v3728_v2  ;;  %v3891_v52 = vadd.f32 %v635_v8, %v6244_v57  ;;  %v6250_v40 = vld [vmem:[#allocation38_spill] sm:$0xff] }
  0xee   :  { %6238 = vst [vmem:[#allocation62_spill] sm:$0xff] %v3879_v19  ;;  %v3894_v29 = vadd.f32 %v772_v49, %v6246_v21  ;;  %v428_v20 = vsub.f32 %v326_v34, %v3506_v31  ;;  %v503_v14 = vadd.f32 %v3732_v44, %v3532_v35  ;;  %v636_v43 = vadd.f32 %v3757_v59, %v3535_v32  ;;  %v6248_v44 = vld [vmem:[#allocation46_spill] sm:$0xff]  ;;  %v334_v59 = vpop.permute.xlu1 %333  ;;  %v6252_v21 = vld [vmem:[#allocation48_spill] sm:$0xff] }
  0xef   :  { %6240 = vst [vmem:[#allocation23_spill] sm:$0xff] %v3882_v1  ;;  %6242 = vst [vmem:[#allocation24_spill] sm:$0xff] %v3885_v6  ;;  %v773_v48 = vadd.f32 %v3762_v4, %v3542_v38  ;;  %v749_v2 = vmul.f32 %v3489_v18, %v3792_v9  ;;  %v505_v57 = vadd.f32 %v480_v36, %v3518_v11  ;;  %v342_v38 = vpop.permute.xlu0 %341  ;;  %v6249_v4 = vld [vmem:[#allocation47_spill] sm:$0xff] }
  0xf0   :  { %6243 = vst [vmem:[#allocation63_spill] sm:$0xff] %v3888_v10  ;;  %6245 = vst [vmem:[#allocation30_spill] sm:$0xff] %v3891_v52  ;;  %v481_v58 = vmul.f32 %v302_v13, %v302_v13  ;;  %v614_v60 = vmul.f32 %v3484_v39, %v302_v13  ;;  %v429_v26 = vsub.f32 %v330_v61, %v3506_v31  ;;  %v6251_v36 = vld [vmem:[#allocation39_spill] sm:$0xff]  ;;  %v6256_v52 = vld [vmem:[#allocation49_spill] sm:$0xff] }
  0xf1   :  { %6247 = vst [vmem:[#allocation31_spill] sm:$0xff] %v3894_v29  ;;  %v638_v8 = vadd.f32 %v613_v50, %v3527_v7  ;;  %v775_v35 = vadd.f32 %v750_v51, %v3530_v33  ;;  %v504_v49 = vadd.f32 %v479_v5, %v6248_v44  ;;  %v751_v32 = vmul.f32 %v3489_v18, %v302_v13  ;;  %v6253_v50 = vld [vmem:[#allocation43_spill] sm:$0xff]  ;;  %v6254_v5 = vld [vmem:[#allocation44_spill] sm:$0xff] }
  0xf2   :  { %v637_v0 = vadd.f32 %v612_v63, %v6249_v4  ;;  %v482_v9 = vmul.f32 %v303_v27, %v303_v27  ;;  %v665_v11 = vmul.f32 %v6250_v40, %v428_v20  ;;  %v802_v34 = vmul.f32 %v6251_v36, %v428_v20  ;;  %v6255_v63 = vld [vmem:[#allocation45_spill] sm:$0xff] }
  0xf3   :  { %v774_v29 = vadd.f32 %v749_v2, %v6252_v21  ;;  %v615_v61 = vmul.f32 %v3484_v39, %v303_v27  ;;  %v752_v7 = vmul.f32 %v3489_v18, %v303_v27  ;;  %v430_v33 = vsub.f32 %v334_v59, %v3506_v31  ;;  %v338_v21 = vpop.permute.xlu1 %337  ;;  %v350_v39 = vpop.permute.xlu0 %349 }
  0xf4   :  { %v506_v51 = vadd.f32 %v481_v58, %v6253_v50  ;;  %v639_v13 = vadd.f32 %v614_v60, %v6254_v5  ;;  %v528_v44 = vmul.f32 %v428_v20, %v428_v20  ;;  %v529_v6 = vmul.f32 %v429_v26, %v429_v26  ;;  %v6257_v20 = vld [vmem:[#allocation50_spill] sm:$0xff]  ;;  %v6258_v50 = vld [vmem:[#allocation51_spill] sm:$0xff] }
  0xf5   :  { %v776_v4 = vadd.f32 %v751_v32, %v6255_v63  ;;  %v666_v19 = vmul.f32 %v6250_v40, %v429_v26  ;;  %v803_v1 = vmul.f32 %v6251_v36, %v429_v26  ;;  %v432_v2 = vsub.f32 %v342_v38, %v3506_v31 }
  0xf6   :  { %v507_v18 = vadd.f32 %v482_v9, %v6256_v52  ;;  %v3926_v27 = vadd.f32 %v665_v11, %v636_v43  ;;  %v3928_v59 = vadd.f32 %v802_v34, %v773_v48  ;;  %v431_v58 = vsub.f32 %v338_v21, %v3506_v31 }
  0xf7   :  { %v640_v60 = vadd.f32 %v615_v61, %v6257_v20  ;;  %v777_v32 = vadd.f32 %v752_v7, %v6258_v50  ;;  %v530_v5 = vmul.f32 %v430_v33, %v430_v33  ;;  %v667_v63 = vmul.f32 %v6250_v40, %v430_v33  ;;  %v346_v34 = vpop.permute.xlu1 %345  ;;  %v358_v61 = vpop.permute.xlu0 %357 }
  0xf8   :  { %v3934_v26 = vadd.f32 %v528_v44, %v503_v14  ;;  %v3936_v38 = vadd.f32 %v529_v6, %v504_v49  ;;  %v804_v10 = vmul.f32 %v6251_v36, %v430_v33  ;;  %v434_v52 = vsub.f32 %v350_v39, %v3506_v31  ;;  %v6259_v14 = vld [vmem:[#allocation28_spill] sm:$0xff] }
  0xf9   :  { %v3940_v43 = vadd.f32 %v666_v19, %v637_v0  ;;  %v3942_v48 = vadd.f32 %v803_v1, %v774_v29  ;;  %v532_v9 = vmul.f32 %v432_v2, %v432_v2  ;;  %v669_v11 = vmul.f32 %v6250_v40, %v432_v2  ;;  %v6260_v49 = vld [vmem:[#allocation40_spill] sm:$0xff] }
  0xfa   :  { %v806_v7 = vmul.f32 %v6251_v36, %v432_v2  ;;  %v531_v21 = vmul.f32 %v431_v58, %v431_v58  ;;  %v856_v6 = vmul.f32 %v6259_v14, %v3926_v27  ;;  %v885_v33 = vmul.f32 %v6260_v49, %v3928_v59 }
  0xfb   :  { %v3950_v44 = vadd.f32 %v530_v5, %v505_v57  ;;  %v3952_v19 = vadd.f32 %v667_v63, %v638_v8  ;;  %v668_v29 = vmul.f32 %v6250_v40, %v431_v58  ;;  %v433_v1 = vsub.f32 %v346_v34, %v3506_v31  ;;  %v354_v5 = vpop.permute.xlu1 %353  ;;  %v366_v63 = vpop.permute.xlu0 %365 }
  0xfc   :  { %v3956_v0 = vadd.f32 %v804_v10, %v775_v35  ;;  %v805_v39 = vmul.f32 %v6251_v36, %v431_v58  ;;  %v534_v2 = vmul.f32 %v434_v52, %v434_v52  ;;  %v436_v20 = vsub.f32 %v358_v61, %v3506_v31  ;;  %v6262_v35 = vld [vmem:[#allocation34_spill] sm:$0xff] }
  0xfd   :  { %6261 = vst [vmem:[#allocation46_spill] sm:$0xff] %v3950_v44  ;;  %v3960_v50 = vadd.f32 %v532_v9, %v507_v18  ;;  %v3962_v12 = vadd.f32 %v669_v11, %v640_v60  ;;  %v671_v57 = vmul.f32 %v6250_v40, %v434_v52  ;;  %v808_v8 = vmul.f32 %v6251_v36, %v434_v52 }
  0xfe   :  { %v3966_v44 = vadd.f32 %v806_v7, %v777_v32  ;;  %v3968_v34 = vadd.f32 %v531_v21, %v506_v51  ;;  %v3970_v10 = vsub.f32 %v856_v6, %v885_v33  ;;  %v939_v58 = vmul.f32 %v6262_v35, %v3928_v59 }
  0xff   :  { %v3974_v61 = vadd.f32 %v668_v29, %v639_v13  ;;  %v533_v18 = vmul.f32 %v433_v1, %v433_v1  ;;  %v670_v60 = vmul.f32 %v6250_v40, %v433_v1  ;;  %v435_v9 = vsub.f32 %v354_v5, %v3506_v31  ;;  %v362_v6 = vpop.permute.xlu1 %361  ;;  %v374_v33 = vpop.permute.xlu0 %373 }
 0x100   :  { %v3978_v11 = vadd.f32 %v805_v39, %v776_v4  ;;  %v3981_v52 = vadd.f32 %v534_v2, %v3627_v54  ;;  %v807_v51 = vmul.f32 %v6251_v36, %v433_v1  ;;  %v536_v32 = vmul.f32 %v436_v20, %v436_v20 }
 0x101   :  { %v3985_v7 = vadd.f32 %v671_v57, %v3630_v55  ;;  %v3988_v21 = vadd.f32 %v808_v8, %v3633_v46  ;;  %v438_v13 = vsub.f32 %v366_v63, %v3506_v31  ;;  %v964_v4 = vmul.f32 %v6260_v49, %v3926_v27 }
 0x102   :  { %6263 = vst [vmem:[#allocation47_spill] sm:$0xff] %v3981_v52  ;;  %v673_v29 = vmul.f32 %v6250_v40, %v436_v20  ;;  %v810_v54 = vmul.f32 %v6251_v36, %v436_v20  ;;  %v437_v1 = vsub.f32 %v362_v6, %v3506_v31  ;;  %v1014_v55 = vmul.f32 %v3970_v10, %v3926_v27 }
 0x103   :  { %v3999_v39 = vadd.f32 %v533_v18, %v3618_v30  ;;  %v4002_v46 = vadd.f32 %v670_v60, %v3621_v25  ;;  %v535_v2 = vmul.f32 %v435_v9, %v435_v9  ;;  %v440_v57 = vsub.f32 %v374_v33, %v3506_v31  ;;  %v370_v25 = vpop.permute.xlu1 %369  ;;  %v382_v60 = vpop.permute.xlu0 %381 }
 0x104   :  { %v4006_v8 = vadd.f32 %v807_v51, %v3624_v15  ;;  %v4009_v5 = vadd.f32 %v536_v32, %v3657_v37  ;;  %v672_v20 = vmul.f32 %v6250_v40, %v435_v9  ;;  %v809_v63 = vmul.f32 %v6251_v36, %v435_v9 }
 0x105   :  { %v538_v6 = vmul.f32 %v438_v13, %v438_v13  ;;  %v675_v30 = vmul.f32 %v6250_v40, %v438_v13  ;;  %v812_v18 = vmul.f32 %v6251_v36, %v438_v13  ;;  %v4015_v52 = vsub.f32 %v939_v58, %v964_v4 }
 0x106   :  { %6264 = vst [vmem:[#allocation38_spill] sm:$0xff] %v4009_v5  ;;  %v4018_v33 = vadd.f32 %v673_v29, %v3660_v23  ;;  %v4021_v15 = vadd.f32 %v810_v54, %v3663_v56  ;;  %v537_v37 = vmul.f32 %v437_v1, %v437_v1  ;;  %v674_v51 = vmul.f32 %v6250_v40, %v437_v1 }
 0x107   :  { %v4025_v9 = vadd.f32 %v535_v2, %v3648_v16  ;;  %v811_v32 = vmul.f32 %v6251_v36, %v437_v1  ;;  %v540_v5 = vmul.f32 %v440_v57, %v440_v57  ;;  %v439_v13 = vsub.f32 %v370_v25, %v3506_v31  ;;  %v378_v1 = vpop.permute.xlu1 %377  ;;  %v6278_v25 = vld [vmem:[#allocation56_spill] sm:$0xff] }
 0x108   :  { %6265 = vst [vmem:[#allocation39_spill] sm:$0xff] %v4018_v33  ;;  %6266 = vst [vmem:[#allocation48_spill] sm:$0xff] %v4021_v15  ;;  %v4030_v58 = vadd.f32 %v672_v20, %v3651_v62  ;;  %v4033_v23 = vadd.f32 %v809_v63, %v3654_v17  ;;  %v677_v56 = vmul.f32 %v6250_v40, %v440_v57  ;;  %v390_v63 = vpop.permute.xlu0 %389  ;;  %vm1114_vm0 = vcmp.ge.f32.partialorder %v3970_v10, 0.0 }
 0x109   :  { %6267 = vst [vmem:[#allocation43_spill] sm:$0xff] %v4025_v9  ;;  %v442_v4 = vsub.f32 %v382_v60, %v3506_v31  ;;  %v4038_v29 = vadd.f32 %v538_v6, %v3687_v41  ;;  %v4041_v16 = vadd.f32 %v675_v30, %v3690_v22  ;;  %v4044_v54 = vadd.f32 %v812_v18, %v3693_v24  ;;  %v6276_v24 = vld [vmem:[#allocation55_spill] sm:$0xff] }
 0x10a   :  { %6268 = vst [vmem:[#allocation44_spill] sm:$0xff] %v4030_v58  ;;  %6269 = vst [vmem:[#allocation45_spill] sm:$0xff] %v4033_v23  ;;  %v1039_v62 = vmul.f32 %v4015_v52, %v3928_v59  ;;  %v4049_v17 = vadd.f32 %v537_v37, %v3678_v28  ;;  %v4052_v2 = vadd.f32 %v674_v51, %v3681_v47  ;;  %vm1139_vm1 = vcmp.ge.f32.partialorder %v4015_v52, 0.0 }
 0x10b   :  { %6270 = vst [vmem:[#allocation49_spill] sm:$0xff] %v4038_v29  ;;  %6271 = vst [vmem:[#allocation50_spill] sm:$0xff] %v4041_v16  ;;  %v814_v20 = vmul.f32 %v6251_v36, %v440_v57  ;;  %v441_v41 = vsub.f32 %v378_v1, %v3506_v31  ;;  %v4057_v22 = vadd.f32 %v811_v32, %v3684_v53  ;;  %v386_v32 = vpop.permute.xlu1 %385  ;;  %v6293_v16 = vld [vmem:[#allocation27_spill] sm:$0xff] }
 0x10c   :  { %6272 = vst [vmem:[#allocation51_spill] sm:$0xff] %v4044_v54  ;;  %6273 = vst [vmem:[#allocation28_spill] sm:$0xff] %v4049_v17  ;;  %v4060_v6 = vadd.f32 %v540_v5, %v6276_v24  ;;  %v539_v30 = vmul.f32 %v439_v13, %v439_v13  ;;  %v444_v18 = vsub.f32 %v390_v63, %v3506_v31  ;;  %v6280_v5 = vld [vmem:[#allocation6_spill] sm:$0xff] }
 0x10d   :  { %6274 = vst [vmem:[#allocation40_spill] sm:$0xff] %v4052_v2  ;;  %6275 = vst [vmem:[#allocation34_spill] sm:$0xff] %v4057_v22  ;;  %v4064_v28 = vadd.f32 %v677_v56, %v6278_v25  ;;  %v676_v47 = vmul.f32 %v6250_v40, %v439_v13  ;;  %v813_v60 = vmul.f32 %v6251_v36, %v439_v13  ;;  %v6314_v22 = vld [vmem:[#allocation8_spill] sm:$0xff] }
 0x10e   :  { %6277 = vst [vmem:[#allocation55_spill] sm:$0xff] %v4060_v6  ;;  %v542_v57 = vmul.f32 %v442_v4, %v442_v4  ;;  %v679_v37 = vmul.f32 %v6250_v40, %v442_v4  ;;  %v816_v51 = vmul.f32 %v6251_v36, %v442_v4  ;;  %v541_v53 = vmul.f32 %v441_v41, %v441_v41  ;;  %v6282_v6 = vld [vmem:[#allocation52_spill] sm:$0xff]  ;;  %vm1164_vm5 = vmand %vm1114_vm0, %vm1139_vm1 }
 0x10f   :  { %6279 = vst [vmem:[#allocation56_spill] sm:$0xff] %v4064_v28  ;;  %v4070_v1 = vadd.f32 %v1039_v62, %v1014_v55  ;;  %v4073_v24 = vadd.f32 %v814_v20, %v6280_v5  ;;  %v678_v63 = vmul.f32 %v6250_v40, %v441_v41  ;;  %v815_v56 = vmul.f32 %v6251_v36, %v441_v41  ;;  %v6284_v55 = vld [vmem:[#allocation53_spill] sm:$0xff]  ;;  %v6286_v20 = vld [vmem:[#allocation54_spill] sm:$0xff] }
 0x110   :  { %v544_v25 = vmul.f32 %v444_v18, %v444_v18  ;;  %v4078_v28 = vadd.f32 %v539_v30, %v6282_v6  ;;  %v681_v13 = vmul.f32 %v6250_v40, %v444_v18  ;;  %v818_v29 = vmul.f32 %v6251_v36, %v444_v18  ;;  %v398_v30 = vpop.permute.xlu0 %397  ;;  %v6291_v18 = vld [vmem:[#allocation10_spill] sm:$0xff] }
 0x111   :  { %6281 = vst [vmem:[#allocation6_spill] sm:$0xff] %v4073_v24  ;;  %v4084_v4 = vadd.f32 %v4015_v52, %v3970_v10  ;;  %v4087_v62 = vadd.f32 %v676_v47, %v6284_v55  ;;  %v4090_v5 = vadd.f32 %v813_v60, %v6286_v20  ;;  %v4093_v41 = vadd.f32 %v542_v57, %v3747_v45  ;;  %v6289_v24 = vld [vmem:[#allocation9_spill] sm:$0xff]  ;;  %v6295_v60 = vld [vmem:[#allocation4_spill] sm:$0xff] }
 0x112   :  { %6283 = vst [vmem:[#allocation52_spill] sm:$0xff] %v4078_v28  ;;  %v443_v6 = vsub.f32 %v386_v32, %v3506_v31  ;;  %v4097_v28 = vadd.f32 %v679_v37, %v6289_v24  ;;  %v4100_v54 = vadd.f32 %v816_v51, %v6291_v18  ;;  %v4103_v17 = vadd.f32 %v541_v53, %v6293_v16  ;;  %v6297_v45 = vld [vmem:[#allocation5_spill] sm:$0xff]  ;;  %v6303_v16 = vld [vmem:[#allocation14_spill] sm:$0xff] }
 0x113   :  { %6285 = vst [vmem:[#allocation53_spill] sm:$0xff] %v4087_v62  ;;  %6287 = vst [vmem:[#allocation54_spill] sm:$0xff] %v4090_v5  ;;  %v4108_v55 = vadd.f32 %v678_v63, %v6295_v60  ;;  %v4111_v57 = vadd.f32 %v815_v56, %v6297_v45  ;;  %v4114_v32 = vadd.f32 %v544_v25, %v3777_v42  ;;  %v6300_v37 = vld [vmem:[#allocation41_spill] sm:$0xff]  ;;  %v6305_v63 = vld [vmem:[#allocation36_spill] sm:$0xff]  ;;  %vm1214_vm2 = vcmp.le.f32.partialorder %v4084_v4, 1.0 }
 0x114   :  { %6288 = vst [vmem:[#allocation64_spill] sm:$0xff] %v4093_v41  ;;  %6290 = vst [vmem:[#allocation9_spill] sm:$0xff] %v4097_v28  ;;  %v1318_v24 = vmul.f32 %v6300_v37, %v3926_v27  ;;  %v6301_v51 = vld [vmem:[#allocation13_spill] sm:$0xff]  ;;  %v4122_v53 = vadd.f32 %v818_v29, %v6303_v16  ;;  %v446_v18 = vsub.f32 %v398_v30, %v3506_v31 }
 0x115   :  { %6292 = vst [vmem:[#allocation10_spill] sm:$0xff] %v4100_v54  ;;  %6294 = vst [vmem:[#allocation27_spill] sm:$0xff] %v4103_v17  ;;  %v4119_v20 = vadd.f32 %v681_v13, %v6301_v51  ;;  %v1501_v60 = vmul.f32 %v6305_v63, %v3928_v59  ;;  %v543_v47 = vmul.f32 %v443_v6, %v443_v6  ;;  %v6307_v17 = vld [vmem:[#allocation35_spill] sm:$0xff] }
 0x116   :  { %6296 = vst [vmem:[#allocation4_spill] sm:$0xff] %v4108_v55  ;;  %6298 = vst [vmem:[#allocation5_spill] sm:$0xff] %v4111_v57  ;;  %v1343_v56 = vmax.f32 %v1318_v24, 0.0  ;;  %v1680_v42 = vsub.f32 %v3928_v59, %v3926_v27  ;;  %v857_v25 = vmul.f32 %v6259_v14, %v3940_v43  ;;  %v886_v13 = vmul.f32 %v6260_v49, %v3942_v48  ;;  %v6308_v55 = vld [vmem:[#allocation42_spill] sm:$0xff] }
 0x117   :  { %6299 = vst [vmem:[#allocation65_spill] sm:$0xff] %v4114_v32  ;;  %6302 = vst [vmem:[#allocation41_spill] sm:$0xff] %v4119_v20  ;;  %v1526_v45 = vmax.f32 %v1501_v60, 0.0  ;;  %v940_v29 = vmul.f32 %v6262_v35, %v3942_v48  ;;  %v965_v30 = vmul.f32 %v6260_v49, %v3940_v43  ;;  %v680_v51 = vmul.f32 %v6250_v40, %v443_v6  ;;  %v6306_v32 = vld [vmem:[#allocation32_spill] sm:$0xff] }
 0x118   :  { %6304 = vst [vmem:[#allocation13_spill] sm:$0xff] %v4122_v53  ;;  %v817_v24 = vmul.f32 %v6251_v36, %v443_v6  ;;  %v1368_v16 = vmin.f32 %v1343_v56, 1.0  ;;  %v1709_v53 = vadd.f32 %v6306_v32, %v1680_v42  ;;  %v1264_v20 = vadd.f32 %v3926_v27, %v3926_v27  ;;  %v6309_v42 = vld [vmem:[#allocation29_spill] sm:$0xff]  ;;  %vm1239_vm7 = vmand %vm1164_vm5, %vm1214_vm2 }
 0x119   :  { %v1551_v60 = vmin.f32 %v1526_v45, 1.0  ;;  %v4142_v41 = vsub.f32 %v857_v25, %v886_v13  ;;  %v4144_v54 = vsub.f32 %v940_v29, %v965_v30  ;;  %v546_v28 = vmul.f32 %v446_v18, %v446_v18  ;;  %v6310_v45 = vld [vmem:[#allocation57_spill] sm:$0xff]  ;;  %v6312_v29 = vld [vmem:[#allocation7_spill] sm:$0xff] }
 0x11a   :  { %v1397_v57 = vmul.f32 %v6307_v17, %v1368_v16  ;;  %v1738_v5 = vmul.f32 %v6308_v55, %v1709_v53  ;;  %v1319_v62 = vmul.f32 %v6300_v37, %v3940_v43  ;;  %v683_v6 = vmul.f32 %v6250_v40, %v446_v18 }
 0x11b   :  { %v820_v56 = vmul.f32 %v6251_v36, %v446_v18  ;;  %v1289_v27 = vadd.f32 %v3928_v59, %v3928_v59  ;;  %v1580_v25 = vmul.f32 %v6309_v42, %v1551_v60  ;;  %v4156_v13 = vadd.f32 %v543_v47, %v6310_v45 }
 0x11c   :  { %v4159_v30 = vadd.f32 %v680_v51, %v6312_v29  ;;  %v4162_v2 = vadd.f32 %v817_v24, %v6314_v22  ;;  %v1763_v15 = vmax.f32 %v1738_v5, 0.0  ;;  %v1015_v33 = vmul.f32 %v4142_v41, %v3940_v43  ;;  %v6316_v29 = vld [vmem:[#allocation58_spill] sm:$0xff] }
 0x11d   :  { %6311 = vst [vmem:[#allocation14_spill] sm:$0xff] %v4156_v13  ;;  %v1040_v18 = vmul.f32 %v4144_v54, %v3942_v48  ;;  %v1344_v9 = vmax.f32 %v1319_v62, 0.0  ;;  %v1502_v59 = vmul.f32 %v6305_v63, %v3942_v48  ;;  %v1422_v23 = vsub.f32 %v1397_v57, %v1264_v20  ;;  %v6318_v57 = vld [vmem:[#allocation37_spill] sm:$0xff] }
 0x11e   :  { %6313 = vst [vmem:[#allocation36_spill] sm:$0xff] %v4159_v30  ;;  %6315 = vst [vmem:[#allocation32_spill] sm:$0xff] %v4162_v2  ;;  %v1605_v47 = vsub.f32 %v1580_v25, %v1289_v27  ;;  %v1788_v45 = vmin.f32 %v1763_v15, 1.0  ;;  %v1681_v51 = vsub.f32 %v3942_v48, %v3940_v43  ;;  %v4173_v22 = vadd.f32 %v546_v28, %v6316_v29  ;;  %v394_v2 = vpop.permute.xlu1 %393  ;;  %v6319_v30 = vld [vmem:[#allocation17_spill] sm:$0xff] }
 0x11f   :  { %v1265_v5 = vadd.f32 %v3940_v43, %v3940_v43  ;;  %v1369_v62 = vmin.f32 %v1344_v9, 1.0  ;;  %v1527_v24 = vmax.f32 %v1502_v59, 0.0  ;;  %v1813_v13 = vsub.f32 %v3934_v26, %v1264_v20 }
 0x120   :  { %6317 = vst [vmem:[#allocation35_spill] sm:$0xff] %v4173_v22  ;;  %v1867_v27 = vmul.f32 %v6318_v57, %v1788_v45  ;;  %v1892_v15 = vadd.f32 %v1709_v53, %v1709_v53  ;;  %v1710_v25 = vadd.f32 %v6306_v32, %v1681_v51  ;;  %v4183_v28 = vadd.f32 %v683_v6, %v6319_v30  ;;  %v6321_v30 = vld [vmem:[#allocation18_spill] sm:$0xff] }
 0x121   :  { %v4185_v29 = vadd.f32 %v1040_v18, %v1015_v33  ;;  %v1398_v22 = vmul.f32 %v6307_v17, %v1369_v62  ;;  %v1552_v58 = vmin.f32 %v1527_v24, 1.0  ;;  %v1447_v43 = vmul.f32 %v1422_v23, %v1368_v16  ;;  %v406_v16 = vpop.permute.xlu0 %405 }
 0x122   :  { %6320 = vst [vmem:[#allocation42_spill] sm:$0xff] %v4183_v28  ;;  %v1630_v9 = vmul.f32 %v1605_v47, %v1551_v60  ;;  %v1917_v59 = vsub.f32 %v1867_v27, %v1892_v15  ;;  %v1739_v20 = vmul.f32 %v6308_v55, %v1710_v25  ;;  %v1290_v53 = vadd.f32 %v3942_v48, %v3942_v48 }
 0x123   :  { %v1581_v51 = vmul.f32 %v6309_v42, %v1552_v58  ;;  %v1814_v6 = vsub.f32 %v3936_v38, %v1265_v5  ;;  %v445_v33 = vsub.f32 %v394_v2, %v3506_v31  ;;  %v4196_v18 = vadd.f32 %v820_v56, %v6321_v30 }
 0x124   :  { %v1838_v24 = vadd.f32 %v1813_v13, %v6307_v17  ;;  %v1942_v28 = vmul.f32 %v1917_v59, %v1788_v45  ;;  %v1764_v23 = vmax.f32 %v1739_v20, 0.0  ;;  %v4203_v48 = vadd.f32 %v4144_v54, %v4142_v41 }
 0x125   :  { %v1423_v47 = vsub.f32 %v1398_v22, %v1265_v5  ;;  %v1606_v27 = vsub.f32 %v1581_v51, %v1290_v53  ;;  %v1472_v15 = vadd.f32 %v1447_v43, %v3934_v26  ;;  %v1655_v2 = vadd.f32 %v1630_v9, %v3934_v26 }
 0x126   :  { %v1967_v56 = vadd.f32 %v1942_v28, %v1838_v24  ;;  %v1789_v30 = vmin.f32 %v1764_v23, 1.0  ;;  %vm1115_vm3 = vcmp.ge.f32.partialorder %v4142_v41, 0.0  ;;  %vm1140_vm4 = vcmp.ge.f32.partialorder %v4144_v54, 0.0  ;;  %v6329_v54 = vld [vmem:[#allocation46_spill] sm:$0xff] }
 0x127   :  { %v1839_v13 = vadd.f32 %v1814_v6, %v6307_v17  ;;  %v1893_v45 = vadd.f32 %v1710_v25, %v1710_v25  ;;  %v545_v59 = vmul.f32 %v445_v33, %v445_v33  ;;  %v448_v20 = vsub.f32 %v406_v16, %v3506_v31  ;;  %vm1165_vm8 = vmand %vm1115_vm3, %vm1140_vm4 }
 0x128   :  { %v1992_v60 = vmin.f32 %v1655_v2, %v1967_v56  ;;  %v1868_v22 = vmul.f32 %v6318_v57, %v1789_v30  ;;  %v682_v5 = vmul.f32 %v6250_v40, %v445_v33  ;;  %v858_v43 = vmul.f32 %v6259_v14, %v3952_v19 }
 0x129   :  { %v1448_v28 = vmul.f32 %v1423_v47, %v1369_v62  ;;  %v1631_v9 = vmul.f32 %v1606_v27, %v1552_v58  ;;  %v819_v53 = vmul.f32 %v6251_v36, %v445_v33  ;;  %v887_v51 = vmul.f32 %v6260_v49, %v3956_v0  ;;  %v6322_v62 = vld [vmem:[#allocation33_spill] sm:$0xff] }
 0x12a   :  { %v2017_v25 = vmin.f32 %v1472_v15, %v1992_v60  ;;  %vm1215_vm6 = vcmp.le.f32.partialorder %v4203_v48, 1.0  ;;  %v1918_v6 = vsub.f32 %v1868_v22, %v1893_v45  ;;  %v941_v24 = vmul.f32 %v6262_v35, %v3956_v0 }
 0x12b   :  { %v966_v58 = vmul.f32 %v6260_v49, %v3952_v19  ;;  %v4228_v33 = vadd.f32 %v545_v59, %v6322_v62  ;;  %v548_v23 = vmul.f32 %v448_v20, %v448_v20  ;;  %v4230_v16 = vsub.f32 %v858_v43, %v887_v51  ;;  %v402_v43 = vpop.permute.xlu1 %401  ;;  %v6325_v62 = vld [vmem:[#allocation11_spill] sm:$0xff]  ;;  %vm1240_vm9 = vmand %vm1165_vm8, %vm1215_vm6 }
 0x12c   :  { %v1320_v10 = vmul.f32 %v6300_v37, %v3952_v19  ;;  %v6323_v52 = vsub.f32 %v3934_v26, %v4070_v1  ;;  %v1943_v47 = vmul.f32 %v1918_v6, %v1789_v30  ;;  %v1503_v15 = vmul.f32 %v6305_v63, %v3956_v0 }
 0x12d   :  { %v4237_v27 = vsub.f32 %v941_v24, %v966_v58  ;;  %v1656_v2 = vadd.f32 %v1631_v9, %v3936_v38  ;;  %v685_v56 = vmul.f32 %v6250_v40, %v448_v20  ;;  %v1682_v59 = vsub.f32 %v3956_v0, %v3952_v19 }
 0x12e   :  { %v2042_v60 = vmin.f32 %v6323_v52, %v2017_v25  ;;  %v1345_v45 = vmax.f32 %v1320_v10, 0.0  ;;  %v1968_v26 = vadd.f32 %v1943_v47, %v1839_v13  ;;  %v1016_v1 = vmul.f32 %v4230_v16, %v3952_v19  ;;  %v6326_v47 = vld [vmem:[#allocation12_spill] sm:$0xff] }
 0x12f   :  { %v1266_v30 = vadd.f32 %v3952_v19, %v3952_v19  ;;  %v1041_v4 = vmul.f32 %v4237_v27, %v3956_v0  ;;  %v1528_v6 = vmax.f32 %v1503_v15, 0.0  ;;  %v1473_v24 = vadd.f32 %v1448_v28, %v3936_v38 }
 0x130   :  { %v2067_v22 = vsel %vm1239_vm7, %v2042_v60, %v2017_v25  ;;  %v1370_v9 = vmin.f32 %v1345_v45, 1.0  ;;  %v1993_v58 = vmin.f32 %v1656_v2, %v1968_v26  ;;  %v4257_v25 = vadd.f32 %v682_v5, %v6325_v62 }
 0x131   :  { %v4251_v51 = vmax.f32 %v2067_v22, 0.0  ;;  %v1711_v13 = vadd.f32 %v6306_v32, %v1682_v59  ;;  %v822_v19 = vmul.f32 %v6251_v36, %v448_v20  ;;  %v1553_v52 = vmin.f32 %v1528_v6, 1.0  ;;  %v6328_v20 = vld [vmem:[#allocation21_spill] sm:$0xff]  ;;  %v414_v6 = vpop.permute.xlu0 %413 }
 0x132   :  { %v1399_v10 = vmul.f32 %v6307_v17, %v1370_v9  ;;  %v447_v60 = vsub.f32 %v402_v43, %v3506_v31  ;;  %v2018_v28 = vmin.f32 %v1473_v24, %v1993_v58  ;;  %v4269_v5 = vadd.f32 %v819_v53, %v6326_v47 }
 0x133   :  { %6324 = vst [vmem:[#allocation29_spill] sm:$0xff] %v4251_v51  ;;  %2404 = vmin.xlane.f32.xlu1 %v4251_v51  ;;  %v4272_v15 = vadd.f32 %v548_v23, %v3832_v3  ;;  %v1740_v2 = vmul.f32 %v6308_v55, %v1711_v13  ;;  %v4276_v45 = vadd.f32 %v685_v56, %v6328_v20  ;;  %v6331_v56 = vld [vmem:[#allocation22_spill] sm:$0xff]  ;;  %vm1116_vm10 = vcmp.ge.f32.partialorder %v4230_v16, 0.0  ;;  %v6333_v20 = vld [vmem:[#allocation59_spill] sm:$0xff]  ;;  %v6338_v51 = vld [vmem:[#allocation25_spill] sm:$0xff] }
 0x134   :  { %v4278_v59 = vadd.f32 %v1041_v4, %v1016_v1  ;;  %v1582_v22 = vmul.f32 %v6309_v42, %v1553_v52  ;;  %v1815_v26 = vsub.f32 %v6329_v54, %v1266_v30  ;;  %v6330_v41 = vsub.f32 %v3936_v38, %v4185_v29 }
 0x135   :  { %6327 = vst [vmem:[#allocation57_spill] sm:$0xff] %v4272_v15  ;;  %v1291_v53 = vadd.f32 %v3956_v0, %v3956_v0  ;;  %v1424_v3 = vsub.f32 %v1399_v10, %v1266_v30  ;;  %v1765_v23 = vmax.f32 %v1740_v2, 0.0  ;;  %v4290_v1 = vadd.f32 %v822_v19, %v6331_v56 }
 0x136   :  { %v2043_v43 = vmin.f32 %v6330_v41, %v2018_v28  ;;  %v4294_v4 = vadd.f32 %v4237_v27, %v4230_v16  ;;  %v547_v24 = vmul.f32 %v447_v60, %v447_v60  ;;  %v684_v38 = vmul.f32 %v6250_v40, %v447_v60 }
 0x137   :  { %v1607_v58 = vsub.f32 %v1582_v22, %v1291_v53  ;;  %v1790_v62 = vmin.f32 %v1765_v23, 1.0  ;;  %v821_v0 = vmul.f32 %v6251_v36, %v447_v60  ;;  %v1091_v48 = vsub.f32 %v6329_v54, %v4278_v59  ;;  %v6334_v59 = vld [vmem:[#allocation15_spill] sm:$0xff]  ;;  %v6335_v53 = vld [vmem:[#allocation16_spill] sm:$0xff] }
 0x138   :  { %v2068_v29 = vsel %vm1240_vm9, %v2043_v43, %v2018_v28  ;;  %vm1141_vm11 = vcmp.ge.f32.partialorder %v4237_v27, 0.0  ;;  %v1840_v19 = vadd.f32 %v1815_v26, %v6307_v17  ;;  %v450_v10 = vsub.f32 %v414_v6, %v3506_v31 }
 0x139   :  { %v4298_v30 = vmax.f32 %v2068_v29, 0.0  ;;  %v1449_v47 = vmul.f32 %v1424_v3, %v1370_v9  ;;  %v1869_v28 = vmul.f32 %v6318_v57, %v1790_v62  ;;  %v1894_v2 = vadd.f32 %v1711_v13, %v1711_v13  ;;  %vm1166_vm13 = vmand %vm1116_vm10, %vm1141_vm11 }
 0x13a   :  { %v859_v60 = vmul.f32 %v6259_v14, %v3974_v61  ;;  %v4311_v22 = vadd.f32 %v547_v24, %v6333_v20  ;;  %v4314_v41 = vadd.f32 %v684_v38, %v6334_v59  ;;  %v888_v26 = vmul.f32 %v6260_v49, %v3978_v11 }
 0x13b   :  { %6332 = vst [vmem:[#allocation7_spill] sm:$0xff] %v4298_v30  ;;  %2406 = vmin.xlane.f32.xlu0 %v4298_v30  ;;  %v942_v9 = vmul.f32 %v6262_v35, %v3978_v11  ;;  %vm1216_vm12 = vcmp.le.f32.partialorder %v4294_v4, 1.0  ;;  %v1632_v13 = vmul.f32 %v1607_v58, %v1553_v52  ;;  %v1919_v43 = vsub.f32 %v1869_v28, %v1894_v2 }
 0x13c   :  { %v4322_v3 = vadd.f32 %v821_v0, %v6335_v53  ;;  %v967_v23 = vmul.f32 %v6260_v49, %v3974_v61  ;;  %v550_v6 = vmul.f32 %v450_v10, %v450_v10  ;;  %v687_v56 = vmul.f32 %v6250_v40, %v450_v10  ;;  %vm1241_vm14 = vmand %vm1166_vm13, %vm1216_vm12 }
 0x13d   :  { %v4327_v24 = vsub.f32 %v859_v60, %v888_v26  ;;  %v1321_v38 = vmul.f32 %v6300_v37, %v3974_v61  ;;  %v1944_v29 = vmul.f32 %v1919_v43, %v1790_v62  ;;  %v1504_v52 = vmul.f32 %v6305_v63, %v3978_v11  ;;  %v6336_v43 = vld [vmem:[#allocation61_spill] sm:$0xff] }
 0x13e   :  { %v4331_v20 = vsub.f32 %v942_v9, %v967_v23  ;;  %v1683_v58 = vsub.f32 %v3978_v11, %v3974_v61  ;;  %v1474_v0 = vadd.f32 %v1449_v47, %v6329_v54  ;;  %v824_v28 = vmul.f32 %v6251_v36, %v450_v10 }
 0x13f   :  { %v1267_v2 = vadd.f32 %v3974_v61, %v3974_v61  ;;  %v1346_v60 = vmax.f32 %v1321_v38, 0.0  ;;  %v1657_v59 = vadd.f32 %v1632_v13, %v6329_v54  ;;  %v1969_v26 = vadd.f32 %v1944_v29, %v1840_v19 }
 0x140   :  { %v1017_v62 = vmul.f32 %v4327_v24, %v3974_v61  ;;  %v1042_v9 = vmul.f32 %v4331_v20, %v3978_v11  ;;  %v4347_v53 = vadd.f32 %v550_v6, %v6336_v43  ;;  %v1529_v47 = vmax.f32 %v1504_v52, 0.0 }
 0x141   :  { %v1371_v23 = vmin.f32 %v1346_v60, 1.0  ;;  %v1712_v10 = vadd.f32 %v6306_v32, %v1683_v58  ;;  %v1994_v30 = vmin.f32 %v1657_v59, %v1969_v26  ;;  %v4351_v15 = vadd.f32 %v687_v56, %v6338_v51  ;;  %v6339_v26 = vld [vmem:[#allocation26_spill] sm:$0xff] }
 0x142   :  { %6337 = vst [vmem:[#allocation8_spill] sm:$0xff] %v4347_v53  ;;  %v1292_v54 = vadd.f32 %v3978_v11, %v3978_v11  ;;  %v860_v61 = vmul.f32 %v6259_v14, %v3962_v12  ;;  %v1554_v13 = vmin.f32 %v1529_v47, 1.0  ;;  %v1816_v38 = vsub.f32 %v3968_v34, %v1267_v2 }
 0x143   :  { %v1400_v19 = vmul.f32 %v6307_v17, %v1371_v23  ;;  %v1741_v6 = vmul.f32 %v6308_v55, %v1712_v10  ;;  %v2019_v51 = vmin.f32 %v1474_v0, %v1994_v30  ;;  %v4364_v56 = vadd.f32 %v1042_v9, %v1017_v62 }
 0x144   :  { %v889_v11 = vmul.f32 %v6260_v49, %v3966_v44  ;;  %v943_v29 = vmul.f32 %v6262_v35, %v3966_v44  ;;  %v1583_v58 = vmul.f32 %v6309_v42, %v1554_v13  ;;  %v968_v59 = vmul.f32 %v6260_v49, %v3962_v12 }
 0x145   :  { %v1425_v52 = vsub.f32 %v1400_v19, %v1267_v2  ;;  %v1766_v60 = vmax.f32 %v1741_v6, 0.0  ;;  %v2044_v27 = vmin.f32 %v1091_v48, %v2019_v51  ;;  %v4374_v16 = vadd.f32 %v824_v28, %v6339_v26 }
 0x146   :  { %v4378_v30 = vadd.f32 %v4331_v20, %v4327_v24  ;;  %v4380_v0 = vsub.f32 %v860_v61, %v889_v11  ;;  %v1608_v2 = vsub.f32 %v1583_v58, %v1292_v54  ;;  %v1841_v9 = vadd.f32 %v1816_v38, %v6307_v17  ;;  %v422_v58 = vpop.permute.xlu0 %421 }
 0x147   :  { %6340 = vst [vmem:[#allocation58_spill] sm:$0xff] %v4374_v16  ;;  %v1791_v62 = vmin.f32 %v1766_v60, 1.0  ;;  %v4385_v43 = vsub.f32 %v943_v29, %v968_v59  ;;  %v2069_v47 = vsel %vm1241_vm14, %v2044_v27, %v2019_v51  ;;  %vm1117_vm15 = vcmp.ge.f32.partialorder %v4327_v24, 0.0  ;;  %v410_v29 = vpop.permute.xlu1 %409 }
 0x148   :  { %vm1142_vm0 = vcmp.ge.f32.partialorder %v4331_v20, 0.0  ;;  %v1450_v48 = vmul.f32 %v1425_v52, %v1371_v23  ;;  %v1018_v28 = vmul.f32 %v4380_v0, %v3962_v12  ;;  %v1322_v61 = vmul.f32 %v6300_v37, %v3962_v12  ;;  %v6347_v20 = vld [vmem:[#allocation63_spill] sm:$0xff] }
 0x149   :  { %v4393_v4 = vmax.f32 %v2069_v47, 0.0  ;;  %v1092_v54 = vsub.f32 %v3968_v34, %v4364_v56  ;;  %v1870_v19 = vmul.f32 %v6318_v57, %v1791_v62  ;;  %v1895_v6 = vadd.f32 %v1712_v10, %v1712_v10  ;;  %vm4437_vm2 = vmand %vm1117_vm15, %vm1142_vm0 }
 0x14a   :  { %v1633_v38 = vmul.f32 %v1608_v2, %v1554_v13  ;;  %v1043_v51 = vmul.f32 %v4385_v43, %v3966_v44  ;;  %v1268_v23 = vadd.f32 %v3962_v12, %v3962_v12  ;;  %v1347_v11 = vmax.f32 %v1322_v61, 0.0 }
 0x14b   :  { %6341 = vst [vmem:[#allocation37_spill] sm:$0xff] %v4393_v4  ;;  %2408 = vmin.xlane.f32.xlu0 %v4393_v4  ;;  %vm1217_vm1 = vcmp.le.f32.partialorder %v4378_v30, 1.0  ;;  %v1920_v52 = vsub.f32 %v1870_v19, %v1895_v6  ;;  %v1293_v56 = vadd.f32 %v3966_v44, %v3966_v44  ;;  %v1505_v10 = vmul.f32 %v6305_v63, %v3966_v44 }
 0x14c   :  { %v1684_v13 = vsub.f32 %v3966_v44, %v3962_v12  ;;  %v1475_v60 = vadd.f32 %v1450_v48, %v3968_v34  ;;  %v4411_v59 = vadd.f32 %v1043_v51, %v1018_v28  ;;  %v4415_v27 = vadd.f32 %v4385_v43, %v4380_v0  ;;  %vm1242_vm5 = vmand %vm4437_vm2, %vm1217_vm1 }
 0x14d   :  { %v1372_v26 = vmin.f32 %v1347_v11, 1.0  ;;  %v1945_v2 = vmul.f32 %v1920_v52, %v1791_v62  ;;  %v1530_v47 = vmax.f32 %v1505_v10, 0.0  ;;  %v449_v19 = vsub.f32 %v410_v29, %v3506_v31 }
 0x14e   :  { %v1713_v61 = vadd.f32 %v6306_v32, %v1684_v13  ;;  %v1658_v6 = vadd.f32 %v1633_v38, %v3968_v34  ;;  %v1817_v44 = vsub.f32 %v3960_v50, %v1268_v23  ;;  %v452_v48 = vsub.f32 %v422_v58, %v3506_v31 }
 0x14f   :  { %v1401_v12 = vmul.f32 %v6307_v17, %v1372_v26  ;;  %v1970_v28 = vadd.f32 %v1945_v2, %v1841_v9  ;;  %v1555_v4 = vmin.f32 %v1530_v47, 1.0  ;;  %v549_v52 = vmul.f32 %v449_v19, %v449_v19  ;;  %v6342_v2 = vld [vmem:[#allocation60_spill] sm:$0xff] }
 0x150   :  { %v1742_v62 = vmul.f32 %v6308_v55, %v1713_v61  ;;  %v686_v10 = vmul.f32 %v6250_v40, %v449_v19  ;;  %v823_v29 = vmul.f32 %v6251_v36, %v449_v19  ;;  %v552_v53 = vmul.f32 %v452_v48, %v452_v48 }
 0x151   :  { %v1426_v11 = vsub.f32 %v1401_v12, %v1268_v23  ;;  %v1995_v34 = vmin.f32 %v1658_v6, %v1970_v28  ;;  %v1584_v38 = vmul.f32 %v6309_v42, %v1555_v4  ;;  %v1842_v9 = vadd.f32 %v1817_v44, %v6307_v17  ;;  %v6345_v12 = vld [vmem:[#allocation19_spill] sm:$0xff] }
 0x152   :  { %v1767_v13 = vmax.f32 %v1742_v62, 0.0  ;;  %v1896_v58 = vadd.f32 %v1713_v61, %v1713_v61  ;;  %v4431_v51 = vadd.f32 %v549_v52, %v6342_v2  ;;  %v4442_v28 = vadd.f32 %v686_v10, %v6345_v12  ;;  %v6349_v10 = vld [vmem:[#allocation30_spill] sm:$0xff] }
 0x153   :  { %v1451_v16 = vmul.f32 %v1426_v11, %v1372_v26  ;;  %v2020_v47 = vmin.f32 %v1475_v60, %v1995_v34  ;;  %v1609_v19 = vsub.f32 %v1584_v38, %v1293_v56  ;;  %vm1118_vm3 = vcmp.ge.f32.partialorder %v4380_v0, 0.0  ;;  %v6346_v26 = vld [vmem:[#allocation20_spill] sm:$0xff] }
 0x154   :  { %v1792_v6 = vmin.f32 %v1767_v13, 1.0  ;;  %vm1143_vm4 = vcmp.ge.f32.partialorder %v4385_v43, 0.0  ;;  %v4447_v61 = vadd.f32 %v823_v29, %v6346_v26  ;;  %v4450_v44 = vadd.f32 %v552_v53, %v6347_v20 }
 0x155   :  { %v689_v24 = vmul.f32 %v6250_v40, %v452_v48  ;;  %v861_v60 = vmul.f32 %v6259_v14, %v4002_v46  ;;  %v2045_v56 = vmin.f32 %v1092_v54, %v2020_v47  ;;  %v1634_v62 = vmul.f32 %v1609_v19, %v1555_v4  ;;  %vm1168_vm12 = vmand %vm1118_vm3, %vm1143_vm4 }
 0x156   :  { %6348 = vst [vmem:[#allocation17_spill] sm:$0xff] %v4450_v44  ;;  %v1871_v11 = vmul.f32 %v6318_v57, %v1792_v6  ;;  %v890_v52 = vmul.f32 %v6260_v49, %v4006_v8  ;;  %v1476_v53 = vadd.f32 %v1451_v16, %v3960_v50  ;;  %v944_v34 = vmul.f32 %v6262_v35, %v4006_v8 }
 0x157   :  { %v4464_v29 = vadd.f32 %v689_v24, %v6349_v10  ;;  %v969_v4 = vmul.f32 %v6260_v49, %v4002_v46  ;;  %v2070_v54 = vsel %vm1242_vm5, %v2045_v56, %v2020_v47  ;;  %vm1218_vm6 = vcmp.le.f32.partialorder %v4415_v27, 1.0 }
 0x158   :  { %v1921_v38 = vsub.f32 %v1871_v11, %v1896_v58  ;;  %v4472_v30 = vmul.f32 %v6251_v36, %v452_v48  ;;  %v915_v13 = vsub.f32 %v861_v60, %v890_v52  ;;  %v4474_v2 = vmax.f32 %v2070_v54, 0.0  ;;  %vm1243_vm13 = vmand %vm1168_vm12, %vm1218_vm6 }
 0x159   :  { %6350 = vst [vmem:[#allocation18_spill] sm:$0xff] %v4464_v29  ;;  %v4478_v16 = vadd.f32 %v4464_v29, %v4464_v29  ;;  %v994_v23 = vsub.f32 %v944_v34, %v969_v4  ;;  %v1269_v19 = vadd.f32 %v4002_v46, %v4002_v46  ;;  %v1659_v12 = vadd.f32 %v1634_v62, %v3960_v50 }
 0x15a   :  { %6351 = vst [vmem:[#allocation33_spill] sm:$0xff] %v4474_v2  ;;  %v1946_v47 = vmul.f32 %v1921_v38, %v1792_v6  ;;  %v1019_v26 = vmul.f32 %v915_v13, %v4002_v46  ;;  %vm1119_vm7 = vcmp.ge.f32.partialorder %v915_v13, 0.0  ;;  %2410 = vmin.xlane.f32.xlu1 %v4474_v2  ;;  %v1323_v60 = vmul.f32 %v6300_v37, %v4002_v46 }
 0x15b   :  { %6352 = vst [vmem:[#allocation11_spill] sm:$0xff] %v4478_v16  ;;  %v1044_v58 = vmul.f32 %v994_v23, %v4006_v8  ;;  %vm1144_vm8 = vcmp.ge.f32.partialorder %v994_v23, 0.0  ;;  %v1194_v20 = vadd.f32 %v994_v23, %v915_v13  ;;  %v1506_v6 = vmul.f32 %v6305_v63, %v4006_v8 }
 0x15c   :  { %v1971_v24 = vadd.f32 %v1946_v47, %v1842_v9  ;;  %vm1169_vm9 = vmand %vm1119_vm7, %vm1144_vm8  ;;  %v1685_v56 = vsub.f32 %v4006_v8, %v4002_v46  ;;  %v1818_v11 = vsub.f32 %v3999_v39, %v1269_v19  ;;  %v862_v52 = vmul.f32 %v6259_v14, %v3985_v7  ;;  %v6362_v46 = vld [vmem:[#allocation23_spill] sm:$0xff] }
 0x15d   :  { %v4494_v62 = vadd.f32 %v1044_v58, %v1019_v26  ;;  %vm1219_vm10 = vcmp.le.f32.partialorder %v1194_v20, 1.0  ;;  %v1348_v34 = vmax.f32 %v1323_v60, 0.0  ;;  %v1531_v4 = vmax.f32 %v1506_v6, 0.0 }
 0x15e   :  { %v1996_v10 = vmin.f32 %v1659_v12, %v1971_v24  ;;  %vm4499_vm11 = vmand %vm1169_vm9, %vm1219_vm10  ;;  %v1714_v54 = vadd.f32 %v6306_v32, %v1685_v56  ;;  %v1294_v38 = vadd.f32 %v4006_v8, %v4006_v8  ;;  %v891_v13 = vmul.f32 %v6260_v49, %v3988_v21 }
 0x15f   :  { %v945_v23 = vmul.f32 %v6262_v35, %v3988_v21  ;;  %v1373_v47 = vmin.f32 %v1348_v34, 1.0  ;;  %v1556_v26 = vmin.f32 %v1531_v4, 1.0  ;;  %v1843_v20 = vadd.f32 %v1818_v11, %v6307_v17 }
 0x160   :  { %v2021_v12 = vmin.f32 %v1476_v53, %v1996_v10  ;;  %v1743_v58 = vmul.f32 %v6308_v55, %v1714_v54  ;;  %v1897_v24 = vadd.f32 %v1714_v54, %v1714_v54  ;;  %v916_v8 = vsub.f32 %v862_v52, %v891_v13 }
 0x161   :  { %v970_v60 = vmul.f32 %v6260_v49, %v3985_v7  ;;  %v6355_v6 = vsub.f32 %v3960_v50, %v4411_v59  ;;  %v1402_v43 = vmul.f32 %v6307_v17, %v1373_v47  ;;  %v1585_v0 = vmul.f32 %v6309_v42, %v1556_v26 }
 0x162   :  { %v1768_v53 = vmax.f32 %v1743_v58, 0.0  ;;  %v1020_v11 = vmul.f32 %v916_v8, %v3985_v7  ;;  %vm1120_vm14 = vcmp.ge.f32.partialorder %v916_v8, 0.0  ;;  %v1270_v52 = vadd.f32 %v3985_v7, %v3985_v7 }
 0x163   :  { %v2046_v56 = vmin.f32 %v6355_v6, %v2021_v12  ;;  %v995_v10 = vsub.f32 %v945_v23, %v970_v60  ;;  %v1427_v4 = vsub.f32 %v1402_v43, %v1269_v19  ;;  %v1610_v54 = vsub.f32 %v1585_v0, %v1294_v38 }
 0x164   :  { %v1793_v50 = vmin.f32 %v1768_v53, 1.0  ;;  %v1324_v60 = vmul.f32 %v6300_v37, %v3985_v7  ;;  %v1507_v19 = vmul.f32 %v6305_v63, %v3988_v21  ;;  %v1686_v38 = vsub.f32 %v3988_v21, %v3985_v7  ;;  %v6359_v53 = vld [vmem:[#allocation47_spill] sm:$0xff] }
 0x165   :  { %v2071_v34 = vsel %vm1243_vm13, %v2046_v56, %v2021_v12  ;;  %v1045_v13 = vmul.f32 %v995_v10, %v3988_v21  ;;  %vm1145_vm15 = vcmp.ge.f32.partialorder %v995_v10, 0.0  ;;  %v1195_v58 = vadd.f32 %v995_v10, %v916_v8  ;;  %v418_v8 = vpop.permute.xlu1 %417  ;;  %v6361_v10 = vld [vmem:[#allocation45_spill] sm:$0xff] }
 0x166   :  { %v4530_v59 = vmax.f32 %v2071_v34, 0.0  ;;  %v1452_v6 = vmul.f32 %v1427_v4, %v1373_v47  ;;  %v1635_v27 = vmul.f32 %v1610_v54, %v1556_v26  ;;  %v1872_v23 = vmul.f32 %v6318_v57, %v1793_v50  ;;  %vm1170_vm0 = vmand %vm1120_vm14, %vm1145_vm15 }
 0x167   :  { %v4537_v12 = vadd.f32 %v1045_v13, %v1020_v11  ;;  %vm1220_vm1 = vcmp.le.f32.partialorder %v1195_v58, 1.0  ;;  %v1349_v0 = vmax.f32 %v1324_v60, 0.0  ;;  %v1532_v11 = vmax.f32 %v1507_v19, 0.0 }
 0x168   :  { %6356 = vst [vmem:[#allocation12_spill] sm:$0xff] %v4530_v59  ;;  %2412 = vmin.xlane.f32.xlu0 %v4530_v59  ;;  %v1477_v47 = vadd.f32 %v1452_v6, %v3999_v39  ;;  %v1660_v26 = vadd.f32 %v1635_v27, %v3999_v39  ;;  %v1922_v56 = vsub.f32 %v1872_v23, %v1897_v24  ;;  %vm4545_vm2 = vmand %vm1170_vm0, %vm1220_vm1  ;;  %v6360_v23 = vld [vmem:[#allocation44_spill] sm:$0xff]  ;;  %v6363_v59 = vld [vmem:[#allocation62_spill] sm:$0xff] }
 0x169   :  { %v1715_v34 = vadd.f32 %v6306_v32, %v1686_v38  ;;  %v1819_v4 = vsub.f32 %v6359_v53, %v1270_v52  ;;  %v1295_v54 = vadd.f32 %v3988_v21, %v3988_v21  ;;  %v1374_v13 = vmin.f32 %v1349_v0, 1.0 }
 0x16a   :  { %v1947_v7 = vmul.f32 %v1922_v56, %v1793_v50  ;;  %v451_v24 = vsub.f32 %v418_v8, %v3506_v31  ;;  %v1557_v58 = vmin.f32 %v1532_v11, 1.0  ;;  %v863_v60 = vmul.f32 %v6259_v14, %v6360_v23 }
 0x16b   :  { %v1744_v6 = vmul.f32 %v6308_v55, %v1715_v34  ;;  %v1844_v27 = vadd.f32 %v1819_v4, %v6307_v17  ;;  %v1403_v38 = vmul.f32 %v6307_v17, %v1374_v13  ;;  %v1898_v0 = vadd.f32 %v1715_v34, %v1715_v34 }
 0x16c   :  { %v1972_v19 = vadd.f32 %v1947_v7, %v1843_v20  ;;  %v551_v48 = vmul.f32 %v451_v24, %v451_v24  ;;  %v688_v50 = vmul.f32 %v6250_v40, %v451_v24  ;;  %v1586_v56 = vmul.f32 %v6309_v42, %v1557_v58 }
 0x16d   :  { %v1769_v21 = vmax.f32 %v1744_v6, 0.0  ;;  %v892_v31 = vmul.f32 %v6260_v49, %v6361_v10  ;;  %v1428_v11 = vsub.f32 %v1403_v38, %v1270_v52  ;;  %v4569_v2 = vmul.f32 %v6251_v36, %v451_v24 }
 0x16e   :  { %v1997_v8 = vmin.f32 %v1660_v26, %v1972_v19  ;;  %v4566_v4 = vadd.f32 %v688_v50, %v6362_v46  ;;  %v1611_v20 = vsub.f32 %v1586_v56, %v1295_v54  ;;  %v4572_v16 = vadd.f32 %v551_v48, %v6363_v59 }
 0x16f   :  { %v1794_v7 = vmin.f32 %v1769_v21, 1.0  ;;  %v917_v40 = vsub.f32 %v863_v60, %v892_v31  ;;  %v1453_v6 = vmul.f32 %v1428_v11, %v1374_v13  ;;  %v946_v52 = vmul.f32 %v6262_v35, %v6361_v10 }
 0x170   :  { %6364 = vst [vmem:[#allocation21_spill] sm:$0xff] %v4572_v16  ;;  %v2022_v44 = vmin.f32 %v1477_v47, %v1997_v8  ;;  %v4576_v34 = vadd.f32 %v4566_v4, %v4566_v4  ;;  %v1636_v46 = vmul.f32 %v1611_v20, %v1557_v58  ;;  %v971_v36 = vmul.f32 %v6260_v49, %v6360_v23 }
 0x171   :  { %v1873_v26 = vmul.f32 %v6318_v57, %v1794_v7  ;;  %v1021_v54 = vmul.f32 %v917_v40, %v6360_v23  ;;  %v6366_v48 = vsub.f32 %v3999_v39, %v4494_v62  ;;  %v1478_v47 = vadd.f32 %v1453_v6, %v6359_v53 }
 0x172   :  { %6365 = vst [vmem:[#allocation46_spill] sm:$0xff] %v4576_v34  ;;  %vm1121_vm3 = vcmp.ge.f32.partialorder %v917_v40, 0.0  ;;  %v1661_v24 = vadd.f32 %v1636_v46, %v6359_v53  ;;  %v996_v60 = vsub.f32 %v946_v52, %v971_v36  ;;  %v1271_v19 = vadd.f32 %v6360_v23, %v6360_v23  ;;  %v6370_v52 = vld [vmem:[#allocation43_spill] sm:$0xff] }
 0x173   :  { %v2047_v59 = vmin.f32 %v6366_v48, %v2022_v44  ;;  %v1923_v58 = vsub.f32 %v1873_v26, %v1898_v0  ;;  %v1296_v39 = vadd.f32 %v6361_v10, %v6361_v10  ;;  %v1325_v62 = vmul.f32 %v6300_v37, %v6360_v23  ;;  %v6371_v46 = vld [vmem:[#allocation39_spill] sm:$0xff] }
 0x174   :  { %v1508_v50 = vmul.f32 %v6305_v63, %v6361_v10  ;;  %v1046_v0 = vmul.f32 %v996_v60, %v6361_v10  ;;  %vm1146_vm4 = vcmp.ge.f32.partialorder %v996_v60, 0.0  ;;  %v1687_v11 = vsub.f32 %v6361_v10, %v6360_v23  ;;  %v6374_v23 = vld [vmem:[#allocation48_spill] sm:$0xff]  ;;  %v6388_v10 = vld [vmem:[#allocation51_spill] sm:$0xff] }
 0x175   :  { %v2072_v38 = vsel %vm4499_vm11, %v2047_v59, %v2022_v44  ;;  %v1948_v21 = vmul.f32 %v1923_v58, %v1794_v7  ;;  %vm4604_vm5 = vmand %vm1121_vm3, %vm1146_vm4  ;;  %v1196_v44 = vadd.f32 %v996_v60, %v917_v40  ;;  %v1350_v9 = vmax.f32 %v1325_v62, 0.0 }
 0x176   :  { %v4601_v56 = vmax.f32 %v2072_v38, 0.0  ;;  %v1533_v8 = vmax.f32 %v1508_v50, 0.0  ;;  %v4611_v6 = vadd.f32 %v1046_v0, %v1021_v54  ;;  %v1820_v7 = vsub.f32 %v6370_v52, %v1271_v19 }
 0x177   :  { %v1973_v20 = vadd.f32 %v1948_v21, %v1844_v27  ;;  %v864_v26 = vmul.f32 %v6259_v14, %v6371_v46  ;;  %vm1221_vm6 = vcmp.le.f32.partialorder %v1196_v44, 1.0  ;;  %v1375_v36 = vmin.f32 %v1350_v9, 1.0 }
 0x178   :  { %6367 = vst [vmem:[#allocation22_spill] sm:$0xff] %v4601_v56  ;;  %2414 = vmin.xlane.f32.xlu1 %v4601_v56  ;;  %v1558_v48 = vmin.f32 %v1533_v8, 1.0  ;;  %v1716_v40 = vadd.f32 %v6306_v32, %v1687_v11  ;;  %vm4621_vm7 = vmand %vm4604_vm5, %vm1221_vm6  ;;  %v1845_v27 = vadd.f32 %v1820_v7, %v6307_v17  ;;  %v893_v54 = vmul.f32 %v6260_v49, %v6374_v23 }
 0x179   :  { %v1998_v59 = vmin.f32 %v1661_v24, %v1973_v20  ;;  %v1404_v60 = vmul.f32 %v6307_v17, %v1375_v36  ;;  %v947_v0 = vmul.f32 %v6262_v35, %v6374_v23  ;;  %v972_v31 = vmul.f32 %v6260_v49, %v6371_v46 }
 0x17a   :  { %v1587_v38 = vmul.f32 %v6309_v42, %v1558_v48  ;;  %v1745_v24 = vmul.f32 %v6308_v55, %v1716_v40  ;;  %v1899_v62 = vadd.f32 %v1716_v40, %v1716_v40  ;;  %v918_v21 = vsub.f32 %v864_v26, %v893_v54 }
 0x17b   :  { %v2023_v50 = vmin.f32 %v1478_v47, %v1998_v59  ;;  %v1429_v44 = vsub.f32 %v1404_v60, %v1271_v19  ;;  %v1272_v11 = vadd.f32 %v6371_v46, %v6371_v46  ;;  %v6375_v20 = vsub.f32 %v6359_v53, %v4537_v12 }
 0x17c   :  { %v1612_v9 = vsub.f32 %v1587_v38, %v1296_v39  ;;  %v1770_v8 = vmax.f32 %v1745_v24, 0.0  ;;  %v997_v13 = vsub.f32 %v947_v0, %v972_v31  ;;  %v1022_v47 = vmul.f32 %v918_v21, %v6371_v46  ;;  %v6379_v0 = vld [vmem:[#allocation38_spill] sm:$0xff] }
 0x17d   :  { %v2048_v7 = vmin.f32 %v6375_v20, %v2023_v50  ;;  %vm1122_vm8 = vcmp.ge.f32.partialorder %v918_v21, 0.0  ;;  %v1454_v26 = vmul.f32 %v1429_v44, %v1375_v36  ;;  %v1297_v54 = vadd.f32 %v6374_v23, %v6374_v23  ;;  %v6380_v44 = vld [vmem:[#allocation40_spill] sm:$0xff] }
 0x17e   :  { %v1637_v40 = vmul.f32 %v1612_v9, %v1558_v48  ;;  %v1795_v59 = vmin.f32 %v1770_v8, 1.0  ;;  %v1047_v39 = vmul.f32 %v997_v13, %v6374_v23  ;;  %vm1147_vm9 = vcmp.ge.f32.partialorder %v997_v13, 0.0 }
 0x17f   :  { %v2073_v19 = vsel %vm4545_vm2, %v2048_v7, %v2023_v50  ;;  %v1197_v60 = vadd.f32 %v997_v13, %v918_v21  ;;  %v1479_v12 = vadd.f32 %v1454_v26, %v6370_v52  ;;  %vm1172_vm10 = vmand %vm1122_vm8, %vm1147_vm9  ;;  %v1326_v43 = vmul.f32 %v6300_v37, %v6371_v46 }
 0x180   :  { %v4646_v38 = vmax.f32 %v2073_v19, 0.0  ;;  %v1662_v53 = vadd.f32 %v1637_v40, %v6370_v52  ;;  %v1874_v36 = vmul.f32 %v6318_v57, %v1795_v59  ;;  %v4651_v48 = vadd.f32 %v1047_v39, %v1022_v47  ;;  %v6381_v47 = vld [vmem:[#allocation34_spill] sm:$0xff] }
 0x181   :  { %vm1222_vm11 = vcmp.le.f32.partialorder %v1197_v60, 1.0  ;;  %v1509_v24 = vmul.f32 %v6305_v63, %v6374_v23  ;;  %v1688_v21 = vsub.f32 %v6374_v23, %v6371_v46  ;;  %v1821_v31 = vsub.f32 %v6379_v0, %v1272_v11 }
 0x182   :  { %6376 = vst [vmem:[#allocation59_spill] sm:$0xff] %v4646_v38  ;;  %2416 = vmin.xlane.f32.xlu0 %v4646_v38  ;;  %v1924_v13 = vsub.f32 %v1874_v36, %v1899_v62  ;;  %vm4658_vm12 = vmand %vm1172_vm10, %vm1222_vm11  ;;  %v865_v9 = vmul.f32 %v6259_v14, %v6380_v44  ;;  %v1351_v20 = vmax.f32 %v1326_v43, 0.0  ;;  %v894_v62 = vmul.f32 %v6260_v49, %v6381_v47 }
 0x183   :  { %v1534_v7 = vmax.f32 %v1509_v24, 0.0  ;;  %v1717_v40 = vadd.f32 %v6306_v32, %v1688_v21  ;;  %v1846_v19 = vadd.f32 %v1821_v31, %v6307_v17  ;;  %v948_v46 = vmul.f32 %v6262_v35, %v6381_v47 }
 0x184   :  { %v1949_v26 = vmul.f32 %v1924_v13, %v1795_v59  ;;  %v1376_v23 = vmin.f32 %v1351_v20, 1.0  ;;  %v919_v60 = vsub.f32 %v865_v9, %v894_v62  ;;  %v973_v36 = vmul.f32 %v6260_v49, %v6380_v44 }
 0x185   :  { %v1559_v39 = vmin.f32 %v1534_v7, 1.0  ;;  %v1746_v43 = vmul.f32 %v6308_v55, %v1717_v40  ;;  %v1900_v24 = vadd.f32 %v1717_v40, %v1717_v40  ;;  %v1273_v59 = vadd.f32 %v6380_v44, %v6380_v44 }
 0x186   :  { %v1974_v8 = vadd.f32 %v1949_v26, %v1845_v27  ;;  %v1405_v13 = vmul.f32 %v6307_v17, %v1376_v23  ;;  %v998_v31 = vsub.f32 %v948_v46, %v973_v36  ;;  %v1023_v58 = vmul.f32 %v919_v60, %v6380_v44 }
 0x187   :  { %v1588_v21 = vmul.f32 %v6309_v42, %v1559_v39  ;;  %v1771_v7 = vmax.f32 %v1746_v43, 0.0  ;;  %vm1123_vm13 = vcmp.ge.f32.partialorder %v919_v60, 0.0  ;;  %v1298_v9 = vadd.f32 %v6381_v47, %v6381_v47 }
 0x188   :  { %v1999_v20 = vmin.f32 %v1662_v53, %v1974_v8  ;;  %v1430_v27 = vsub.f32 %v1405_v13, %v1272_v11  ;;  %v1048_v26 = vmul.f32 %v998_v31, %v6381_v47  ;;  %vm1148_vm14 = vcmp.ge.f32.partialorder %v998_v31, 0.0 }
 0x189   :  { %v1613_v62 = vsub.f32 %v1588_v21, %v1297_v54  ;;  %v1796_v56 = vmin.f32 %v1771_v7, 1.0  ;;  %vm1173_vm15 = vmand %vm1123_vm13, %vm1148_vm14  ;;  %v1198_v38 = vadd.f32 %v998_v31, %v919_v60  ;;  %v1327_v46 = vmul.f32 %v6300_v37, %v6380_v44 }
 0x18a   :  { %v2024_v40 = vmin.f32 %v1479_v12, %v1999_v20  ;;  %v1455_v36 = vmul.f32 %v1430_v27, %v1376_v23  ;;  %v4688_v53 = vadd.f32 %v1048_v26, %v1023_v58  ;;  %v1510_v8 = vmul.f32 %v6305_v63, %v6381_v47  ;;  %v6383_v23 = vld [vmem:[#allocation28_spill] sm:$0xff]  ;;  %v6387_v27 = vld [vmem:[#allocation50_spill] sm:$0xff] }
 0x18b   :  { %v1638_v29 = vmul.f32 %v1613_v62, %v1559_v39  ;;  %v6382_v11 = vsub.f32 %v6370_v52, %v4611_v6  ;;  %v1875_v43 = vmul.f32 %v6318_v57, %v1796_v56  ;;  %vm1223_vm0 = vcmp.le.f32.partialorder %v1198_v38, 1.0 }
 0x18c   :  { %v1352_v12 = vmax.f32 %v1327_v46, 0.0  ;;  %v1480_v60 = vadd.f32 %v1455_v36, %v6379_v0  ;;  %vm4700_vm1 = vmand %vm1173_vm15, %vm1223_vm0  ;;  %v1535_v21 = vmax.f32 %v1510_v8, 0.0  ;;  %v1689_v38 = vsub.f32 %v6381_v47, %v6380_v44 }
 0x18d   :  { %v2049_v54 = vmin.f32 %v6382_v11, %v2024_v40  ;;  %v1663_v13 = vadd.f32 %v1638_v29, %v6379_v0  ;;  %v1925_v52 = vsub.f32 %v1875_v43, %v1900_v24  ;;  %v1822_v29 = vsub.f32 %v6383_v23, %v1273_v59 }
 0x18e   :  { %v1377_v31 = vmin.f32 %v1352_v12, 1.0  ;;  %v1560_v7 = vmin.f32 %v1535_v21, 1.0  ;;  %v866_v62 = vmul.f32 %v6259_v14, %v6387_v27  ;;  %v1718_v36 = vadd.f32 %v6306_v32, %v1689_v38 }
 0x18f   :  { %v2074_v6 = vsel %vm4621_vm7, %v2049_v54, %v2024_v40  ;;  %v1950_v26 = vmul.f32 %v1925_v52, %v1796_v56  ;;  %v895_v24 = vmul.f32 %v6260_v49, %v6388_v10  ;;  %v1847_v47 = vadd.f32 %v1822_v29, %v6307_v17 }
 0x190   :  { %v4708_v20 = vmax.f32 %v2074_v6, 0.0  ;;  %v1406_v46 = vmul.f32 %v6307_v17, %v1377_v31  ;;  %v1589_v44 = vmul.f32 %v6309_v42, %v1560_v7  ;;  %v949_v40 = vmul.f32 %v6262_v35, %v6388_v10 }
 0x191   :  { %v974_v8 = vmul.f32 %v6260_v49, %v6387_v27  ;;  %v1975_v56 = vadd.f32 %v1950_v26, %v1846_v19  ;;  %v1747_v54 = vmul.f32 %v6308_v55, %v1718_v36  ;;  %v1901_v43 = vadd.f32 %v1718_v36, %v1718_v36 }
 0x192   :  { %6386 = vst [vmem:[#allocation15_spill] sm:$0xff] %v4708_v20  ;;  %2418 = vmin.xlane.f32.xlu1 %v4708_v20  ;;  %v1431_v11 = vsub.f32 %v1406_v46, %v1273_v59  ;;  %v1614_v12 = vsub.f32 %v1589_v44, %v1298_v9  ;;  %v920_v21 = vsub.f32 %v866_v62, %v895_v24 }
 0x193   :  { %v999_v6 = vsub.f32 %v949_v40, %v974_v8  ;;  %v1274_v52 = vadd.f32 %v6387_v27, %v6387_v27  ;;  %v2000_v38 = vmin.f32 %v1663_v13, %v1975_v56  ;;  %v1772_v29 = vmax.f32 %v1747_v54, 0.0 }
 0x194   :  { %v1456_v39 = vmul.f32 %v1431_v11, %v1377_v31  ;;  %v1299_v20 = vadd.f32 %v6388_v10, %v6388_v10  ;;  %v1639_v34 = vmul.f32 %v1614_v12, %v1560_v7  ;;  %v1024_v16 = vmul.f32 %v920_v21, %v6387_v27  ;;  %v6394_v12 = vld [vmem:[#allocation53_spill] sm:$0xff] }
 0x195   :  { %v1049_v19 = vmul.f32 %v999_v6, %v6388_v10  ;;  %vm1124_vm2 = vcmp.ge.f32.partialorder %v920_v21, 0.0  ;;  %v2025_v59 = vmin.f32 %v1480_v60, %v2000_v38  ;;  %v1797_v62 = vmin.f32 %v1772_v29, 1.0 }
 0x196   :  { %v1481_v9 = vadd.f32 %v1456_v39, %v6383_v23  ;;  %vm1149_vm3 = vcmp.ge.f32.partialorder %v999_v6, 0.0  ;;  %v1664_v26 = vadd.f32 %v1639_v34, %v6383_v23  ;;  %v1199_v13 = vadd.f32 %v999_v6, %v920_v21 }
 0x197   :  { %v4733_v46 = vadd.f32 %v1049_v19, %v1024_v16  ;;  %vm1174_vm4 = vmand %vm1124_vm2, %vm1149_vm3  ;;  %v1328_v31 = vmul.f32 %v6300_v37, %v6387_v27  ;;  %v6389_v7 = vsub.f32 %v6379_v0, %v4651_v48  ;;  %v1876_v24 = vmul.f32 %v6318_v57, %v1797_v62  ;;  %v6390_v16 = vld [vmem:[#allocation49_spill] sm:$0xff]  ;;  %v6395_v19 = vld [vmem:[#allocation54_spill] sm:$0xff] }
 0x198   :  { %v1511_v60 = vmul.f32 %v6305_v63, %v6388_v10  ;;  %v1690_v39 = vsub.f32 %v6388_v10, %v6387_v27  ;;  %vm1224_vm5 = vcmp.le.f32.partialorder %v1199_v13, 1.0  ;;  %v1823_v40 = vsub.f32 %v6390_v16, %v1274_v52 }
 0x199   :  { %v2050_v36 = vmin.f32 %v6389_v7, %v2025_v59  ;;  %v1353_v44 = vmax.f32 %v1328_v31, 0.0  ;;  %v1926_v48 = vsub.f32 %v1876_v24, %v1901_v43  ;;  %vm4750_vm6 = vmand %vm1174_vm4, %vm1224_vm5  ;;  %v867_v21 = vmul.f32 %v6259_v14, %v6394_v12 }
 0x19a   :  { %v1536_v56 = vmax.f32 %v1511_v60, 0.0  ;;  %v1719_v11 = vadd.f32 %v6306_v32, %v1690_v39  ;;  %v1848_v10 = vadd.f32 %v1823_v40, %v6307_v17  ;;  %v950_v13 = vmul.f32 %v6262_v35, %v6395_v19 }
 0x19b   :  { %v2075_v8 = vsel %vm4658_vm12, %v2050_v36, %v2025_v59  ;;  %v1378_v27 = vmin.f32 %v1353_v44, 1.0  ;;  %v1951_v6 = vmul.f32 %v1926_v48, %v1797_v62  ;;  %v896_v59 = vmul.f32 %v6260_v49, %v6395_v19 }
 0x19c   :  { %v4755_v54 = vmax.f32 %v2075_v8, 0.0  ;;  %v1561_v38 = vmin.f32 %v1536_v56, 1.0  ;;  %v1748_v50 = vmul.f32 %v6308_v55, %v1719_v11  ;;  %v1902_v43 = vadd.f32 %v1719_v11, %v1719_v11 }
 0x19d   :  { %v1407_v29 = vmul.f32 %v6307_v17, %v1378_v27  ;;  %v975_v31 = vmul.f32 %v6260_v49, %v6394_v12  ;;  %v1976_v7 = vadd.f32 %v1951_v6, %v1847_v47  ;;  %v1275_v24 = vadd.f32 %v6394_v12, %v6394_v12 }
 0x19e   :  { %6393 = vst [vmem:[#allocation16_spill] sm:$0xff] %v4755_v54  ;;  %2420 = vmin.xlane.f32.xlu0 %v4755_v54  ;;  %v1590_v62 = vmul.f32 %v6309_v42, %v1561_v38  ;;  %v1773_v36 = vmax.f32 %v1748_v50, 0.0  ;;  %v921_v39 = vsub.f32 %v867_v21, %v896_v59  ;;  %v1300_v40 = vadd.f32 %v6395_v19, %v6395_v19 }
 0x19f   :  { %v1432_v60 = vsub.f32 %v1407_v29, %v1274_v52  ;;  %v1000_v44 = vsub.f32 %v950_v13, %v975_v31  ;;  %v2001_v8 = vmin.f32 %v1664_v26, %v1976_v7  ;;  %v1329_v11 = vmul.f32 %v6300_v37, %v6394_v12 }
 0x1a0   :  { %v1615_v48 = vsub.f32 %v1590_v62, %v1299_v20  ;;  %v1798_v56 = vmin.f32 %v1773_v36, 1.0  ;;  %v1025_v47 = vmul.f32 %v921_v39, %v6394_v12  ;;  %vm1125_vm7 = vcmp.ge.f32.partialorder %v921_v39, 0.0 }
 0x1a1   :  { %v1457_v34 = vmul.f32 %v1432_v60, %v1378_v27  ;;  %v1050_v6 = vmul.f32 %v1000_v44, %v6395_v19  ;;  %v2026_v50 = vmin.f32 %v1481_v9, %v2001_v8  ;;  %vm1150_vm8 = vcmp.ge.f32.partialorder %v1000_v44, 0.0  ;;  %v6400_v8 = vld [vmem:[#allocation56_spill] sm:$0xff] }
 0x1a2   :  { %v1640_v54 = vmul.f32 %v1615_v48, %v1561_v38  ;;  %v1877_v52 = vmul.f32 %v6318_v57, %v1798_v56  ;;  %vm1175_vm9 = vmand %vm1125_vm7, %vm1150_vm8  ;;  %v1200_v20 = vadd.f32 %v1000_v44, %v921_v39  ;;  %v1354_v26 = vmax.f32 %v1329_v11, 0.0  ;;  %v6397_v38 = vld [vmem:[#allocation52_spill] sm:$0xff] }
 0x1a3   :  { %v1482_v21 = vadd.f32 %v1457_v34, %v6390_v16  ;;  %v4780_v29 = vadd.f32 %v1050_v6, %v1025_v47  ;;  %v6396_v27 = vsub.f32 %v6383_v23, %v4688_v53  ;;  %v1512_v9 = vmul.f32 %v6305_v63, %v6395_v19 }
 0x1a4   :  { %v1665_v13 = vadd.f32 %v1640_v54, %v6390_v16  ;;  %v1927_v31 = vsub.f32 %v1877_v52, %v1902_v43  ;;  %vm1225_vm10 = vcmp.le.f32.partialorder %v1200_v20, 1.0  ;;  %v1379_v34 = vmin.f32 %v1354_v26, 1.0 }
 0x1a5   :  { %v2051_v59 = vmin.f32 %v6396_v27, %v2026_v50  ;;  %v1100_v7 = vsub.f32 %v6397_v38, %v4780_v29  ;;  %v1691_v62 = vsub.f32 %v6395_v19, %v6394_v12  ;;  %vm4794_vm11 = vmand %vm1175_vm9, %vm1225_vm10  ;;  %v1537_v23 = vmax.f32 %v1512_v9, 0.0 }
 0x1a6   :  { %v1952_v60 = vmul.f32 %v1927_v31, %v1798_v56  ;;  %v1824_v54 = vsub.f32 %v6397_v38, %v1275_v24  ;;  %v1408_v39 = vmul.f32 %v6307_v17, %v1379_v34  ;;  %v868_v12 = vmul.f32 %v6259_v14, %v6400_v8  ;;  %v6401_v56 = vld [vmem:[#allocation6_spill] sm:$0xff] }
 0x1a7   :  { %v2076_v36 = vsel %vm4700_vm1, %v2051_v59, %v2026_v50  ;;  %v1720_v44 = vadd.f32 %v6306_v32, %v1691_v62  ;;  %v1562_v58 = vmin.f32 %v1537_v23, 1.0  ;;  %v897_v11 = vmul.f32 %v6260_v49, %v6401_v56 }
 0x1a8   :  { %v4799_v43 = vmax.f32 %v2076_v36, 0.0  ;;  %v1977_v19 = vadd.f32 %v1952_v60, %v1848_v10  ;;  %v1849_v48 = vadd.f32 %v1824_v54, %v6307_v17  ;;  %v1433_v47 = vsub.f32 %v1408_v39, %v1275_v24 }
 0x1a9   :  { %v1749_v6 = vmul.f32 %v6308_v55, %v1720_v44  ;;  %v1903_v50 = vadd.f32 %v1720_v44, %v1720_v44  ;;  %v951_v52 = vmul.f32 %v6262_v35, %v6401_v56  ;;  %v1591_v26 = vmul.f32 %v6309_v42, %v1562_v58 }
 0x1aa   :  { %2422 = vmin.xlane.f32.xlu1 %v4799_v43  ;;  %v2002_v20 = vmin.f32 %v1665_v13, %v1977_v19  ;;  %v922_v27 = vsub.f32 %v868_v12, %v897_v11  ;;  %v976_v10 = vmul.f32 %v6260_v49, %v6400_v8  ;;  %v1458_v59 = vmul.f32 %v1433_v47, %v1379_v34 }
 0x1ab   :  { %v1774_v31 = vmax.f32 %v1749_v6, 0.0  ;;  %v1276_v9 = vadd.f32 %v6400_v8, %v6400_v8  ;;  %v1301_v24 = vadd.f32 %v6401_v56, %v6401_v56  ;;  %v1616_v36 = vsub.f32 %v1591_v26, %v1300_v40 }
 0x1ac   :  { %v2027_v62 = vmin.f32 %v1482_v21, %v2002_v20  ;;  %v1001_v60 = vsub.f32 %v951_v52, %v976_v10  ;;  %v1026_v23 = vmul.f32 %v922_v27, %v6400_v8  ;;  %v1483_v13 = vadd.f32 %v1458_v59, %v6397_v38 }
 0x1ad   :  { %v1799_v54 = vmin.f32 %v1774_v31, 1.0  ;;  %vm1126_vm12 = vcmp.ge.f32.partialorder %v922_v27, 0.0  ;;  %v1330_v39 = vmul.f32 %v6300_v37, %v6400_v8  ;;  %v6402_v34 = vsub.f32 %v6390_v16, %v4733_v46 }
 0x1ae   :  { %v1641_v12 = vmul.f32 %v1616_v36, %v1562_v58  ;;  %v1051_v19 = vmul.f32 %v1001_v60, %v6401_v56  ;;  %vm1151_vm13 = vcmp.ge.f32.partialorder %v1001_v60, 0.0  ;;  %v1201_v21 = vadd.f32 %v1001_v60, %v922_v27  ;;  %v6403_v27 = vld [vmem:[#allocation55_spill] sm:$0xff]  ;;  %v6407_v60 = vld [vmem:[#allocation5_spill] sm:$0xff] }
 0x1af   :  { %v2052_v44 = vmin.f32 %v6402_v34, %v2027_v62  ;;  %v1878_v40 = vmul.f32 %v6318_v57, %v1799_v54  ;;  %vm1176_vm14 = vmand %vm1126_vm12, %vm1151_vm13  ;;  %v1355_v11 = vmax.f32 %v1330_v39, 0.0  ;;  %v1513_v47 = vmul.f32 %v6305_v63, %v6401_v56 }
 0x1b0   :  { %v1666_v52 = vadd.f32 %v1641_v12, %v6397_v38  ;;  %v4833_v20 = vadd.f32 %v1051_v19, %v1026_v23  ;;  %v1692_v46 = vsub.f32 %v6401_v56, %v6400_v8  ;;  %vm1226_vm15 = vcmp.le.f32.partialorder %v1201_v21, 1.0 }
 0x1b1   :  { %v2077_v6 = vsel %vm4750_vm6, %v2052_v44, %v2027_v62  ;;  %v1928_v58 = vsub.f32 %v1878_v40, %v1903_v50  ;;  %v1380_v26 = vmin.f32 %v1355_v11, 1.0  ;;  %vm4841_vm0 = vmand %vm1176_vm14, %vm1226_vm15  ;;  %v1538_v0 = vmax.f32 %v1513_v47, 0.0  ;;  %v6406_v50 = vld [vmem:[#allocation4_spill] sm:$0xff] }
 0x1b2   :  { %v4837_v16 = vmax.f32 %v2077_v6, 0.0  ;;  %v1101_v10 = vsub.f32 %v6403_v27, %v4833_v20  ;;  %v1721_v31 = vadd.f32 %v6306_v32, %v1692_v46  ;;  %v1825_v62 = vsub.f32 %v6403_v27, %v1276_v9 }
 0x1b3   :  { %v1953_v8 = vmul.f32 %v1928_v58, %v1799_v54  ;;  %v1409_v56 = vmul.f32 %v6307_v17, %v1380_v26  ;;  %v869_v36 = vmul.f32 %v6259_v14, %v6406_v50  ;;  %v898_v23 = vmul.f32 %v6260_v49, %v6407_v60 }
 0x1b4   :  { %2424 = vmin.xlane.f32.xlu0 %v4837_v16  ;;  %v1563_v39 = vmin.f32 %v1538_v0, 1.0  ;;  %v1750_v34 = vmul.f32 %v6308_v55, %v1721_v31  ;;  %v1850_v44 = vadd.f32 %v1825_v62, %v6307_v17  ;;  %v1904_v12 = vadd.f32 %v1721_v31, %v1721_v31 }
 0x1b5   :  { %v1978_v19 = vadd.f32 %v1953_v8, %v1849_v48  ;;  %v1434_v40 = vsub.f32 %v1409_v56, %v1276_v9  ;;  %v923_v21 = vsub.f32 %v869_v36, %v898_v23  ;;  %v952_v54 = vmul.f32 %v6262_v35, %v6407_v60 }
 0x1b6   :  { %v1592_v11 = vmul.f32 %v6309_v42, %v1563_v39  ;;  %v1775_v47 = vmax.f32 %v1750_v34, 0.0  ;;  %v977_v6 = vmul.f32 %v6260_v49, %v6406_v50  ;;  %v1277_v46 = vadd.f32 %v6406_v50, %v6406_v50 }
 0x1b7   :  { %v2003_v58 = vmin.f32 %v1666_v52, %v1978_v19  ;;  %v1459_v0 = vmul.f32 %v1434_v40, %v1380_v26  ;;  %v1027_v62 = vmul.f32 %v923_v21, %v6406_v50  ;;  %vm1127_vm1 = vcmp.ge.f32.partialorder %v923_v21, 0.0 }
 0x1b8   :  { %v1617_v48 = vsub.f32 %v1592_v11, %v1301_v24  ;;  %v1800_v9 = vmin.f32 %v1775_v47, 1.0  ;;  %v1002_v31 = vsub.f32 %v952_v54, %v977_v6  ;;  %v1302_v8 = vadd.f32 %v6407_v60, %v6407_v60 }
 0x1b9   :  { %v2028_v56 = vmin.f32 %v1483_v13, %v2003_v58  ;;  %v1484_v36 = vadd.f32 %v1459_v0, %v6403_v27  ;;  %v1331_v23 = vmul.f32 %v6300_v37, %v6406_v50  ;;  %v1514_v34 = vmul.f32 %v6305_v63, %v6407_v60 }
 0x1ba   :  { %v1642_v52 = vmul.f32 %v1617_v48, %v1563_v39  ;;  %v1879_v26 = vmul.f32 %v6318_v57, %v1800_v9  ;;  %v1052_v19 = vmul.f32 %v1002_v31, %v6407_v60  ;;  %vm1152_vm2 = vcmp.ge.f32.partialorder %v1002_v31, 0.0 }
 0x1bb   :  { %v2053_v24 = vmin.f32 %v1100_v7, %v2028_v56  ;;  %vm4875_vm3 = vmand %vm1127_vm1, %vm1152_vm2  ;;  %v1202_v40 = vadd.f32 %v1002_v31, %v923_v21  ;;  %v1356_v54 = vmax.f32 %v1331_v23, 0.0  ;;  %v1539_v11 = vmax.f32 %v1514_v34, 0.0  ;;  %v6410_v21 = vld [vmem:[#allocation27_spill] sm:$0xff] }
 0x1bc   :  { %v1667_v47 = vadd.f32 %v1642_v52, %v6403_v27  ;;  %v1929_v6 = vsub.f32 %v1879_v26, %v1904_v12  ;;  %v4880_v39 = vadd.f32 %v1052_v19, %v1027_v62  ;;  %v1693_v58 = vsub.f32 %v6407_v60, %v6406_v50  ;;  %v6414_v26 = vld [vmem:[#allocation10_spill] sm:$0xff] }
 0x1bd   :  { %v2078_v0 = vsel %vm4794_vm11, %v2053_v24, %v2028_v56  ;;  %vm1227_vm4 = vcmp.le.f32.partialorder %v1202_v40, 1.0  ;;  %v1381_v29 = vmin.f32 %v1356_v54, 1.0  ;;  %v1564_v38 = vmin.f32 %v1539_v11, 1.0  ;;  %v6413_v56 = vld [vmem:[#allocation9_spill] sm:$0xff] }
 0x1be   :  { %v4886_v7 = vmax.f32 %v2078_v0, 0.0  ;;  %v1954_v48 = vmul.f32 %v1929_v6, %v1800_v9  ;;  %vm4892_vm5 = vmand %vm4875_vm3, %vm1227_vm4  ;;  %v1722_v50 = vadd.f32 %v6306_v32, %v1693_v58  ;;  %v1826_v62 = vsub.f32 %v6410_v21, %v1277_v46 }
 0x1bf   :  { %v1410_v53 = vmul.f32 %v6307_v17, %v1381_v29  ;;  %v1593_v60 = vmul.f32 %v6309_v42, %v1564_v38  ;;  %v870_v9 = vmul.f32 %v6259_v14, %v6413_v56  ;;  %v899_v19 = vmul.f32 %v6260_v49, %v6414_v26 }
 0x1c0   :  { %2426 = vmin.xlane.f32.xlu1 %v4886_v7  ;;  %v1979_v23 = vadd.f32 %v1954_v48, %v1850_v44  ;;  %v1751_v34 = vmul.f32 %v6308_v55, %v1722_v50  ;;  %v1905_v52 = vadd.f32 %v1722_v50, %v1722_v50  ;;  %v1851_v40 = vadd.f32 %v1826_v62, %v6307_v17 }
 0x1c1   :  { %v1435_v24 = vsub.f32 %v1410_v53, %v1277_v46  ;;  %v1618_v13 = vsub.f32 %v1593_v60, %v1302_v8  ;;  %v953_v54 = vmul.f32 %v6262_v35, %v6414_v26  ;;  %v924_v58 = vsub.f32 %v870_v9, %v899_v19 }
 0x1c2   :  { %v2004_v11 = vmin.f32 %v1667_v47, %v1979_v23  ;;  %v1776_v6 = vmax.f32 %v1751_v34, 0.0  ;;  %v978_v0 = vmul.f32 %v6260_v49, %v6413_v56  ;;  %v1278_v50 = vadd.f32 %v6413_v56, %v6413_v56 }
 0x1c3   :  { %v1460_v44 = vmul.f32 %v1435_v24, %v1381_v29  ;;  %v1643_v48 = vmul.f32 %v1618_v13, %v1564_v38  ;;  %v1303_v46 = vadd.f32 %v6414_v26, %v6414_v26  ;;  %v1028_v62 = vmul.f32 %v924_v58, %v6413_v56 }
 0x1c4   :  { %v2029_v8 = vmin.f32 %v1484_v36, %v2004_v11  ;;  %v1801_v53 = vmin.f32 %v1776_v6, 1.0  ;;  %v1003_v60 = vsub.f32 %v953_v54, %v978_v0  ;;  %vm1128_vm6 = vcmp.ge.f32.partialorder %v924_v58, 0.0  ;;  %v6417_v11 = vld [vmem:[#allocation64_spill] sm:$0xff] }
 0x1c5   :  { %v1485_v47 = vadd.f32 %v1460_v44, %v6410_v21  ;;  %v1668_v9 = vadd.f32 %v1643_v48, %v6410_v21  ;;  %v1332_v29 = vmul.f32 %v6300_v37, %v6413_v56  ;;  %v1515_v13 = vmul.f32 %v6305_v63, %v6414_v26 }
 0x1c6   :  { %v2054_v38 = vmin.f32 %v1101_v10, %v2029_v8  ;;  %v1880_v23 = vmul.f32 %v6318_v57, %v1801_v53  ;;  %v1053_v36 = vmul.f32 %v1003_v60, %v6414_v26  ;;  %vm1153_vm7 = vcmp.ge.f32.partialorder %v1003_v60, 0.0 }
 0x1c7   :  { %vm4925_vm8 = vmand %vm1128_vm6, %vm1153_vm7  ;;  %v1203_v19 = vadd.f32 %v1003_v60, %v924_v58  ;;  %v1357_v24 = vmax.f32 %v1332_v29, 0.0  ;;  %v1694_v54 = vsub.f32 %v6414_v26, %v6413_v56  ;;  %v1827_v6 = vsub.f32 %v6417_v11, %v1278_v50  ;;  %v6421_v29 = vld [vmem:[#allocation32_spill] sm:$0xff] }
 0x1c8   :  { %v2079_v20 = vsel %vm4841_vm0, %v2054_v38, %v2029_v8  ;;  %v1930_v27 = vsub.f32 %v1880_v23, %v1905_v52  ;;  %v4935_v10 = vadd.f32 %v1053_v36, %v1028_v62  ;;  %v1540_v58 = vmax.f32 %v1515_v13, 0.0  ;;  %v6420_v62 = vld [vmem:[#allocation36_spill] sm:$0xff] }
 0x1c9   :  { %v4938_v0 = vmax.f32 %v2079_v20, 0.0  ;;  %vm1228_vm9 = vcmp.le.f32.partialorder %v1203_v19, 1.0  ;;  %v1382_v44 = vmin.f32 %v1357_v24, 1.0  ;;  %v1723_v59 = vadd.f32 %v6306_v32, %v1694_v54 }
 0x1ca   :  { %v1955_v48 = vmul.f32 %v1930_v27, %v1801_v53  ;;  %vm4944_vm10 = vmand %vm4925_vm8, %vm1228_vm9  ;;  %v1852_v52 = vadd.f32 %v1827_v6, %v6307_v17  ;;  %v1565_v8 = vmin.f32 %v1540_v58, 1.0  ;;  %v871_v53 = vmul.f32 %v6259_v14, %v6420_v62 }
 0x1cb   :  { %2428 = vmin.xlane.f32.xlu0 %v4938_v0  ;;  %v1411_v26 = vmul.f32 %v6307_v17, %v1382_v44  ;;  %v900_v38 = vmul.f32 %v6260_v49, %v6421_v29  ;;  %v1752_v36 = vmul.f32 %v6308_v55, %v1723_v59  ;;  %v1906_v34 = vadd.f32 %v1723_v59, %v1723_v59 }
 0x1cc   :  { %v1980_v23 = vadd.f32 %v1955_v48, %v1851_v40  ;;  %v954_v19 = vmul.f32 %v6262_v35, %v6421_v29  ;;  %v1594_v13 = vmul.f32 %v6309_v42, %v1565_v8  ;;  %v979_v20 = vmul.f32 %v6260_v49, %v6420_v62 }
 0x1cd   :  { %v1436_v24 = vsub.f32 %v1411_v26, %v1278_v50  ;;  %v925_v54 = vsub.f32 %v871_v53, %v900_v38  ;;  %v1777_v6 = vmax.f32 %v1752_v36, 0.0  ;;  %v1279_v58 = vadd.f32 %v6420_v62, %v6420_v62 }
 0x1ce   :  { %v2005_v27 = vmin.f32 %v1668_v9, %v1980_v23  ;;  %v1304_v40 = vadd.f32 %v6421_v29, %v6421_v29  ;;  %v1619_v59 = vsub.f32 %v1594_v13, %v1303_v46  ;;  %v1004_v60 = vsub.f32 %v954_v19, %v979_v20 }
 0x1cf   :  { %v1461_v48 = vmul.f32 %v1436_v24, %v1382_v44  ;;  %v1029_v31 = vmul.f32 %v925_v54, %v6420_v62  ;;  %v1802_v26 = vmin.f32 %v1777_v6, 1.0  ;;  %vm1129_vm11 = vcmp.ge.f32.partialorder %v925_v54, 0.0 }
 0x1d0   :  { %v2030_v50 = vmin.f32 %v1485_v47, %v2005_v27  ;;  %v1333_v53 = vmul.f32 %v6300_v37, %v6420_v62  ;;  %v1644_v38 = vmul.f32 %v1619_v59, %v1565_v8  ;;  %v1054_v23 = vmul.f32 %v1004_v60, %v6421_v29 }
 0x1d1   :  { %v1486_v9 = vadd.f32 %v1461_v48, %v6417_v11  ;;  %vm1154_vm12 = vcmp.ge.f32.partialorder %v1004_v60, 0.0  ;;  %v6422_v36 = vsub.f32 %v6410_v21, %v4880_v39  ;;  %v1881_v46 = vmul.f32 %v6318_v57, %v1802_v26 }
 0x1d2   :  { %vm1179_vm13 = vmand %vm1129_vm11, %vm1154_vm12  ;;  %v1204_v19 = vadd.f32 %v1004_v60, %v925_v54  ;;  %v1358_v47 = vmax.f32 %v1333_v53, 0.0  ;;  %v1669_v24 = vadd.f32 %v1644_v38, %v6417_v11  ;;  %v4976_v13 = vadd.f32 %v1054_v23, %v1029_v31  ;;  %v6424_v60 = vld [vmem:[#allocation14_spill] sm:$0xff] }
 0x1d3   :  { %v2055_v44 = vmin.f32 %v6422_v36, %v2030_v50  ;;  %v1516_v20 = vmul.f32 %v6305_v63, %v6421_v29  ;;  %v1695_v8 = vsub.f32 %v6421_v29, %v6420_v62  ;;  %v1931_v39 = vsub.f32 %v1881_v46, %v1906_v34  ;;  %v6427_v29 = vld [vmem:[#allocation41_spill] sm:$0xff] }
 0x1d4   :  { %vm1229_vm14 = vcmp.le.f32.partialorder %v1204_v19, 1.0  ;;  %v1383_v21 = vmin.f32 %v1358_v47, 1.0  ;;  %v1828_v12 = vsub.f32 %v6424_v60, %v1279_v58  ;;  %v872_v34 = vmul.f32 %v6259_v14, %v6427_v29  ;;  %v6428_v36 = vld [vmem:[#allocation13_spill] sm:$0xff] }
 0x1d5   :  { %v2080_v27 = vsel %vm4892_vm5, %v2055_v44, %v2030_v50  ;;  %vm4988_vm15 = vmand %vm1179_vm13, %vm1229_vm14  ;;  %v1541_v48 = vmax.f32 %v1516_v20, 0.0  ;;  %v1724_v59 = vadd.f32 %v6306_v32, %v1695_v8  ;;  %v1956_v53 = vmul.f32 %v1931_v39, %v1802_v26 }
 0x1d6   :  { %v4984_v6 = vmax.f32 %v2080_v27, 0.0  ;;  %v1412_v62 = vmul.f32 %v6307_v17, %v1383_v21  ;;  %v901_v44 = vmul.f32 %v6260_v49, %v6428_v36  ;;  %v1853_v26 = vadd.f32 %v1828_v12, %v6307_v17 }
 0x1d7   :  { %v1566_v50 = vmin.f32 %v1541_v48, 1.0  ;;  %v1753_v38 = vmul.f32 %v6308_v55, %v1724_v59  ;;  %v1907_v23 = vadd.f32 %v1724_v59, %v1724_v59  ;;  %v1981_v46 = vadd.f32 %v1956_v53, %v1852_v52 }
 0x1d8   :  { %6423 = vst [vmem:[#allocation61_spill] sm:$0xff] %v4984_v6  ;;  %2430 = vmin.xlane.f32.xlu1 %v4984_v6  ;;  %v1437_v19 = vsub.f32 %v1412_v62, %v1279_v58  ;;  %v955_v47 = vmul.f32 %v6262_v35, %v6428_v36  ;;  %v926_v27 = vsub.f32 %v872_v34, %v901_v44 }
 0x1d9   :  { %v1595_v20 = vmul.f32 %v6309_v42, %v1566_v50  ;;  %v1778_v8 = vmax.f32 %v1753_v38, 0.0  ;;  %v980_v39 = vmul.f32 %v6260_v49, %v6427_v29  ;;  %v2006_v48 = vmin.f32 %v1669_v24, %v1981_v46 }
 0x1da   :  { %v1462_v54 = vmul.f32 %v1437_v19, %v1383_v21  ;;  %v1280_v59 = vadd.f32 %v6427_v29, %v6427_v29  ;;  %v1305_v52 = vadd.f32 %v6428_v36, %v6428_v36  ;;  %v1030_v12 = vmul.f32 %v926_v27, %v6427_v29 }
 0x1db   :  { %v1620_v58 = vsub.f32 %v1595_v20, %v1304_v40  ;;  %v1803_v53 = vmin.f32 %v1778_v8, 1.0  ;;  %v1005_v62 = vsub.f32 %v955_v47, %v980_v39  ;;  %v2031_v6 = vmin.f32 %v1486_v9, %v2006_v48 }
 0x1dc   :  { %v1487_v38 = vadd.f32 %v1462_v54, %v6424_v60  ;;  %vm1130_vm0 = vcmp.ge.f32.partialorder %v926_v27, 0.0  ;;  %v1334_v34 = vmul.f32 %v6300_v37, %v6427_v29  ;;  %v6429_v40 = vsub.f32 %v6417_v11, %v4935_v10 }
 0x1dd   :  { %v1645_v24 = vmul.f32 %v1620_v58, %v1566_v50  ;;  %v1882_v21 = vmul.f32 %v6318_v57, %v1803_v53  ;;  %v1055_v44 = vmul.f32 %v1005_v62, %v6428_v36  ;;  %vm1155_vm1 = vcmp.ge.f32.partialorder %v1005_v62, 0.0 }
 0x1de   :  { %v2056_v46 = vmin.f32 %v6429_v40, %v2031_v6  ;;  %vm5020_vm2 = vmand %vm1130_vm0, %vm1155_vm1  ;;  %v1205_v9 = vadd.f32 %v1005_v62, %v926_v27  ;;  %v1359_v54 = vmax.f32 %v1334_v34, 0.0  ;;  %v1517_v47 = vmul.f32 %v6305_v63, %v6428_v36  ;;  %v6432_v62 = vld [vmem:[#allocation65_spill] sm:$0xff] }
 0x1df   :  { %v1670_v50 = vadd.f32 %v1645_v24, %v6424_v60  ;;  %v1932_v20 = vsub.f32 %v1882_v21, %v1907_v23  ;;  %v5027_v8 = vadd.f32 %v1055_v44, %v1030_v12  ;;  %v1696_v39 = vsub.f32 %v6428_v36, %v6427_v29 }
 0x1e0   :  { %v2081_v10 = vsel %vm4944_vm10, %v2056_v46, %v2031_v6  ;;  %vm1230_vm3 = vcmp.le.f32.partialorder %v1205_v9, 1.0  ;;  %v1384_v11 = vmin.f32 %v1359_v54, 1.0  ;;  %v1542_v48 = vmax.f32 %v1517_v47, 0.0 }
 0x1e1   :  { %v5033_v58 = vmax.f32 %v2081_v10, 0.0  ;;  %v1957_v27 = vmul.f32 %v1932_v20, %v1803_v53  ;;  %v1105_v34 = vsub.f32 %v6432_v62, %v5027_v8  ;;  %vm5039_vm4 = vmand %vm5020_vm2, %vm1230_vm3  ;;  %v1725_v29 = vadd.f32 %v6306_v32, %v1696_v39 }
 0x1e2   :  { %v1413_v56 = vmul.f32 %v6307_v17, %v1384_v11  ;;  %v1567_v6 = vmin.f32 %v1542_v48, 1.0  ;;  %v1829_v36 = vsub.f32 %v6432_v62, %v1280_v59  ;;  %v873_v12 = vmul.f32 %v6259_v14, %v4257_v25 }
 0x1e3   :  { %2432 = vmin.xlane.f32.xlu0 %v5033_v58  ;;  %v1982_v53 = vadd.f32 %v1957_v27, %v1853_v26  ;;  %v1754_v24 = vmul.f32 %v6308_v55, %v1725_v29  ;;  %v1908_v21 = vadd.f32 %v1725_v29, %v1725_v29  ;;  %v902_v44 = vmul.f32 %v6260_v49, %v4269_v5 }
 0x1e4   :  { %v1438_v40 = vsub.f32 %v1413_v56, %v1280_v59  ;;  %v1596_v46 = vmul.f32 %v6309_v42, %v1567_v6  ;;  %v1854_v19 = vadd.f32 %v1829_v36, %v6307_v17  ;;  %v956_v9 = vmul.f32 %v6262_v35, %v4269_v5 }
 0x1e5   :  { %v2007_v54 = vmin.f32 %v1670_v50, %v1982_v53  ;;  %v1779_v47 = vmax.f32 %v1754_v24, 0.0  ;;  %v927_v20 = vsub.f32 %v873_v12, %v902_v44  ;;  %v981_v26 = vmul.f32 %v6260_v49, %v4257_v25 }
 0x1e6   :  { %v1463_v39 = vmul.f32 %v1438_v40, %v1384_v11  ;;  %v1621_v10 = vsub.f32 %v1596_v46, %v1305_v52  ;;  %v1281_v48 = vadd.f32 %v4257_v25, %v4257_v25  ;;  %v1306_v59 = vadd.f32 %v4269_v5, %v4269_v5 }
 0x1e7   :  { %v2032_v27 = vmin.f32 %v1487_v38, %v2007_v54  ;;  %v1804_v29 = vmin.f32 %v1779_v47, 1.0  ;;  %v1006_v56 = vsub.f32 %v956_v9, %v981_v26  ;;  %v1031_v36 = vmul.f32 %v927_v20, %v4257_v25 }
 0x1e8   :  { %v1488_v50 = vadd.f32 %v1463_v39, %v6432_v62  ;;  %v1646_v53 = vmul.f32 %v1621_v10, %v1567_v6  ;;  %vm1131_vm5 = vcmp.ge.f32.partialorder %v927_v20, 0.0  ;;  %v1335_v12 = vmul.f32 %v6300_v37, %v4257_v25 }
 0x1e9   :  { %v6435_v52 = vsub.f32 %v6424_v60, %v4976_v13  ;;  %v1883_v24 = vmul.f32 %v6318_v57, %v1804_v29  ;;  %v1056_v44 = vmul.f32 %v1006_v56, %v4269_v5  ;;  %vm1156_vm6 = vcmp.ge.f32.partialorder %v1006_v56, 0.0 }
 0x1ea   :  { %v1671_v38 = vadd.f32 %v1646_v53, %v6432_v62  ;;  %vm1181_vm7 = vmand %vm1131_vm5, %vm1156_vm6  ;;  %v1206_v40 = vadd.f32 %v1006_v56, %v927_v20  ;;  %v1360_v46 = vmax.f32 %v1335_v12, 0.0  ;;  %v1518_v6 = vmul.f32 %v6305_v63, %v4269_v5 }
 0x1eb   :  { %v2057_v11 = vmin.f32 %v6435_v52, %v2032_v27  ;;  %v1933_v54 = vsub.f32 %v1883_v24, %v1908_v21  ;;  %v5076_v47 = vadd.f32 %v1056_v44, %v1031_v36  ;;  %v1697_v13 = vsub.f32 %v4269_v5, %v4257_v25 }
 0x1ec   :  { %vm1231_vm8 = vcmp.le.f32.partialorder %v1206_v40, 1.0  ;;  %v1385_v26 = vmin.f32 %v1360_v46, 1.0  ;;  %v1543_v39 = vmax.f32 %v1518_v6, 0.0  ;;  %v1830_v21 = vsub.f32 %v4228_v33, %v1281_v48 }
 0x1ed   :  { %v2082_v9 = vsel %vm4988_vm15, %v2057_v11, %v2032_v27  ;;  %v1958_v10 = vmul.f32 %v1933_v54, %v1804_v29  ;;  %v1106_v20 = vsub.f32 %v4228_v33, %v5076_v47  ;;  %vm5084_vm9 = vmand %vm1181_vm7, %vm1231_vm8  ;;  %v1726_v31 = vadd.f32 %v6306_v32, %v1697_v13  ;;  %v6438_v27 = vld [vmem:[#allocation42_spill] sm:$0xff] }
 0x1ee   :  { %v5080_v60 = vmax.f32 %v2082_v9, 0.0  ;;  %v1414_v25 = vmul.f32 %v6307_v17, %v1385_v26  ;;  %v1568_v5 = vmin.f32 %v1543_v39, 1.0  ;;  %v874_v36 = vmul.f32 %v6259_v14, %v6438_v27 }
 0x1ef   :  { %v903_v29 = vmul.f32 %v6260_v49, %v4196_v18  ;;  %v1983_v53 = vadd.f32 %v1958_v10, %v1854_v19  ;;  %v1755_v12 = vmul.f32 %v6308_v55, %v1726_v31  ;;  %v1855_v52 = vadd.f32 %v1830_v21, %v6307_v17 }
 0x1f0   :  { %2434 = vmin.xlane.f32.xlu1 %v5080_v60  ;;  %v1909_v11 = vadd.f32 %v1726_v31, %v1726_v31  ;;  %v1439_v24 = vsub.f32 %v1414_v25, %v1281_v48  ;;  %v1597_v44 = vmul.f32 %v6309_v42, %v1568_v5  ;;  %v957_v46 = vmul.f32 %v6262_v35, %v4196_v18 }
 0x1f1   :  { %v928_v40 = vsub.f32 %v874_v36, %v903_v29  ;;  %v2008_v6 = vmin.f32 %v1671_v38, %v1983_v53  ;;  %v1780_v9 = vmax.f32 %v1755_v12, 0.0  ;;  %v982_v54 = vmul.f32 %v6260_v49, %v6438_v27 }
 0x1f2   :  { %v1282_v19 = vadd.f32 %v6438_v27, %v6438_v27  ;;  %v1464_v13 = vmul.f32 %v1439_v24, %v1385_v26  ;;  %v1622_v39 = vsub.f32 %v1597_v44, %v1306_v59  ;;  %v1307_v25 = vadd.f32 %v4196_v18, %v4196_v18 }
 0x1f3   :  { %v1032_v10 = vmul.f32 %v928_v40, %v6438_v27  ;;  %vm1132_vm10 = vcmp.ge.f32.partialorder %v928_v40, 0.0  ;;  %v2033_v48 = vmin.f32 %v1488_v50, %v2008_v6  ;;  %v1805_v31 = vmin.f32 %v1780_v9, 1.0 }
 0x1f4   :  { %v1007_v21 = vsub.f32 %v957_v46, %v982_v54  ;;  %v1489_v38 = vadd.f32 %v1464_v13, %v4228_v33  ;;  %v1647_v36 = vmul.f32 %v1622_v39, %v1568_v5  ;;  %v1336_v29 = vmul.f32 %v6300_v37, %v6438_v27  ;;  %v6439_v39 = vld [vmem:[#allocation35_spill] sm:$0xff] }
 0x1f5   :  { %v1519_v53 = vmul.f32 %v6305_v63, %v4196_v18  ;;  %v2058_v59 = vmin.f32 %v1105_v34, %v2033_v48  ;;  %v1884_v50 = vmul.f32 %v6318_v57, %v1805_v31  ;;  %v1698_v8 = vsub.f32 %v4196_v18, %v6438_v27 }
 0x1f6   :  { %v1057_v26 = vmul.f32 %v1007_v21, %v4196_v18  ;;  %vm1157_vm11 = vcmp.ge.f32.partialorder %v1007_v21, 0.0  ;;  %v1672_v12 = vadd.f32 %v1647_v36, %v4228_v33  ;;  %v1207_v24 = vadd.f32 %v1007_v21, %v928_v40 }
 0x1f7   :  { %vm1182_vm12 = vmand %vm1132_vm10, %vm1157_vm11  ;;  %v1361_v5 = vmax.f32 %v1336_v29, 0.0  ;;  %v1544_v44 = vmax.f32 %v1519_v53, 0.0  ;;  %v2083_v46 = vsel %vm5039_vm4, %v2058_v59, %v2033_v48  ;;  %v1934_v6 = vsub.f32 %v1884_v50, %v1909_v11 }
 0x1f8   :  { %v5121_v9 = vadd.f32 %v1057_v26, %v1032_v10  ;;  %v5125_v62 = vmax.f32 %v2083_v46, 0.0  ;;  %vm1232_vm13 = vcmp.le.f32.partialorder %v1207_v24, 1.0  ;;  %v1727_v23 = vadd.f32 %v6306_v32, %v1698_v8 }
 0x1f9   :  { %v1386_v34 = vmin.f32 %v1361_v5, 1.0  ;;  %v1569_v54 = vmin.f32 %v1544_v44, 1.0  ;;  %v1959_v13 = vmul.f32 %v1934_v6, %v1805_v31  ;;  %vm5129_vm14 = vmand %vm1182_vm12, %vm1232_vm13  ;;  %v1831_v11 = vsub.f32 %v6439_v39, %v1282_v19  ;;  %v6442_v31 = vld [vmem:[#allocation24_spill] sm:$0xff] }
 0x1fa   :  { %2436 = vmin.xlane.f32.xlu0 %v5125_v62  ;;  %v875_v10 = vmul.f32 %v6259_v14, %v4314_v41  ;;  %v904_v48 = vmul.f32 %v6260_v49, %v4322_v3  ;;  %v5144_v36 = vadd.f32 %v4569_v2, %v6442_v31  ;;  %v1756_v53 = vmul.f32 %v6308_v55, %v1727_v23 }
 0x1fb   :  { %v1415_v18 = vmul.f32 %v6307_v17, %v1386_v34  ;;  %v1598_v27 = vmul.f32 %v6309_v42, %v1569_v54  ;;  %v1984_v29 = vadd.f32 %v1959_v13, %v1855_v52  ;;  %v1856_v59 = vadd.f32 %v1831_v11, %v6307_v17 }
 0x1fc   :  { %v929_v24 = vsub.f32 %v875_v10, %v904_v48  ;;  %v958_v5 = vmul.f32 %v6262_v35, %v4322_v3  ;;  %v1781_v46 = vmax.f32 %v1756_v53, 0.0  ;;  %v1910_v6 = vadd.f32 %v1727_v23, %v1727_v23 }
 0x1fd   :  { %v1440_v50 = vsub.f32 %v1415_v18, %v1282_v19  ;;  %v1623_v26 = vsub.f32 %v1598_v27, %v1307_v25  ;;  %v2009_v44 = vmin.f32 %v1672_v12, %v1984_v29  ;;  %v983_v8 = vmul.f32 %v6260_v49, %v4314_v41 }
 0x1fe   :  { %v1033_v52 = vmul.f32 %v929_v24, %v4314_v41  ;;  %v1283_v13 = vadd.f32 %v4314_v41, %v4314_v41  ;;  %v1806_v19 = vmin.f32 %v1781_v46, 1.0  ;;  %vm1133_vm15 = vcmp.ge.f32.partialorder %v929_v24, 0.0 }
 0x1ff   :  { %v1465_v40 = vmul.f32 %v1440_v50, %v1386_v34  ;;  %v1648_v2 = vmul.f32 %v1623_v26, %v1569_v54  ;;  %v2034_v11 = vmin.f32 %v1489_v38, %v2009_v44  ;;  %v1008_v25 = vsub.f32 %v958_v5, %v983_v8 }
 0x200   :  { %v1337_v23 = vmul.f32 %v6300_v37, %v4314_v41  ;;  %v1520_v34 = vmul.f32 %v6305_v63, %v4322_v3  ;;  %v1885_v27 = vmul.f32 %v6318_v57, %v1806_v19  ;;  %v1699_v29 = vsub.f32 %v4322_v3, %v4314_v41 }
 0x201   :  { %v1490_v18 = vadd.f32 %v1465_v40, %v6439_v39  ;;  %v1673_v12 = vadd.f32 %v1648_v2, %v6439_v39  ;;  %v2059_v54 = vmin.f32 %v1106_v20, %v2034_v11  ;;  %v1058_v38 = vmul.f32 %v1008_v25, %v4322_v3 }
 0x202   :  { %vm1158_vm0 = vcmp.ge.f32.partialorder %v1008_v25, 0.0  ;;  %v1208_v40 = vadd.f32 %v1008_v25, %v929_v24  ;;  %v1362_v48 = vmax.f32 %v1337_v23, 0.0  ;;  %v1545_v31 = vmax.f32 %v1520_v34, 0.0 }
 0x203   :  { %vm5166_vm1 = vmand %vm1133_vm15, %vm1158_vm0  ;;  %v2084_v53 = vsel %vm5084_vm9, %v2059_v54, %v2034_v11  ;;  %v1935_v33 = vsub.f32 %v1885_v27, %v1910_v6  ;;  %v5174_v47 = vadd.f32 %v1058_v38, %v1033_v52  ;;  %v1832_v20 = vsub.f32 %v4311_v22, %v1283_v13 }
 0x204   :  { %v5177_v50 = vmax.f32 %v2084_v53, 0.0  ;;  %vm1233_vm2 = vcmp.le.f32.partialorder %v1208_v40, 1.0  ;;  %v1387_v26 = vmin.f32 %v1362_v48, 1.0  ;;  %v1570_v5 = vmin.f32 %v1545_v31, 1.0 }
 0x205   :  { %v1960_v44 = vmul.f32 %v1935_v33, %v1806_v19  ;;  %v1108_v24 = vsub.f32 %v4311_v22, %v5174_v47  ;;  %vm5183_vm3 = vmand %vm5166_vm1, %vm1233_vm2  ;;  %v1308_v56 = vadd.f32 %v4322_v3, %v4322_v3  ;;  %v1728_v46 = vadd.f32 %v6306_v32, %v1699_v29  ;;  %v6458_v47 = vld [vmem:[#allocation21_spill] sm:$0xff] }
 0x206   :  { %2438 = vmin.xlane.f32.xlu1 %v5177_v50  ;;  %v1416_v6 = vmul.f32 %v6307_v17, %v1387_v26  ;;  %v1599_v8 = vmul.f32 %v6309_v42, %v1570_v5  ;;  %v876_v2 = vmul.f32 %v6259_v14, %v4276_v45  ;;  %v905_v52 = vmul.f32 %v6260_v49, %v4290_v1 }
 0x207   :  { %v1985_v11 = vadd.f32 %v1960_v44, %v1856_v59  ;;  %v1757_v19 = vmul.f32 %v6308_v55, %v1728_v46  ;;  %v1857_v25 = vadd.f32 %v1832_v20, %v6307_v17  ;;  %v959_v3 = vmul.f32 %v6262_v35, %v4290_v1 }
 0x208   :  { %v1441_v23 = vsub.f32 %v1416_v6, %v1283_v13  ;;  %v1624_v34 = vsub.f32 %v1599_v8, %v1308_v56  ;;  %v930_v54 = vsub.f32 %v876_v2, %v905_v52  ;;  %v984_v27 = vmul.f32 %v6260_v49, %v4276_v45 }
 0x209   :  { %v2010_v38 = vmin.f32 %v1673_v12, %v1985_v11  ;;  %v1782_v10 = vmax.f32 %v1757_v19, 0.0  ;;  %v1911_v40 = vadd.f32 %v1728_v46, %v1728_v46  ;;  %v1284_v48 = vadd.f32 %v4276_v45, %v4276_v45  ;;  %v6448_v11 = vld [vmem:[#allocation57_spill] sm:$0xff] }
 0x20a   :  { %v1466_v59 = vmul.f32 %v1441_v23, %v1387_v26  ;;  %v1649_v31 = vmul.f32 %v1624_v34, %v1570_v5  ;;  %v1009_v29 = vsub.f32 %v959_v3, %v984_v27  ;;  %v1034_v53 = vmul.f32 %v930_v54, %v4276_v45 }
 0x20b   :  { %v2035_v33 = vmin.f32 %v1490_v18, %v2010_v38  ;;  %v1807_v20 = vmin.f32 %v1782_v10, 1.0  ;;  %vm1134_vm4 = vcmp.ge.f32.partialorder %v930_v54, 0.0  ;;  %v1338_v13 = vmul.f32 %v6300_v37, %v4276_v45 }
 0x20c   :  { %v1491_v44 = vadd.f32 %v1466_v59, %v4311_v22  ;;  %v1674_v12 = vadd.f32 %v1649_v31, %v4311_v22  ;;  %v1059_v56 = vmul.f32 %v1009_v29, %v4290_v1  ;;  %vm1159_vm5 = vcmp.ge.f32.partialorder %v1009_v29, 0.0 }
 0x20d   :  { %v6447_v26 = vsub.f32 %v6439_v39, %v5121_v9  ;;  %v1886_v46 = vmul.f32 %v6318_v57, %v1807_v20  ;;  %vm1184_vm6 = vmand %vm1134_vm4, %vm1159_vm5  ;;  %v1209_v18 = vadd.f32 %v1009_v29, %v930_v54  ;;  %v1363_v6 = vmax.f32 %v1338_v13, 0.0 }
 0x20e   :  { %v5215_v8 = vadd.f32 %v1059_v56, %v1034_v53  ;;  %v1521_v2 = vmul.f32 %v6305_v63, %v4290_v1  ;;  %v1700_v52 = vsub.f32 %v4290_v1, %v4276_v45  ;;  %v1833_v19 = vsub.f32 %v6448_v11, %v1284_v48 }
 0x20f   :  { %v2060_v5 = vmin.f32 %v6447_v26, %v2035_v33  ;;  %v1936_v9 = vsub.f32 %v1886_v46, %v1911_v40  ;;  %vm1234_vm7 = vcmp.le.f32.partialorder %v1209_v18, 1.0  ;;  %v1388_v39 = vmin.f32 %v1363_v6, 1.0 }
 0x210   :  { %v1109_v34 = vsub.f32 %v6448_v11, %v5215_v8  ;;  %vm5228_vm8 = vmand %vm1184_vm6, %vm1234_vm7  ;;  %v1546_v27 = vmax.f32 %v1521_v2, 0.0  ;;  %v1729_v45 = vadd.f32 %v6306_v32, %v1700_v52  ;;  %v1309_v21 = vadd.f32 %v4290_v1, %v4290_v1 }
 0x211   :  { %v2085_v3 = vsel %vm5129_vm14, %v2060_v5, %v2035_v33  ;;  %v1961_v38 = vmul.f32 %v1936_v9, %v1807_v20  ;;  %v1417_v10 = vmul.f32 %v6307_v17, %v1388_v39  ;;  %v877_v40 = vmul.f32 %v6259_v14, %v4442_v28 }
 0x212   :  { %v5224_v23 = vmax.f32 %v2085_v3, 0.0  ;;  %v1571_v59 = vmin.f32 %v1546_v27, 1.0  ;;  %v1758_v31 = vmul.f32 %v6308_v55, %v1729_v45  ;;  %v1858_v29 = vadd.f32 %v1833_v19, %v6307_v17 }
 0x213   :  { %v906_v53 = vmul.f32 %v6260_v49, %v4447_v61  ;;  %v1986_v33 = vadd.f32 %v1961_v38, %v1857_v25  ;;  %v1442_v20 = vsub.f32 %v1417_v10, %v1284_v48  ;;  %v960_v1 = vmul.f32 %v6262_v35, %v4447_v61 }
 0x214   :  { %2440 = vmin.xlane.f32.xlu0 %v5224_v23  ;;  %v985_v13 = vmul.f32 %v6260_v49, %v4442_v28  ;;  %v1600_v56 = vmul.f32 %v6309_v42, %v1571_v59  ;;  %v1783_v26 = vmax.f32 %v1758_v31, 0.0  ;;  %v1912_v5 = vadd.f32 %v1729_v45, %v1729_v45 }
 0x215   :  { %v931_v46 = vsub.f32 %v877_v40, %v906_v53  ;;  %v2011_v18 = vmin.f32 %v1674_v12, %v1986_v33  ;;  %v1467_v6 = vmul.f32 %v1442_v20, %v1388_v39  ;;  %v1285_v52 = vadd.f32 %v4442_v28, %v4442_v28 }
 0x216   :  { %v1010_v2 = vsub.f32 %v960_v1, %v985_v13  ;;  %v1625_v19 = vsub.f32 %v1600_v56, %v1309_v21  ;;  %v1808_v25 = vmin.f32 %v1783_v26, 1.0  ;;  %v1339_v39 = vmul.f32 %v6300_v37, %v4442_v28 }
 0x217   :  { %v1035_v48 = vmul.f32 %v931_v46, %v4442_v28  ;;  %vm1135_vm9 = vcmp.ge.f32.partialorder %v931_v46, 0.0  ;;  %v2036_v3 = vmin.f32 %v1491_v44, %v2011_v18  ;;  %v1492_v9 = vadd.f32 %v1467_v6, %v6448_v11 }
 0x218   :  { %v1060_v27 = vmul.f32 %v1010_v2, %v4447_v61  ;;  %vm1160_vm10 = vcmp.ge.f32.partialorder %v1010_v2, 0.0  ;;  %v1650_v38 = vmul.f32 %v1625_v19, %v1571_v59  ;;  %v1887_v45 = vmul.f32 %v6318_v57, %v1808_v25  ;;  %v6453_v19 = vld [vmem:[#allocation58_spill] sm:$0xff] }
 0x219   :  { %vm1185_vm11 = vmand %vm1135_vm9, %vm1160_vm10  ;;  %v1210_v12 = vadd.f32 %v1010_v2, %v931_v46  ;;  %v2061_v21 = vmin.f32 %v1108_v24, %v2036_v3  ;;  %v1522_v44 = vmul.f32 %v6305_v63, %v4447_v61  ;;  %v1701_v40 = vsub.f32 %v4447_v61, %v4442_v28 }
 0x21a   :  { %v5259_v10 = vadd.f32 %v1060_v27, %v1035_v48  ;;  %v1675_v59 = vadd.f32 %v1650_v38, %v6448_v11  ;;  %v1937_v31 = vsub.f32 %v1887_v45, %v1912_v5  ;;  %v1364_v53 = vmax.f32 %v1339_v39, 0.0 }
 0x21b   :  { %vm1235_vm12 = vcmp.le.f32.partialorder %v1210_v12, 1.0  ;;  %v2086_v33 = vsel %vm5183_vm3, %v2061_v21, %v2036_v3  ;;  %v1547_v24 = vmax.f32 %v1522_v44, 0.0  ;;  %v1730_v20 = vadd.f32 %v6306_v32, %v1701_v40 }
 0x21c   :  { %v1110_v22 = vsub.f32 %v4431_v51, %v5259_v10  ;;  %vm5270_vm13 = vmand %vm1185_vm11, %vm1235_vm12  ;;  %v5275_v1 = vmax.f32 %v2086_v33, 0.0  ;;  %v1962_v28 = vmul.f32 %v1937_v31, %v1808_v25  ;;  %v1389_v13 = vmin.f32 %v1364_v53, 1.0 }
 0x21d   :  { %v1834_v56 = vsub.f32 %v4431_v51, %v1285_v52  ;;  %v1310_v41 = vadd.f32 %v4447_v61, %v4447_v61  ;;  %v1572_v26 = vmin.f32 %v1547_v24, 1.0  ;;  %v1759_v5 = vmul.f32 %v6308_v55, %v1730_v20  ;;  %v5298_v24 = vpop.xlane.xlu0 %2406 }
 0x21e   :  { %v878_v46 = vmul.f32 %v6259_v14, %v4351_v15  ;;  %2442 = vmin.xlane.f32.xlu1 %v5275_v1  ;;  %v1987_v18 = vadd.f32 %v1962_v28, %v1858_v29  ;;  %v1418_v6 = vmul.f32 %v6307_v17, %v1389_v13  ;;  %v1913_v2 = vadd.f32 %v1730_v20, %v1730_v20 }
 0x21f   :  { %v907_v25 = vmul.f32 %v6260_v49, %v6453_v19  ;;  %v1601_v48 = vmul.f32 %v6309_v42, %v1572_v26  ;;  %v1784_v3 = vmax.f32 %v1759_v5, 0.0  ;;  %v961_v61 = vmul.f32 %v6262_v35, %v6453_v19 }
 0x220   :  { %v986_v27 = vmul.f32 %v6260_v49, %v4351_v15  ;;  %v2012_v38 = vmin.f32 %v1675_v59, %v1987_v18  ;;  %v1443_v45 = vsub.f32 %v1418_v6, %v1285_v52  ;;  %v1859_v12 = vadd.f32 %v1834_v56, %v6307_v17 }
 0x221   :  { %v932_v29 = vsub.f32 %v878_v46, %v907_v25  ;;  %v1626_v39 = vsub.f32 %v1601_v48, %v1310_v41  ;;  %v1809_v21 = vmin.f32 %v1784_v3, 1.0  ;;  %v5295_v40 = vadd.f32 %v4351_v15, %v4351_v15  ;;  %v6454_v25 = vld [vmem:[#allocation8_spill] sm:$0xff] }
 0x222   :  { %v1011_v44 = vsub.f32 %v961_v61, %v986_v27  ;;  %v2037_v31 = vmin.f32 %v1492_v9, %v2012_v38  ;;  %v1468_v53 = vmul.f32 %v1443_v45, %v1389_v13  ;;  %v1340_v13 = vmul.f32 %v6300_v37, %v4351_v15  ;;  %v5330_v38 = vpop.xlane.xlu1 %2404  ;;  %v5332_v45 = vpop.xlane.xlu0 %2408 }
 0x223   :  { %v1036_v33 = vmul.f32 %v932_v29, %v4351_v15  ;;  %vm1136_vm14 = vcmp.ge.f32.partialorder %v932_v29, 0.0  ;;  %v1651_v20 = vmul.f32 %v1626_v39, %v1572_v26  ;;  %v1888_v52 = vmul.f32 %v6318_v57, %v1809_v21 }
 0x224   :  { %v1061_v59 = vmul.f32 %v1011_v44, %v6453_v19  ;;  %vm1161_vm15 = vcmp.ge.f32.partialorder %v1011_v44, 0.0  ;;  %v2062_v28 = vmin.f32 %v1109_v34, %v2037_v31  ;;  %v1493_v56 = vadd.f32 %v1468_v53, %v4431_v51 }
 0x225   :  { %vm1186_vm0 = vmand %vm1136_vm14, %vm1161_vm15  ;;  %v1211_v9 = vadd.f32 %v1011_v44, %v932_v29  ;;  %v1676_v41 = vadd.f32 %v1651_v20, %v4431_v51  ;;  %v1938_v5 = vsub.f32 %v1888_v52, %v1913_v2  ;;  %v1523_v46 = vmul.f32 %v6305_v63, %v6453_v19 }
 0x226   :  { %v5309_v26 = vadd.f32 %v1061_v59, %v1036_v33  ;;  %v2087_v18 = vsel %vm5228_vm8, %v2062_v28, %v2037_v31  ;;  %v1365_v8 = vmax.f32 %v1340_v13, 0.0  ;;  %v1702_v11 = vsub.f32 %v6453_v19, %v4351_v15  ;;  %v6457_v31 = vld [vmem:[#allocation31_spill] sm:$0xff] }
 0x227   :  { %vm1236_vm1 = vcmp.le.f32.partialorder %v1211_v9, 1.0  ;;  %v5317_v34 = vmax.f32 %v2087_v18, 0.0  ;;  %v1963_v6 = vmul.f32 %v1938_v5, %v1809_v21  ;;  %v1548_v3 = vmax.f32 %v1523_v46, 0.0  ;;  %v5353_v18 = vpop.xlane.xlu1 %2410 }
 0x228   :  { %v1111_v48 = vsub.f32 %v6454_v25, %v5309_v26  ;;  %vm5321_vm2 = vmand %vm1186_vm0, %vm1236_vm1  ;;  %v1390_v61 = vmin.f32 %v1365_v8, 1.0  ;;  %v1731_v54 = vadd.f32 %v6306_v32, %v1702_v11  ;;  %v1835_v27 = vsub.f32 %v6454_v25, %v5295_v40 }
 0x229   :  { %v879_v15 = vmul.f32 %v6259_v14, %v4566_v4  ;;  %2444 = vmin.xlane.f32.xlu0 %v5317_v34  ;;  %v1988_v29 = vadd.f32 %v1963_v6, %v1859_v12  ;;  %v1573_v39 = vmin.f32 %v1548_v3, 1.0  ;;  %v908_v21 = vmul.f32 %v6260_v49, %v5144_v36 }
 0x22a   :  { %v962_v44 = vmul.f32 %v6262_v35, %v5144_v36  ;;  %v5341_v53 = vadd.f32 %v4472_v30, %v6457_v31  ;;  %v1311_v33 = vadd.f32 %v6453_v19, %v6453_v19  ;;  %v1419_v20 = vmul.f32 %v6307_v17, %v1390_v61 }
 0x22b   :  { %v1760_v52 = vmul.f32 %v6308_v55, %v1731_v54  ;;  %v2013_v59 = vmin.f32 %v1676_v41, %v1988_v29  ;;  %v1602_v12 = vmul.f32 %v6309_v42, %v1573_v39  ;;  %v933_v28 = vsub.f32 %v879_v15, %v908_v21  ;;  %v5356_v29 = vpop.xlane.xlu0 %2412 }
 0x22c   :  { %v987_v9 = vmul.f32 %v6260_v49, %v4566_v4  ;;  %v1444_v13 = vsub.f32 %v1419_v20, %v5295_v40  ;;  %v1914_v46 = vadd.f32 %v1731_v54, %v1731_v54  ;;  %v1341_v30 = vmul.f32 %v6300_v37, %v4566_v4 }
 0x22d   :  { %v1785_v5 = vmax.f32 %v1760_v52, 0.0  ;;  %v2038_v19 = vmin.f32 %v1493_v56, %v2013_v59  ;;  %v1627_v8 = vsub.f32 %v1602_v12, %v1311_v33  ;;  %v1037_v41 = vmul.f32 %v933_v28, %v4566_v4  ;;  %v5374_v59 = vpop.xlane.xlu1 %2414 }
 0x22e   :  { %v1012_v11 = vsub.f32 %v962_v44, %v987_v9  ;;  %v1469_v6 = vmul.f32 %v1444_v13, %v1390_v61  ;;  %vm1137_vm3 = vcmp.ge.f32.partialorder %v933_v28, 0.0  ;;  %v1366_v15 = vmax.f32 %v1341_v30, 0.0  ;;  %v6461_v30 = vld [vmem:[#allocation46_spill] sm:$0xff] }
 0x22f   :  { %v1810_v3 = vmin.f32 %v1785_v5, 1.0  ;;  %v2063_v40 = vmin.f32 %v1110_v22, %v2038_v19  ;;  %v1652_v54 = vmul.f32 %v1627_v8, %v1573_v39  ;;  %v1524_v51 = vmul.f32 %v6305_v63, %v5144_v36  ;;  %v6462_v8 = vld [vmem:[#allocation18_spill] sm:$0xff] }
 0x230   :  { %v1062_v21 = vmul.f32 %v1012_v11, %v5144_v36  ;;  %vm1162_vm4 = vcmp.ge.f32.partialorder %v1012_v11, 0.0  ;;  %v1494_v56 = vadd.f32 %v1469_v6, %v6454_v25  ;;  %v1212_v31 = vadd.f32 %v1012_v11, %v933_v28 }
 0x231   :  { %v1889_v44 = vmul.f32 %v6318_v57, %v1810_v3  ;;  %vm1187_vm5 = vmand %vm1137_vm3, %vm1162_vm4  ;;  %v1391_v61 = vmin.f32 %v1366_v15, 1.0  ;;  %v2088_v33 = vsel %vm5270_vm13, %v2063_v40, %v2038_v19  ;;  %v1677_v20 = vadd.f32 %v1652_v54, %v6454_v25 }
 0x232   :  { %v5367_v52 = vadd.f32 %v1062_v21, %v1037_v41  ;;  %v5371_v10 = vmax.f32 %v2088_v33, 0.0  ;;  %vm1237_vm6 = vcmp.le.f32.partialorder %v1212_v31, 1.0  ;;  %v1860_v12 = vadd.f32 %v1835_v27, %v6307_v17  ;;  %v5391_v41 = vpop.xlane.xlu0 %2416 }
 0x233   :  { %v1939_v22 = vsub.f32 %v1889_v44, %v1914_v46  ;;  %v1420_v39 = vmul.f32 %v6307_v17, %v1391_v61  ;;  %vm5379_vm7 = vmand %vm1187_vm5, %vm1237_vm6  ;;  %v1549_v13 = vmax.f32 %v1524_v51, 0.0  ;;  %v1703_v5 = vsub.f32 %v5144_v36, %v4566_v4 }
 0x234   :  { %v1112_v28 = vsub.f32 %v6458_v47, %v5367_v52  ;;  %2446 = vmin.xlane.f32.xlu1 %v5371_v10  ;;  %v880_v11 = vmul.f32 %v6259_v14, %v6462_v8  ;;  %v909_v27 = vmul.f32 %v6260_v49, %v5341_v53  ;;  %v963_v40 = vmul.f32 %v6262_v35, %v5341_v53  ;;  %v6474_v52 = vld [vmem:[#allocation7_spill] sm:$0xff] }
 0x235   :  { %v1964_v46 = vmul.f32 %v1939_v22, %v1810_v3  ;;  %v1445_v19 = vsub.f32 %v1420_v39, %v6461_v30  ;;  %v1574_v6 = vmin.f32 %v1549_v13, 1.0  ;;  %v1732_v15 = vadd.f32 %v6306_v32, %v1703_v5 }
 0x236   :  { %v988_v4 = vmul.f32 %v6260_v49, %v6462_v8  ;;  %v1312_v54 = vadd.f32 %v5144_v36, %v5144_v36  ;;  %v934_v14 = vsub.f32 %v880_v11, %v909_v27  ;;  %v5406_v49 = vpop.xlane.xlu1 %2418  ;;  %v5417_v11 = vpop.xlane.xlu0 %2420  ;;  %vm2906_vm13 = vcmask 7168  }
 0x237   :  { %v1989_v3 = vadd.f32 %v1964_v46, %v1860_v12  ;;  %v1470_v21 = vmul.f32 %v1445_v19, %v1391_v61  ;;  %v1603_v44 = vmul.f32 %v6309_v42, %v1574_v6  ;;  %v1761_v31 = vmul.f32 %v6308_v55, %v1732_v15  ;;  %2907 = vst.msk [vmem:[%s6057_s2] sm:$0xff] %vm2906_vm13, %v5330_v38 }
 0x238   :  { %v1915_v33 = vadd.f32 %v1732_v15, %v1732_v15  ;;  %v1013_v51 = vsub.f32 %v963_v40, %v988_v4  ;;  %v1038_v35 = vmul.f32 %v934_v14, %v6462_v8  ;;  %vm1138_vm8 = vcmp.ge.f32.partialorder %v934_v14, 0.0  ;;  %2908 = vst.msk [vmem:[%s6057_s2 + $0x8] sm:$0xff] %vm2906_vm13, %v5298_v24  ;;  %2909 = vst.msk [vmem:[%s6057_s2 + $0x10] sm:$0xff] %vm2906_vm13, %v5332_v45 }
 0x239   :  { %v2014_v22 = vmin.f32 %v1677_v20, %v1989_v3  ;;  %v5403_v39 = vadd.f32 %v1470_v21, %v6458_v47  ;;  %v1628_v12 = vsub.f32 %v1603_v44, %v1312_v54  ;;  %v1786_v13 = vmax.f32 %v1761_v31, 0.0  ;;  %v6465_v21 = vld [vmem:[#allocation17_spill] sm:$0xff]  ;;  %2910 = vst.msk [vmem:[%s6057_s2 + $0x18] sm:$0xff] %vm2906_vm13, %v5353_v18  ;;  %2911 = vst.msk [vmem:[%s6057_s2 + $0x20] sm:$0xff] %vm2906_vm13, %v5356_v29 }
 0x23a   :  { %v1063_v36 = vmul.f32 %v1013_v51, %v5341_v53  ;;  %vm1163_vm9 = vcmp.ge.f32.partialorder %v1013_v51, 0.0  ;;  %v1213_v46 = vadd.f32 %v1013_v51, %v934_v14  ;;  %v1342_v20 = vmul.f32 %v6300_v37, %v6462_v8  ;;  %v5439_v44 = vpop.xlane.xlu1 %2422  ;;  %2912 = vst.msk [vmem:[%s6057_s2 + $0x28] sm:$0xff] %vm2906_vm13, %v5374_v59  ;;  %2913 = vst.msk [vmem:[%s6057_s2 + $0x30] sm:$0xff] %vm2906_vm13, %v5391_v41 }
 0x23b   :  { %v2039_v61 = vmin.f32 %v1494_v56, %v2014_v22  ;;  %vm5409_vm10 = vmand %vm1138_vm8, %vm1163_vm9  ;;  %v1525_v19 = vmul.f32 %v6305_v63, %v5341_v53  ;;  %v1653_v27 = vmul.f32 %v1628_v12, %v1574_v6  ;;  %v1811_v15 = vmin.f32 %v1786_v13, 1.0  ;;  %2914 = vst.msk [vmem:[%s6057_s2 + $0x38] sm:$0xff] %vm2906_vm13, %v5406_v49 }
 0x23c   :  { %v5419_v40 = vadd.f32 %v1063_v36, %v1038_v35  ;;  %v1704_v56 = vsub.f32 %v5341_v53, %v6462_v8  ;;  %vm1238_vm11 = vcmp.le.f32.partialorder %v1213_v46, 1.0  ;;  %v1367_v3 = vmax.f32 %v1342_v20, 0.0  ;;  %2915 = vst.msk [vmem:[%s6057_s2 + $0x40] sm:$0xff] %vm2906_vm13, %v5417_v11  ;;  %2916 = vst.msk [vmem:[%s6057_s2 + $0x48] sm:$0xff] %vm2906_vm13, %v5439_v44 }
 0x23d   :  { %v2064_v4 = vmin.f32 %v1111_v48, %v2039_v61  ;;  %v1550_v54 = vmax.f32 %v1525_v19, 0.0  ;;  %v1678_v37 = vadd.f32 %v1653_v27, %v6458_v47  ;;  %v1890_v63 = vmul.f32 %v6318_v57, %v1811_v15  ;;  %vm5432_vm12 = vmand %vm5409_vm10, %vm1238_vm11 }
 0x23e   :  { %v1113_v6 = vsub.f32 %v6465_v21, %v5419_v40  ;;  %v1733_v8 = vadd.f32 %v6306_v32, %v1704_v56  ;;  %v1392_v25 = vmin.f32 %v1367_v3, 1.0  ;;  %v1313_v35 = vadd.f32 %v5341_v53, %v5341_v53  ;;  %v6478_v40 = vld [vmem:[#allocation22_spill] sm:$0xff] }
 0x23f   :  { %v2089_v26 = vsel %vm5321_vm2, %v2064_v4, %v2039_v61  ;;  %v1575_v48 = vmin.f32 %v1550_v54, 1.0  ;;  %v1940_v51 = vsub.f32 %v1890_v63, %v1915_v33  ;;  %v6468_v2 = vsub.f32 %v6458_v47, %v6461_v30  ;;  %v6475_v47 = vld [vmem:[#allocation12_spill] sm:$0xff] }
 0x240   :  { %v5441_v31 = vmax.f32 %v2089_v26, 0.0  ;;  %v1762_v22 = vmul.f32 %v6308_v55, %v1733_v8  ;;  %v1421_v12 = vmul.f32 %v6307_v17, %v1392_v25  ;;  %v6469_v55 = vld [vmem:[#allocation11_spill] sm:$0xff]  ;;  %v6470_v46 = vlaneseq }
 0x241   :  { %v1604_v13 = vmul.f32 %v6309_v42, %v1575_v48  ;;  %v5448_v32 = vpop.xlane.xlu0 %2424  ;;  %v1861_v36 = vadd.f32 %v6468_v2, %v6307_v17  ;;  %v1965_v33 = vmul.f32 %v1940_v51, %v1811_v15  ;;  %v6471_v15 = vld [vmem:[#allocation29_spill] sm:$0xff]  ;;  %v1916_v3 = vadd.f32 %v1733_v8, %v1733_v8 }
 0x242   :  { %2448 = vmin.xlane.f32.xlu0 %v5441_v31  ;;  %v1787_v61 = vmax.f32 %v1762_v22, 0.0  ;;  %2917 = vst.msk [vmem:[%s6057_s2 + $0x50] sm:$0xff] %vm2906_vm13, %v5448_v32  ;;  %v1446_v42 = vsub.f32 %v1421_v12, %v6469_v55  ;;  %v5512_v20 = vand.u32 127, %v6470_v46  ;;  %vm2506_vm14 = vcmp.eq.f32.partialorder %v6471_v15, %v5330_v38 }
 0x243   :  { %v1629_v53 = vsub.f32 %v1604_v13, %v1313_v35  ;;  %v1990_v30 = vadd.f32 %v1965_v33, %v1861_v36  ;;  %vm2507_vm0 = vcmp.eq.f32.partialorder %v6474_v52, %v5298_v24  ;;  %vm2510_vm1 = vcmp.eq.f32.partialorder %v6475_v47, %v5356_v29  ;;  %v6476_v29 = vld [vmem:[#allocation33_spill] sm:$0xff]  ;;  %v6477_v33 = vld [vmem:[#allocation59_spill] sm:$0xff] }
 0x244   :  { %v1812_v5 = vmin.f32 %v1787_v61, 1.0  ;;  %v1471_v19 = vmul.f32 %v1446_v42, %v1392_v25  ;;  %v5521_v22 = vsel %vm2506_vm14, %v5512_v20, 1073741824  ;;  %v6472_v25 = vld [vmem:[#allocation37_spill] sm:$0xff]  ;;  %v5553_v36 = vsel %vm2507_vm0, %v5512_v20, 1073741824 }
 0x245   :  { %v1654_v27 = vmul.f32 %v1629_v53, %v1575_v48  ;;  %v2015_v56 = vmin.f32 %v1678_v37, %v1990_v30  ;;  %vm2508_vm15 = vcmp.eq.f32.partialorder %v6472_v25, %v5332_v45  ;;  %v2557_v48 = vshra.s32 %v5521_v22, 16 }
 0x246   :  { %v1891_v4 = vmul.f32 %v6318_v57, %v1812_v5  ;;  %v1496_v54 = vadd.f32 %v1471_v19, %v6465_v21  ;;  %v6473_v57 = vsub.f32 %v6465_v21, %v6469_v55  ;;  %v5536_v12 = vsel %vm2508_vm15, %v5512_v20, 1073741824 }
 0x247   :  { %v1679_v63 = vadd.f32 %v1654_v27, %v6465_v21  ;;  %v2040_v26 = vmin.f32 %v5403_v39, %v2015_v56  ;;  %v2585_v13 = vshra.s32 %v5536_v12, 16  ;;  %v5546_v9 = vcvt.s32.f32 %v2557_v48  ;;  %v6479_v21 = vld [vmem:[#allocation16_spill] sm:$0xff]  ;;  %v6481_v48 = vld [vmem:[#allocation61_spill] sm:$0xff] }
 0x248   :  { %v1941_v51 = vsub.f32 %v1891_v4, %v1916_v3  ;;  %v1862_v37 = vadd.f32 %v6473_v57, %v6307_v17  ;;  %v5556_v24 = vsel %vm2510_vm1, %v5512_v20, 1073741824  ;;  %vm2509_vm2 = vcmp.eq.f32.partialorder %v6476_v29, %v5353_v18 }
 0x249   :  { %v2065_v38 = vmin.f32 %v1112_v28, %v2040_v26  ;;  %vm2512_vm3 = vcmp.eq.f32.partialorder %v6477_v33, %v5391_v41  ;;  %v2571_v55 = vshra.s32 %v5553_v36, 16  ;;  %v2613_v42 = vshra.s32 %v5556_v24, 16 }
 0x24a   :  { %v1966_v8 = vmul.f32 %v1941_v51, %v1812_v5  ;;  %v5568_v53 = vcvt.s32.f32 %v2585_v13  ;;  %v5573_v18 = vsel %vm2509_vm2, %v5512_v20, 1073741824  ;;  %v5576_v41 = vsel %vm2512_vm3, %v5512_v20, 1073741824 }
 0x24b   :  { %v2090_v39 = vsel %vm5379_vm7, %v2065_v38, %v2040_v26  ;;  %vm2511_vm4 = vcmp.eq.f32.partialorder %v6478_v40, %v5374_v59  ;;  %vm2514_vm5 = vcmp.eq.f32.partialorder %v6479_v21, %v5417_v11  ;;  %v2599_v14 = vshra.s32 %v5573_v18, 16  ;;  %v6480_v11 = vld [vmem:[#allocation15_spill] sm:$0xff] }
 0x24c   :  { %v1991_v35 = vadd.f32 %v1966_v8, %v1862_v37  ;;  %v5538_v45 = vmax.f32 %v2090_v39, 0.0  ;;  %v2641_v46 = vshra.s32 %v5576_v41, 16  ;;  %v5590_v19 = vcvt.s32.f32 %v2613_v42 }
 0x24d   :  { %v2427_v17 = vpop.xlane.xlu1 %2426  ;;  %v5593_v27 = vsel %vm2511_vm4, %v5512_v20, 1073741824  ;;  %v5596_v59 = vsel %vm2514_vm5, %v5512_v20, 1073741824  ;;  %vm2513_vm6 = vcmp.eq.f32.partialorder %v6480_v11, %v5406_v49  ;;  %vm2516_vm7 = vcmp.eq.f32.partialorder %v4837_v16, %v5448_v32 }
 0x24e   :  { %v2016_v28 = vmin.f32 %v1679_v63, %v1991_v35  ;;  %2450 = vmin.xlane.f32.xlu1 %v5538_v45  ;;  %2918 = vst.msk [vmem:[%s6057_s2 + $0x58] sm:$0xff] %vm2906_vm13, %v2427_v17  ;;  %v2627_v56 = vshra.s32 %v5593_v27, 16  ;;  %v5608_v4 = vcvt.s32.f32 %v2599_v14  ;;  %v2669_v3 = vshra.s32 %v5596_v59, 16 }
 0x24f   :  { %v5612_v49 = vcvt.s32.f32 %v2641_v46  ;;  %v5615_v16 = vsel %vm2513_vm6, %v5512_v20, 1073741824  ;;  %v5618_v32 = vsel %vm2516_vm7, %v5512_v20, 1073741824  ;;  %vm2515_vm8 = vcmp.eq.f32.partialorder %v4799_v43, %v5439_v44 }
 0x250   :  { %v2041_v2 = vmin.f32 %v1496_v54, %v2016_v28  ;;  %v2655_v54 = vshra.s32 %v5615_v16, 16  ;;  %v5625_v63 = vcvt.s32.f32 %v2627_v56  ;;  %v2697_v26 = vshra.s32 %v5618_v32, 16 }
 0x251   :  { %v5629_v51 = vcvt.s32.f32 %v2669_v3  ;;  %v5632_v25 = vsel %vm2515_vm8, %v5512_v20, 1073741824  ;;  %vm2517_vm10 = vcmp.eq.f32.partialorder %v4886_v7, %v2427_v17 }
 0x252   :  { %v2066_v61 = vmin.f32 %v1113_v6, %v2041_v2  ;;  %2560 = vmin.xlane.f32.xlu1 %v5546_v9  ;;  %v5585_v6 = vcvt.s32.f32 %v2571_v55  ;;  %v2683_v43 = vshra.s32 %v5632_v25, 16  ;;  %v5644_v57 = vcvt.s32.f32 %v2697_v26 }
 0x253   :  { %v5647_v37 = vsel %vm2517_vm10, %v5512_v20, 1073741824 }
 0x254   :  { %v2091_v30 = vsel %vm5432_vm12, %v2066_v61, %v2041_v2  ;;  %v2711_v7 = vshra.s32 %v5647_v37, 16  ;;  %v5656_v39 = vcvt.s32.f32 %v2683_v43 }
 0x255   :  { %v5578_v5 = vmax.f32 %v2091_v30, 0.0 }
 0x256   :  { %2588 = vmin.xlane.f32.xlu1 %v5568_v53  ;;  %v5666_v28 = vcvt.s32.f32 %v2711_v7 }
 0x257   :  { %2452 = vmin.xlane.f32.xlu0 %v5578_v5 }
 0x258   :  { %v2429_v15 = vpop.xlane.xlu0 %2428 }
 0x259   :  { %2919 = vst.msk [vmem:[%s6057_s2 + $0x60] sm:$0xff] %vm2906_vm13, %v2429_v15  ;;  %vm2518_vm9 = vcmp.eq.f32.partialorder %v4938_v0, %v2429_v15  ;;  %v5640_v0 = vcvt.s32.f32 %v2655_v54 }
 0x25a   :  { %2616 = vmin.xlane.f32.xlu1 %v5590_v19  ;;  %v5635_v38 = vsel %vm2518_vm9, %v5512_v20, 1073741824 }
 0x25b   :  { %2574 = vmin.xlane.f32.xlu0 %v5585_v6  ;;  %v2725_v44 = vshra.s32 %v5635_v38, 16 }
 0x25d   :  { %v5659_v35 = vcvt.s32.f32 %v2725_v44 }
 0x25e   :  { %2644 = vmin.xlane.f32.xlu1 %v5612_v49 }
 0x25f   :  { %2602 = vmin.xlane.f32.xlu0 %v5608_v4 }
 0x262   :  { %2672 = vmin.xlane.f32.xlu1 %v5629_v51 }
 0x263   :  { %2630 = vmin.xlane.f32.xlu0 %v5625_v63 }
 0x265   :  { %v2431_v8 = vpop.xlane.xlu1 %2430 }
 0x266   :  { %vm2519_vm11 = vcmp.eq.f32.partialorder %v6481_v48, %v2431_v8  ;;  %2920 = vst.msk [vmem:[%s6057_s2 + $0x68] sm:$0xff] %vm2906_vm13, %v2431_v8  ;;  %2700 = vmin.xlane.f32.xlu1 %v5644_v57 }
 0x267   :  { %2658 = vmin.xlane.f32.xlu0 %v5640_v0  ;;  %v5662_v52 = vsel %vm2519_vm11, %v5512_v20, 1073741824 }
 0x268   :  { %v2739_v47 = vshra.s32 %v5662_v52, 16 }
 0x26a   :  { %2728 = vmin.xlane.f32.xlu1 %v5659_v35  ;;  %v5670_v17 = vcvt.s32.f32 %v2739_v47 }
 0x26b   :  { %2686 = vmin.xlane.f32.xlu0 %v5656_v39 }
 0x26f   :  { %2714 = vmin.xlane.f32.xlu0 %v5666_v28 }
 0x270   :  { %v2433_v13 = vpop.xlane.xlu0 %2432 }
 0x271   :  { %vm2520_vm12 = vcmp.eq.f32.partialorder %v5033_v58, %v2433_v13  ;;  %2921 = vst.msk [vmem:[%s6057_s2 + $0x70] sm:$0xff] %vm2906_vm13, %v2433_v13 }
 0x272   :  { %v5678_v2 = vsel %vm2520_vm12, %v5512_v20, 1073741824 }
 0x273   :  { %2742 = vmin.xlane.f32.xlu0 %v5670_v17  ;;  %v2753_v29 = vshra.s32 %v5678_v2, 16 }
 0x275   :  { %v5682_v33 = vcvt.s32.f32 %v2753_v29 }
 0x277   :  { %2756 = vmin.xlane.f32.xlu1 %v5682_v33 }
 0x27d   :  { %v2435_v61 = vpop.xlane.xlu1 %2434 }
 0x27e   :  { %vm2521_vm14 = vcmp.eq.f32.partialorder %v5080_v60, %v2435_v61  ;;  %2922 = vst.msk [vmem:[%s6057_s2 + $0x78] sm:$0xff] %vm2906_vm13, %v2435_v61 }
 0x27f   :  { %v5691_v58 = vsel %vm2521_vm14, %v5512_v20, 1073741824 }
 0x280   :  { %v2767_v55 = vshra.s32 %v5691_v58, 16 }
 0x282   :  { %v5694_v42 = vcvt.s32.f32 %v2767_v55 }
 0x284   :  { %2770 = vmin.xlane.f32.xlu0 %v5694_v42 }
 0x287   :  { %v2437_v30 = vpop.xlane.xlu0 %2436 }
 0x288   :  { %vm2522_vm15 = vcmp.eq.f32.partialorder %v5125_v62, %v2437_v30  ;;  %2923 = vst.msk [vmem:[%s6057_s2 + $0x80] sm:$0xff] %vm2906_vm13, %v2437_v30 }
 0x289   :  { %v5703_v60 = vsel %vm2522_vm15, %v5512_v20, 1073741824 }
 0x28a   :  { %v2781_v40 = vshra.s32 %v5703_v60, 16 }
 0x28c   :  { %v5706_v21 = vcvt.s32.f32 %v2781_v40 }
 0x28e   :  { %2784 = vmin.xlane.f32.xlu1 %v5706_v21 }
 0x293   :  { %v2439_v14 = vpop.xlane.xlu1 %2438 }
 0x294   :  { %vm2523_vm0 = vcmp.eq.f32.partialorder %v5177_v50, %v2439_v14  ;;  %2924 = vst.msk [vmem:[%s6057_s2 + $0x88] sm:$0xff] %vm2906_vm13, %v2439_v14 }
 0x295   :  { %v5715_v62 = vsel %vm2523_vm0, %v5512_v20, 1073741824 }
 0x296   :  { %v2795_v46 = vshra.s32 %v5715_v62, 16 }
 0x298   :  { %v5718_v11 = vcvt.s32.f32 %v2795_v46 }
 0x29a   :  { %2798 = vmin.xlane.f32.xlu0 %v5718_v11 }
 0x2a1   :  { %v2441_v15 = vpop.xlane.xlu0 %2440 }
 0x2a2   :  { %vm2524_vm1 = vcmp.eq.f32.partialorder %v5224_v23, %v2441_v15  ;;  %2925 = vst.msk [vmem:[%s6057_s2 + $0x90] sm:$0xff] %vm2906_vm13, %v2441_v15 }
 0x2a3   :  { %v5727_v50 = vsel %vm2524_vm1, %v5512_v20, 1073741824 }
 0x2a4   :  { %v2809_v56 = vshra.s32 %v5727_v50, 16 }
 0x2a6   :  { %v5730_v3 = vcvt.s32.f32 %v2809_v56 }
 0x2a8   :  { %2812 = vmin.xlane.f32.xlu1 %v5730_v3 }
 0x2ab   :  { %v2443_v54 = vpop.xlane.xlu1 %2442 }
 0x2ac   :  { %vm2525_vm2 = vcmp.eq.f32.partialorder %v5275_v1, %v2443_v54  ;;  %2926 = vst.msk [vmem:[%s6057_s2 + $0x98] sm:$0xff] %vm2906_vm13, %v2443_v54 }
 0x2ad   :  { %v5739_v23 = vsel %vm2525_vm2, %v5512_v20, 1073741824 }
 0x2ae   :  { %v2823_v26 = vshra.s32 %v5739_v23, 16 }
 0x2b0   :  { %v5742_v43 = vcvt.s32.f32 %v2823_v26 }
 0x2b2   :  { %2826 = vmin.xlane.f32.xlu0 %v5742_v43 }
 0x2b6   :  { %v2445_v44 = vpop.xlane.xlu0 %2444 }
 0x2b7   :  { %vm2526_vm3 = vcmp.eq.f32.partialorder %v5317_v34, %v2445_v44  ;;  %2927 = vst.msk [vmem:[%s6057_s2 + $0xa0] sm:$0xff] %vm2906_vm13, %v2445_v44 }
 0x2b8   :  { %v5751_v1 = vsel %vm2526_vm3, %v5512_v20, 1073741824 }
 0x2b9   :  { %v2837_v8 = vshra.s32 %v5751_v1, 16 }
 0x2bb   :  { %v5754_v48 = vcvt.s32.f32 %v2837_v8 }
 0x2bd   :  { %2840 = vmin.xlane.f32.xlu1 %v5754_v48 }
 0x2c1   :  { %v2447_v7 = vpop.xlane.xlu1 %2446 }
 0x2c2   :  { %vm2527_vm4 = vcmp.eq.f32.partialorder %v5371_v10, %v2447_v7  ;;  %2928 = vst.msk [vmem:[%s6057_s2 + $0xa8] sm:$0xff] %vm2906_vm13, %v2447_v7 }
 0x2c3   :  { %v5763_v34 = vsel %vm2527_vm4, %v5512_v20, 1073741824 }
 0x2c4   :  { %v2851_v47 = vshra.s32 %v5763_v34, 16 }
 0x2c6   :  { %v5766_v13 = vcvt.s32.f32 %v2851_v47 }
 0x2c8   :  { %2854 = vmin.xlane.f32.xlu0 %v5766_v13 }
 0x2cf   :  { %v2449_v29 = vpop.xlane.xlu0 %2448 }
 0x2d0   :  { %vm2528_vm5 = vcmp.eq.f32.partialorder %v5441_v31, %v2449_v29  ;;  %2929 = vst.msk [vmem:[%s6057_s2 + $0xb0] sm:$0xff] %vm2906_vm13, %v2449_v29  ;;  %v2556_v31 = vand.u32 65535, %v5521_v22 }
 0x2d1   :  { %v5775_v10 = vsel %vm2528_vm5, %v5512_v20, 1073741824 }
 0x2d2   :  { %v2865_v61 = vshra.s32 %v5775_v10, 16  ;;  %v2558_v56 = vcvt.s32.f32 %v2556_v31 }
 0x2d4   :  { %v5778_v55 = vcvt.s32.f32 %v2865_v61 }
 0x2d6   :  { %2868 = vmin.xlane.f32.xlu1 %v5778_v55 }
 0x2db   :  { %v2451_v30 = vpop.xlane.xlu1 %2450 }
 0x2dc   :  { %vm2529_vm6 = vcmp.eq.f32.partialorder %v5538_v45, %v2451_v30  ;;  %2930 = vst.msk [vmem:[%s6057_s2 + $0xb8] sm:$0xff] %vm2906_vm13, %v2451_v30  ;;  %v2584_v45 = vand.u32 65535, %v5536_v12  ;;  %v2612_v12 = vand.u32 65535, %v5556_v24 }
 0x2dd   :  { %v5788_v40 = vsel %vm2529_vm6, %v5512_v20, 1073741824 }
 0x2de   :  { %v2879_v14 = vshra.s32 %v5788_v40, 16  ;;  %v2586_v8 = vcvt.s32.f32 %v2584_v45 }
 0x2df   :  { %v5791_v46 = vpop.xlane.xlu1 %2560 }
 0x2e0   :  { %v5793_v15 = vcvt.s32.f32 %v2879_v14  ;;  %vm2562_vm7 = vcmp.eq.f32.partialorder %v5546_v9, %v5791_v46  ;;  %v2570_v9 = vand.u32 65535, %v5553_v36  ;;  %v2640_v36 = vand.u32 65535, %v5576_v41 }
 0x2e1   :  { %v2563_v26 = vsel %vm2562_vm7, %v2558_v56, inf  ;;  %v2668_v41 = vand.u32 65535, %v5596_v59  ;;  %v2696_v59 = vand.u32 65535, %v5618_v32  ;;  %v2724_v32 = vand.u32 65535, %v5635_v38 }
 0x2e2   :  { %2882 = vmin.xlane.f32.xlu0 %v5793_v15  ;;  %v2572_v24 = vcvt.s32.f32 %v2570_v9 }
 0x2e3   :  { %v5799_v22 = vpop.xlane.xlu1 %2588  ;;  %v2726_v38 = vcvt.s32.f32 %v2724_v32 }
 0x2e4   :  { %v2453_v54 = vpop.xlane.xlu0 %2452  ;;  %vm2590_vm9 = vcmp.eq.f32.partialorder %v5568_v53, %v5799_v22  ;;  %v2614_v53 = vcvt.s32.f32 %v2612_v12 }
 0x2e5   :  { %vm2530_vm8 = vcmp.eq.f32.partialorder %v5578_v5, %v2453_v54  ;;  %2931 = vst.msk [vmem:[%s6057_s2 + $0xc0] sm:$0xff] %vm2906_vm13, %v2453_v54  ;;  %v2591_v47 = vsel %vm2590_vm9, %v2586_v8, inf }
 0x2e6   :  { %v5811_v44 = vsel %vm2530_vm8, %v5512_v20, 1073741824  ;;  %2564 = vmin.xlane.f32.xlu0 %v2563_v26  ;;  %v2598_v20 = vand.u32 65535, %v5573_v18  ;;  %v2626_v18 = vand.u32 65535, %v5593_v27  ;;  %v2654_v27 = vand.u32 65535, %v5615_v16 }
 0x2e7   :  { %v2893_v7 = vshra.s32 %v5811_v44, 16  ;;  %v5816_v29 = vpop.xlane.xlu1 %2616  ;;  %v2682_v16 = vand.u32 65535, %v5632_v25  ;;  %v2710_v25 = vand.u32 65535, %v5647_v37  ;;  %v2752_v37 = vand.u32 65535, %v5678_v2 }
 0x2e8   :  { %v5814_v5 = vpop.xlane.xlu0 %2574  ;;  %vm2618_vm11 = vcmp.eq.f32.partialorder %v5590_v19, %v5816_v29  ;;  %v2642_v19 = vcvt.s32.f32 %v2640_v36 }
 0x2e9   :  { %v5818_v61 = vcvt.s32.f32 %v2893_v7  ;;  %vm2576_vm10 = vcmp.eq.f32.partialorder %v5585_v6, %v5814_v5  ;;  %v2619_v14 = vsel %vm2618_vm11, %v2614_v53, inf  ;;  %v2600_v6 = vcvt.s32.f32 %v2598_v20 }
 0x2ea   :  { %2592 = vmin.xlane.f32.xlu0 %v2591_v47  ;;  %v2577_v30 = vsel %vm2576_vm10, %v2572_v24, inf }
 0x2eb   :  { %2896 = vmin.xlane.f32.xlu1 %v5818_v61  ;;  %v5829_v45 = vpop.xlane.xlu1 %2644 }
 0x2ec   :  { %v5827_v31 = vpop.xlane.xlu0 %2602  ;;  %vm2646_vm14 = vcmp.eq.f32.partialorder %v5612_v49, %v5829_v45  ;;  %v2670_v49 = vcvt.s32.f32 %v2668_v41  ;;  %v2712_v41 = vcvt.s32.f32 %v2710_v25 }
 0x2ed   :  { %vm2604_vm12 = vcmp.eq.f32.partialorder %v5608_v4, %v5827_v31  ;;  %v2647_v26 = vsel %vm2646_vm14, %v2642_v19, inf  ;;  %v2628_v4 = vcvt.s32.f32 %v2626_v18  ;;  %v2738_v18 = vand.u32 65535, %v5662_v52 }
 0x2ee   :  { %2620 = vmin.xlane.f32.xlu0 %v2619_v14  ;;  %v2605_v56 = vsel %vm2604_vm12, %v2600_v6, inf }
 0x2ef   :  { %2578 = vmin.xlane.f32.xlu1 %v2577_v30  ;;  %v5839_v9 = vpop.xlane.xlu1 %2672  ;;  %v2740_v6 = vcvt.s32.f32 %v2738_v18 }
 0x2f0   :  { %v5837_v54 = vpop.xlane.xlu0 %2630  ;;  %vm2674_vm0 = vcmp.eq.f32.partialorder %v5629_v51, %v5839_v9  ;;  %v2698_v51 = vcvt.s32.f32 %v2696_v59  ;;  %v2780_v59 = vand.u32 65535, %v5703_v60  ;;  %v2808_v60 = vand.u32 65535, %v5727_v50 }
 0x2f1   :  { %vm2632_vm15 = vcmp.eq.f32.partialorder %v5625_v63, %v5837_v54  ;;  %v2675_v7 = vsel %vm2674_vm0, %v2670_v49, inf  ;;  %v2656_v63 = vcvt.s32.f32 %v2654_v27  ;;  %v2836_v50 = vand.u32 65535, %v5751_v1 }
 0x2f2   :  { %2648 = vmin.xlane.f32.xlu0 %v2647_v26  ;;  %v2633_v12 = vsel %vm2632_vm15, %v2628_v4, inf  ;;  %v2754_v26 = vcvt.s32.f32 %v2752_v37  ;;  %v2782_v49 = vcvt.s32.f32 %v2780_v59  ;;  %v2810_v32 = vcvt.s32.f32 %v2808_v60 }
 0x2f3   :  { %2606 = vmin.xlane.f32.xlu1 %v2605_v56  ;;  %v5849_v47 = vpop.xlane.xlu1 %2700  ;;  %v2864_v1 = vand.u32 65535, %v5775_v10  ;;  %v2892_v10 = vand.u32 65535, %v5811_v44 }
 0x2f4   :  { %v5847_v8 = vpop.xlane.xlu0 %2658  ;;  %vm2702_vm2 = vcmp.eq.f32.partialorder %v5644_v57, %v5849_v47 }
 0x2f5   :  { %vm2660_vm1 = vcmp.eq.f32.partialorder %v5640_v0, %v5847_v8  ;;  %v2703_v24 = vsel %vm2702_vm2, %v2698_v51, inf  ;;  %v2684_v0 = vcvt.s32.f32 %v2682_v16 }
 0x2f6   :  { %2676 = vmin.xlane.f32.xlu0 %v2675_v7  ;;  %v2661_v20 = vsel %vm2660_vm1, %v2656_v63, inf }
 0x2f7   :  { %2634 = vmin.xlane.f32.xlu1 %v2633_v12  ;;  %v5859_v53 = vpop.xlane.xlu1 %2728 }
 0x2f8   :  { %v5857_v36 = vpop.xlane.xlu0 %2686  ;;  %vm2730_vm4 = vcmp.eq.f32.partialorder %v5659_v35, %v5859_v53 }
 0x2f9   :  { %vm2688_vm3 = vcmp.eq.f32.partialorder %v5656_v39, %v5857_v36  ;;  %v2731_v14 = vsel %vm2730_vm4, %v2726_v38, inf }
 0x2fa   :  { %2704 = vmin.xlane.f32.xlu0 %v2703_v24  ;;  %v2689_v57 = vsel %vm2688_vm3, %v2684_v0, inf  ;;  %v2838_v24 = vcvt.s32.f32 %v2836_v50 }
 0x2fb   :  { %2662 = vmin.xlane.f32.xlu1 %v2661_v20 }
 0x2fc   :  { %v5866_v30 = vpop.xlane.xlu0 %2714 }
 0x2fd   :  { %vm2716_vm5 = vcmp.eq.f32.partialorder %v5666_v28, %v5866_v30  ;;  %v2766_v28 = vand.u32 65535, %v5691_v58  ;;  %v2794_v58 = vand.u32 65535, %v5715_v62  ;;  %v2822_v62 = vand.u32 65535, %v5739_v23 }
 0x2fe   :  { %2732 = vmin.xlane.f32.xlu0 %v2731_v14  ;;  %v2717_v39 = vsel %vm2716_vm5, %v2712_v41, inf  ;;  %v2850_v23 = vand.u32 65535, %v5763_v34  ;;  %v2878_v34 = vand.u32 65535, %v5788_v40  ;;  %v2567_v41 = vcvt.f32.s32 %v5791_v46 }
 0x2ff   :  { %2690 = vmin.xlane.f32.xlu1 %v2689_v57  ;;  %v2768_v2 = vcvt.s32.f32 %v2766_v28  ;;  %v2796_v7 = vcvt.s32.f32 %v2794_v58  ;;  %v2824_v51 = vcvt.s32.f32 %v2822_v62  ;;  %v2866_v57 = vcvt.s32.f32 %v2864_v1 }
 0x300   :  { %v5871_v35 = vpop.xlane.xlu0 %2742  ;;  %v2852_v0 = vcvt.s32.f32 %v2850_v23  ;;  %v2880_v18 = vcvt.s32.f32 %v2878_v34  ;;  %v2568_v37 = vshll.u32 %v2567_v41, 16  ;;  %v2581_v40 = vcvt.f32.s32 %v5814_v5 }
 0x301   :  { %vm2744_vm6 = vcmp.eq.f32.partialorder %v5670_v17, %v5871_v35 }
 0x302   :  { %v2745_v19 = vsel %vm2744_vm6, %v2740_v6, inf  ;;  %v2582_v5 = vshll.u32 %v2581_v40, 16 }
 0x303   :  { %2718 = vmin.xlane.f32.xlu1 %v2717_v39 }
 0x304   :  { %v5876_v56 = vpop.xlane.xlu1 %2756 }
 0x305   :  { %vm2758_vm7 = vcmp.eq.f32.partialorder %v5682_v33, %v5876_v56 }
 0x306   :  { %v2759_v52 = vsel %vm2758_vm7, %v2754_v26, inf }
 0x307   :  { %2746 = vmin.xlane.f32.xlu1 %v2745_v19  ;;  %2760 = vmin.xlane.f32.xlu0 %v2759_v52  ;;  %v2894_v52 = vcvt.s32.f32 %v2892_v10  ;;  %v2735_v10 = vcvt.f32.s32 %v5859_v53  ;;  %v2721_v53 = vcvt.f32.s32 %v5866_v30 }
 0x311   :  { %v5881_v27 = vpop.xlane.xlu0 %2770 }
 0x312   :  { %vm2772_vm8 = vcmp.eq.f32.partialorder %v5694_v42, %v5881_v27 }
 0x313   :  { %v2773_v17 = vsel %vm2772_vm8, %v2768_v2, inf  ;;  %v2623_v2 = vcvt.f32.s32 %v5816_v29  ;;  %v2651_v29 = vcvt.f32.s32 %v5829_v45 }
 0x314   :  { %2774 = vmin.xlane.f32.xlu1 %v2773_v17  ;;  %v2609_v17 = vcvt.f32.s32 %v5827_v31 }
 0x315   :  { %v2652_v31 = vshll.u32 %v2651_v29, 16 }
 0x316   :  { %v2610_v60 = vshll.u32 %v2609_v17, 16  ;;  %v2763_v17 = vcvt.f32.s32 %v5876_v56  ;;  %v2777_v56 = vcvt.f32.s32 %v5881_v27 }
 0x31b   :  { %v5886_v4 = vpop.xlane.xlu1 %2784 }
 0x31c   :  { %vm2786_vm9 = vcmp.eq.f32.partialorder %v5706_v21, %v5886_v4 }
 0x31d   :  { %v2787_v33 = vsel %vm2786_vm9, %v2782_v49, inf }
 0x31e   :  { %2788 = vmin.xlane.f32.xlu0 %v2787_v33  ;;  %v2624_v33 = vshll.u32 %v2623_v2, 16 }
 0x327   :  { %v5891_v12 = vpop.xlane.xlu0 %2798 }
 0x328   :  { %vm2800_vm10 = vcmp.eq.f32.partialorder %v5718_v11, %v5891_v12  ;;  %v2805_v27 = vcvt.f32.s32 %v5891_v12 }
 0x329   :  { %v2801_v42 = vsel %vm2800_vm10, %v2796_v7, inf }
 0x32a   :  { %2802 = vmin.xlane.f32.xlu1 %v2801_v42 }
 0x335   :  { %v5896_v16 = vpop.xlane.xlu1 %2812 }
 0x336   :  { %vm2814_vm11 = vcmp.eq.f32.partialorder %v5730_v3, %v5896_v16 }
 0x337   :  { %v2815_v21 = vsel %vm2814_vm11, %v2810_v32, inf  ;;  %v2637_v32 = vcvt.f32.s32 %v5837_v54 }
 0x338   :  { %2816 = vmin.xlane.f32.xlu0 %v2815_v21 }
 0x339   :  { %v2638_v54 = vshll.u32 %v2637_v32, 16  ;;  %v2778_v32 = vshll.u32 %v2777_v56, 16 }
 0x33f   :  { %v5901_v63 = vpop.xlane.xlu0 %2826 }
 0x340   :  { %vm2828_vm12 = vcmp.eq.f32.partialorder %v5742_v43, %v5901_v63  ;;  %v2833_v12 = vcvt.f32.s32 %v5901_v63 }
 0x341   :  { %v2829_v11 = vsel %vm2828_vm12, %v2824_v51, inf  ;;  %v2679_v51 = vcvt.f32.s32 %v5839_v9 }
 0x342   :  { %2830 = vmin.xlane.f32.xlu1 %v2829_v11 }
 0x343   :  { %v2680_v9 = vshll.u32 %v2679_v51, 16 }
 0x34a   :  { %v5906_v20 = vpop.xlane.xlu1 %2840 }
 0x34b   :  { %vm2842_vm14 = vcmp.eq.f32.partialorder %v5754_v48, %v5906_v20 }
 0x34c   :  { %v2843_v3 = vsel %vm2842_vm14, %v2838_v24, inf }
 0x34d   :  { %2844 = vmin.xlane.f32.xlu0 %v2843_v3  ;;  %v2665_v3 = vcvt.f32.s32 %v5847_v8 }
 0x34f   :  { %v2666_v8 = vshll.u32 %v2665_v3, 16 }
 0x355   :  { %v5911_v25 = vpop.xlane.xlu0 %2854 }
 0x356   :  { %vm2856_vm15 = vcmp.eq.f32.partialorder %v5766_v13, %v5911_v25  ;;  %v2861_v63 = vcvt.f32.s32 %v5911_v25 }
 0x357   :  { %v2857_v43 = vsel %vm2856_vm15, %v2852_v0, inf }
 0x358   :  { %2858 = vmin.xlane.f32.xlu1 %v2857_v43  ;;  %v2707_v43 = vcvt.f32.s32 %v5849_v47 }
 0x35a   :  { %v2708_v47 = vshll.u32 %v2707_v43, 16 }
 0x363   :  { %v5916_v38 = vpop.xlane.xlu1 %2868 }
 0x364   :  { %vm2870_vm0 = vcmp.eq.f32.partialorder %v5778_v55, %v5916_v38  ;;  %v2595_v55 = vcvt.f32.s32 %v5799_v22 }
 0x365   :  { %v2871_v48 = vsel %vm2870_vm0, %v2866_v57, inf }
 0x366   :  { %2872 = vmin.xlane.f32.xlu0 %v2871_v48  ;;  %v2596_v46 = vshll.u32 %v2595_v55, 16 }
 0x36f   :  { %v5921_v14 = vpop.xlane.xlu0 %2882 }
 0x370   :  { %vm2884_vm1 = vcmp.eq.f32.partialorder %v5793_v15, %v5921_v14  ;;  %v2889_v25 = vcvt.f32.s32 %v5921_v14 }
 0x371   :  { %v2885_v13 = vsel %vm2884_vm1, %v2880_v18, inf  ;;  %v2693_v18 = vcvt.f32.s32 %v5857_v36 }
 0x372   :  { %2886 = vmin.xlane.f32.xlu1 %v2885_v13 }
 0x373   :  { %v2565_v39 = vpop.xlane.xlu0 %2564  ;;  %v2694_v36 = vshll.u32 %v2693_v18, 16 }
 0x374   :  { %v2566_v6 = vcvt.f32.s32 %v2565_v39 }
 0x376   :  { %v2569_v19 = vadd.s32 %v2568_v37, %v2566_v6 }
 0x377   :  { %v2593_v28 = vpop.xlane.xlu0 %2592 }
 0x378   :  { %v5929_v26 = vpop.xlane.xlu1 %2896  ;;  %2932 = vst.msk [vmem:[%s6058_s3] sm:$0xff] %vm2906_vm13, %v2569_v19  ;;  %v2594_v15 = vcvt.f32.s32 %v2593_v28 }
 0x379   :  { %vm2898_vm2 = vcmp.eq.f32.partialorder %v5818_v61, %v5929_v26 }
 0x37a   :  { %v2899_v22 = vsel %vm2898_vm2, %v2894_v52, inf  ;;  %v2597_v44 = vadd.s32 %v2596_v46, %v2594_v15  ;;  %v2736_v52 = vshll.u32 %v2735_v10, 16 }
 0x37b   :  { %2900 = vmin.xlane.f32.xlu0 %v2899_v22  ;;  %v2621_v49 = vpop.xlane.xlu0 %2620 }
 0x37c   :  { %v2579_v59 = vpop.xlane.xlu1 %2578  ;;  %2934 = vst.msk [vmem:[%s6058_s3 + $0x10] sm:$0xff] %vm2906_vm13, %v2597_v44  ;;  %v2622_v61 = vcvt.f32.s32 %v2621_v49  ;;  %v2722_v44 = vshll.u32 %v2721_v53, 16  ;;  %v2890_v53 = vshll.u32 %v2889_v25, 16 }
 0x37d   :  { %v2580_v58 = vcvt.f32.s32 %v2579_v59 }
 0x37e   :  { %v2625_v42 = vadd.s32 %v2624_v33, %v2622_v61 }
 0x37f   :  { %v2583_v7 = vadd.s32 %v2582_v5, %v2580_v58  ;;  %v2649_v62 = vpop.xlane.xlu0 %2648  ;;  %v2749_v5 = vcvt.f32.s32 %v5871_v35  ;;  %v2764_v58 = vshll.u32 %v2763_v17, 16 }
 0x380   :  { %v2607_v21 = vpop.xlane.xlu1 %2606  ;;  %2936 = vst.msk [vmem:[%s6058_s3 + $0x20] sm:$0xff] %vm2906_vm13, %v2625_v42  ;;  %v2650_v11 = vcvt.f32.s32 %v2649_v62 }
 0x381   :  { %2933 = vst.msk [vmem:[%s6058_s3 + $0x8] sm:$0xff] %vm2906_vm13, %v2583_v7  ;;  %v2608_v45 = vcvt.f32.s32 %v2607_v21  ;;  %v2750_v33 = vshll.u32 %v2749_v5, 16 }
 0x382   :  { %v2653_v24 = vadd.s32 %v2652_v31, %v2650_v11  ;;  %v2791_v31 = vcvt.f32.s32 %v5886_v4  ;;  %v2819_v4 = vcvt.f32.s32 %v5896_v16  ;;  %v2847_v16 = vcvt.f32.s32 %v5906_v20 }
 0x383   :  { %v2611_v50 = vadd.s32 %v2610_v60, %v2608_v45  ;;  %v2677_v0 = vpop.xlane.xlu0 %2676  ;;  %v2875_v20 = vcvt.f32.s32 %v5916_v38 }
 0x384   :  { %v2635_v23 = vpop.xlane.xlu1 %2634  ;;  %2938 = vst.msk [vmem:[%s6058_s3 + $0x30] sm:$0xff] %vm2906_vm13, %v2653_v24  ;;  %v2678_v57 = vcvt.f32.s32 %v2677_v0  ;;  %v2792_v45 = vshll.u32 %v2791_v31, 16 }
 0x385   :  { %2935 = vst.msk [vmem:[%s6058_s3 + $0x18] sm:$0xff] %vm2906_vm13, %v2611_v50  ;;  %v2636_v1 = vcvt.f32.s32 %v2635_v23 }
 0x386   :  { %v2681_v34 = vadd.s32 %v2680_v9, %v2678_v57  ;;  %v2820_v9 = vshll.u32 %v2819_v4, 16 }
 0x387   :  { %v2639_v48 = vadd.s32 %v2638_v54, %v2636_v1  ;;  %v2705_v13 = vpop.xlane.xlu0 %2704  ;;  %v2806_v54 = vshll.u32 %v2805_v27, 16 }
 0x388   :  { %v2663_v41 = vpop.xlane.xlu1 %2662  ;;  %2940 = vst.msk [vmem:[%s6058_s3 + $0x40] sm:$0xff] %vm2906_vm13, %v2681_v34  ;;  %v2706_v37 = vcvt.f32.s32 %v2705_v13 }
 0x389   :  { %2937 = vst.msk [vmem:[%s6058_s3 + $0x28] sm:$0xff] %vm2906_vm13, %v2639_v48  ;;  %v2664_v39 = vcvt.f32.s32 %v2663_v41  ;;  %v2834_v48 = vshll.u32 %v2833_v12, 16  ;;  %v2848_v41 = vshll.u32 %v2847_v16, 16 }
 0x38a   :  { %v2709_v6 = vadd.s32 %v2708_v47, %v2706_v37 }
 0x38b   :  { %v2667_v55 = vadd.s32 %v2666_v8, %v2664_v39  ;;  %v2733_v40 = vpop.xlane.xlu0 %2732  ;;  %v2862_v39 = vshll.u32 %v2861_v63, 16 }
 0x38c   :  { %v2691_v19 = vpop.xlane.xlu1 %2690  ;;  %2942 = vst.msk [vmem:[%s6058_s3 + $0x50] sm:$0xff] %vm2906_vm13, %v2709_v6  ;;  %v2734_v46 = vcvt.f32.s32 %v2733_v40 }
 0x38d   :  { %2939 = vst.msk [vmem:[%s6058_s3 + $0x38] sm:$0xff] %vm2906_vm13, %v2667_v55  ;;  %v2692_v28 = vcvt.f32.s32 %v2691_v19 }
 0x38e   :  { %v2737_v15 = vadd.s32 %v2736_v52, %v2734_v46 }
 0x38f   :  { %v2695_v2 = vadd.s32 %v2694_v36, %v2692_v28  ;;  %v2876_v36 = vshll.u32 %v2875_v20, 16 }
 0x390   :  { %v2719_v22 = vpop.xlane.xlu1 %2718  ;;  %2944 = vst.msk [vmem:[%s6058_s3 + $0x60] sm:$0xff] %vm2906_vm13, %v2737_v15 }
 0x391   :  { %2941 = vst.msk [vmem:[%s6058_s3 + $0x48] sm:$0xff] %vm2906_vm13, %v2695_v2  ;;  %v2720_v30 = vcvt.f32.s32 %v2719_v22  ;;  %v2903_v2 = vcvt.f32.s32 %v5929_v26 }
 0x393   :  { %v2723_v59 = vadd.s32 %v2722_v44, %v2720_v30  ;;  %v2904_v15 = vshll.u32 %v2903_v2, 16 }
 0x394   :  { %v2747_v49 = vpop.xlane.xlu1 %2746  ;;  %v2761_v29 = vpop.xlane.xlu0 %2760 }
 0x395   :  { %2943 = vst.msk [vmem:[%s6058_s3 + $0x58] sm:$0xff] %vm2906_vm13, %v2723_v59  ;;  %v2748_v35 = vcvt.f32.s32 %v2747_v49  ;;  %v2762_v61 = vcvt.f32.s32 %v2761_v29 }
 0x397   :  { %v2751_v7 = vadd.s32 %v2750_v33, %v2748_v35  ;;  %v2765_v42 = vadd.s32 %v2764_v58, %v2762_v61 }
 0x399   :  { %2945 = vst.msk [vmem:[%s6058_s3 + $0x68] sm:$0xff] %vm2906_vm13, %v2751_v7  ;;  %2946 = vst.msk [vmem:[%s6058_s3 + $0x70] sm:$0xff] %vm2906_vm13, %v2765_v42 }
 0x3a1   :  { %v2775_v60 = vpop.xlane.xlu1 %2774 }
 0x3a2   :  { %v2776_v21 = vcvt.f32.s32 %v2775_v60 }
 0x3a4   :  { %v2779_v62 = vadd.s32 %v2778_v32, %v2776_v21 }
 0x3a6   :  { %2947 = vst.msk [vmem:[%s6058_s3 + $0x78] sm:$0xff] %vm2906_vm13, %v2779_v62 }
 0x3ab   :  { %v2789_v51 = vpop.xlane.xlu0 %2788 }
 0x3ac   :  { %v2790_v11 = vcvt.f32.s32 %v2789_v51 }
 0x3ae   :  { %v2793_v50 = vadd.s32 %v2792_v45, %v2790_v11 }
 0x3b0   :  { %2948 = vst.msk [vmem:[%s6058_s3 + $0x80] sm:$0xff] %vm2906_vm13, %v2793_v50 }
 0x3b7   :  { %v2803_v24 = vpop.xlane.xlu1 %2802 }
 0x3b8   :  { %v2804_v3 = vcvt.f32.s32 %v2803_v24 }
 0x3ba   :  { %v2807_v23 = vadd.s32 %v2806_v54, %v2804_v3 }
 0x3bc   :  { %2949 = vst.msk [vmem:[%s6058_s3 + $0x88] sm:$0xff] %vm2906_vm13, %v2807_v23 }
 0x3c5   :  { %v2817_v0 = vpop.xlane.xlu0 %2816 }
 0x3c6   :  { %v2818_v43 = vcvt.f32.s32 %v2817_v0 }
 0x3c8   :  { %v2821_v1 = vadd.s32 %v2820_v9, %v2818_v43 }
 0x3ca   :  { %2950 = vst.msk [vmem:[%s6058_s3 + $0x90] sm:$0xff] %vm2906_vm13, %v2821_v1 }
 0x3cf   :  { %v2831_v57 = vpop.xlane.xlu1 %2830 }
 0x3d0   :  { %v2832_v34 = vcvt.f32.s32 %v2831_v57 }
 0x3d2   :  { %v2835_v8 = vadd.s32 %v2834_v48, %v2832_v34 }
 0x3d4   :  { %2951 = vst.msk [vmem:[%s6058_s3 + $0x98] sm:$0xff] %vm2906_vm13, %v2835_v8 }
 0x3da   :  { %v2845_v18 = vpop.xlane.xlu0 %2844 }
 0x3db   :  { %v2846_v13 = vcvt.f32.s32 %v2845_v18 }
 0x3dd   :  { %v2849_v47 = vadd.s32 %v2848_v41, %v2846_v13 }
 0x3df   :  { %2952 = vst.msk [vmem:[%s6058_s3 + $0xa0] sm:$0xff] %vm2906_vm13, %v2849_v47 }
 0x3e5   :  { %v2859_v10 = vpop.xlane.xlu1 %2858 }
 0x3e6   :  { %v2860_v37 = vcvt.f32.s32 %v2859_v10 }
 0x3e8   :  { %v2863_v55 = vadd.s32 %v2862_v39, %v2860_v37 }
 0x3ea   :  { %2953 = vst.msk [vmem:[%s6058_s3 + $0xa8] sm:$0xff] %vm2906_vm13, %v2863_v55 }
 0x3f3   :  { %v2873_v6 = vpop.xlane.xlu0 %2872 }
 0x3f4   :  { %v2874_v19 = vcvt.f32.s32 %v2873_v6 }
 0x3f6   :  { %v2877_v40 = vadd.s32 %v2876_v36, %v2874_v19 }
 0x3f8   :  { %2954 = vst.msk [vmem:[%s6058_s3 + $0xb0] sm:$0xff] %vm2906_vm13, %v2877_v40 }
 0x3ff   :  { %v2887_v52 = vpop.xlane.xlu1 %2886 }
 0x400   :  { %v2888_v28 = vcvt.f32.s32 %v2887_v52 }
 0x402   :  { %v2891_v46 = vadd.s32 %v2890_v53, %v2888_v28 }
 0x404   :  { %2955 = vst.msk [vmem:[%s6058_s3 + $0xb8] sm:$0xff] %vm2906_vm13, %v2891_v46 }
 0x408   :  { %v2901_v38 = vpop.xlane.xlu0 %2900 }
 0x409   :  { %v2902_v22 = vcvt.f32.s32 %v2901_v38 }
 0x40b   :  { %v2905_v44 = vadd.s32 %v2904_v15, %v2902_v22 }
 0x40d   :  { %2956 = vst.msk [vmem:[%s6058_s3 + $0xc0] sm:$0xff] %vm2906_vm13, %v2905_v44 }

</bundles_post_ra>
